<compile_context>
chip_gen: v6e
topology: v6e:2x2x1
jax: 0.10.0
libtpu: 0.0.40
codegen_flags: <defaults>
</compile_context>

<pallas_src>
import functools

import jax
import jax.numpy as jnp
from jax.experimental import pallas as pl
from jax.experimental.pallas import tpu as pltpu


def _gat_agg_kernel(ftb_ref, elT_ref, eremax_ref, bias_ref, adj_ref, out_ref,
                    *, num_heads: int, out_feats: int, negative_slope: float,
                    softmax_dtype):
    """Per destination-row tile: masked edge softmax + MXU aggregation."""
    H, F = num_heads, out_feats
    sm = softmax_dtype

    # 0/1 edge mask for this destination tile, converted ONCE per grid step.
    adj = adj_ref[...].astype(sm)                       # (TILE_I, N)
    eremax = eremax_ref[...]                            # (TILE_I, 2H): [er | e_max bound]

    for h in range(H):                                  # static unrolled head loop
        er_col = eremax[:, h:h + 1]                     # (TILE_I, 1) er_i
        emax_col = eremax[:, H + h:H + h + 1]           # (TILE_I, 1) >= max_j leakyrelu(el_j+er_i)

        # u_add_v: e[i, j] = el[j] + er[i]   (dst=i, src=j)
        e = er_col + elT_ref[h:h + 1, :]                # (TILE_I, N)
        # LeakyReLU folded into one max (0 < slope < 1).
        e = jnp.maximum(e, negative_slope * e)
        # Unnormalized, masked softmax numerator.  e - e_ub <= 0 so exp never overflows,
        # and the bound cancels exactly in the deferred normalization below.
        p = jnp.exp(e - emax_col) * adj                 # (TILE_I, N)
        denom = jnp.sum(p, axis=1, keepdims=True, dtype=jnp.float32)   # (TILE_I, 1)

        # Aggregation on the MXU (bf16 operands, f32 accumulation).
        rst = jnp.dot(p.astype(jnp.bfloat16), ftb_ref[:, h * F:(h + 1) * F],
                      preferred_element_type=jnp.float32)               # (TILE_I, F)

        # Deferred normalization: one f32 multiply on the small (TILE_I, F) result
        # instead of scaling alpha over (TILE_I, N).
        inv = pl.reciprocal(denom, approx=True)
        out_ref[:, h * F:(h + 1) * F] = (
            rst * inv + bias_ref[:, h * F:(h + 1) * F]).astype(out_ref.dtype)


def gat_crystal_forward(feat, w_t, attn_l, attn_r, adj, bias, *,
                        num_heads, out_feats, negative_slope=0.2, tile_i=128,
                        softmax_dtype=jnp.float32, adj_dtype=jnp.int8):
    N, d_in = feat.shape
    H, F = num_heads, out_feats
    HF = H * F
    tile_i = min(tile_i, N)
    assert N % tile_i == 0, "N must be a multiple of the destination tile size"

    # ---- hoisted projection + attention-dot precompute (plain XLA, MXU-backed) ----
    ft = jnp.dot(feat, w_t)                              # (N, HF) f32
    ftb = ft.astype(jnp.bfloat16)                        # bf16 RHS for aggregation matmul
    ft3 = ft.reshape(N, H, F)
    el = jnp.sum(ft3 * attn_l[None], axis=-1)            # (N, H) source scores
    er = jnp.sum(ft3 * attn_r[None], axis=-1)            # (N, H) destination scores
    elT = el.T.astype(softmax_dtype)                     # (H, N) lane-major per head

    # Row-max upper bound: leaky_relu is monotone, so
    # leaky_relu(max_j el[j] + er[i]) >= max_j leaky_relu(el[j] + er[i]).
    el_max = jnp.max(el, axis=0, keepdims=True)          # (1, H)
    e_ub = el_max + er
    e_ub = jnp.maximum(e_ub, negative_slope * e_ub)
    er_emax = jnp.concatenate([er, e_ub], axis=-1).astype(softmax_dtype)   # (N, 2H)

    bias2d = bias.reshape(1, HF).astype(jnp.float32)     # (1, HF)
    adj_k = (adj > 0).astype(adj_dtype)                  # 0/1 mask; int8 halves N^2 HBM stream

    # ---- explicit VMEM budget (v7x has only 64 MiB/TC) ----
    sm_bytes = jnp.dtype(softmax_dtype).itemsize
    adj_bytes = jnp.dtype(adj_dtype).itemsize
    budget = (
        N * HF * 2                         # ftb (bf16) resident
        + 8 * N * sm_bytes                 # el^T resident (H sublane-padded to 8)
        + 2 * tile_i * N * adj_bytes       # adj row tile, double-buffered
        + 2 * tile_i * 128 * sm_bytes      # [er|emax] tile (lane-padded), double-buffered
        + 2 * tile_i * HF * 4              # output tile, double-buffered
        + 4 * tile_i * N * 4               # in-kernel temporaries (adj cast, e, p) + headroom
        + (2 << 20)                        # misc slack
    )
    try:
        vmem_cap = getattr(pltpu.get_tpu_info(), "vmem_capacity_bytes", 64 << 20)
    except Exception:  # pragma: no cover - conservative fallback
        vmem_cap = 64 << 20
    vmem_limit = int(min(max(budget, 16 << 20), int(vmem_cap * 0.85)))

    kernel = functools.partial(
        _gat_agg_kernel, num_heads=H, out_feats=F,
        negative_slope=negative_slope, softmax_dtype=softmax_dtype)

    out = pl.pallas_call(
        kernel,
        out_shape=jax.ShapeDtypeStruct((N, HF), jnp.float32),
        grid=(N // tile_i,),
        in_specs=[
            pl.BlockSpec((N, HF), lambda i: (0, 0)),           # ftb         (resident)
            pl.BlockSpec((H, N), lambda i: (0, 0)),            # el^T        (resident)
            pl.BlockSpec((tile_i, 2 * H), lambda i: (i, 0)),   # [er|emax]   (streamed)
            pl.BlockSpec((1, HF), lambda i: (0, 0)),           # bias        (resident)
            pl.BlockSpec((tile_i, N), lambda i: (i, 0)),       # adj row tile (streamed)
        ],
        out_specs=pl.BlockSpec((tile_i, HF), lambda i: (i, 0)),
        compiler_params=pltpu.CompilerParams(
            # No cross-step scratch state -> destination tiles are independent and can
            # be sharded across TensorCores (2x on v7x, no-op on v5e/v6e).
            dimension_semantics=("parallel",),
            vmem_limit_bytes=vmem_limit,
        ),
    )(ftb, elT, er_emax, bias2d, adj_k)
    return out.reshape(N, H, F)


def gat_crystal_reference(feat, w_t, attn_l, attn_r, adj, bias,
                          *, num_heads, out_feats, negative_slope=0.2):
    """Pure-JAX reference mirroring the PyTorch/DGL forward."""
    N = feat.shape[0]
    H, F = num_heads, out_feats
    ft = (feat @ w_t).reshape(N, H, F)
    el = jnp.sum(ft * attn_l[None], axis=-1)             # (N, H)
    er = jnp.sum(ft * attn_r[None], axis=-1)             # (N, H)
    e = el[None, :, :] + er[:, None, :]                   # e[i, j, h]
    e = jnp.where(e > 0, e, negative_slope * e)
    mask = (adj > 0)[:, :, None]
    e = jnp.where(mask, e, -1e30)
    e = e - jnp.max(e, axis=1, keepdims=True)
    p = jnp.where(mask, jnp.exp(e), 0.0)
    alpha = p / jnp.sum(p, axis=1, keepdims=True)
    rst = jnp.einsum("ijh,jhf->ihf", alpha, ft)
    return rst + bias.reshape(1, H, F)


if __name__ == "__main__":
    # Small shapes consistent with the module; H*F = 128 so the output store is lane-dense.
    N_NODES = 256
    IN_FEATS = 32
    OUT_FEATS = 32
    NUM_HEADS = 4
    NEG_SLOPE = 0.2
    TILE_I = 128

    key = jax.random.PRNGKey(0)
    k_feat, k_w, k_al, k_ar, k_adj = jax.random.split(key, 5)

    # Deterministic parameter init (xavier_normal with gain('relu') = sqrt(2)).
    gain = 2.0 ** 0.5
    std_fc = gain * (2.0 / (IN_FEATS + NUM_HEADS * OUT_FEATS)) ** 0.5
    # torch fc.weight has shape (H*F, Din); we pass its transpose (Din, H*F).
    w_t = std_fc * jax.random.normal(k_w, (IN_FEATS, NUM_HEADS * OUT_FEATS), jnp.float32)

    std_attn = gain * (2.0 / (NUM_HEADS + OUT_FEATS)) ** 0.5
    attn_l = std_attn * jax.random.normal(k_al, (NUM_HEADS, OUT_FEATS), jnp.float32)
    attn_r = std_attn * jax.random.normal(k_ar, (NUM_HEADS, OUT_FEATS), jnp.float32)

    bias = jnp.zeros((NUM_HEADS * OUT_FEATS,), jnp.float32)  # nn.init.constant_(bias, 0)

    # Node features.
    feat = jax.random.normal(k_feat, (N_NODES, IN_FEATS), jnp.float32)

    # Random graph as dense adjacency (adj[i, j] = edge j -> i), with self-loops so
    # every node has in-degree >= 1 (allow_zero_in_degree handling).
    adj = (jax.random.uniform(k_adj, (N_NODES, N_NODES)) < 0.1).astype(jnp.float32)
    adj = jnp.maximum(adj, jnp.eye(N_NODES, dtype=jnp.float32))

    out = gat_crystal_forward(
        feat, w_t, attn_l, attn_r, adj, bias,
        num_heads=NUM_HEADS, out_feats=OUT_FEATS,
        negative_slope=NEG_SLOPE, tile_i=TILE_I,
        softmax_dtype=jnp.float32,   # set jnp.bfloat16 on v6e/v7x for the bf16 softmax path
    )
    out = jax.block_until_ready(out)

    ref = gat_crystal_reference(
        feat, w_t, attn_l, attn_r, adj, bias,
        num_heads=NUM_HEADS, out_feats=OUT_FEATS, negative_slope=NEG_SLOPE,
    )
    assert out.shape == (N_NODES, NUM_HEADS, OUT_FEATS)
    # Tolerance loosened vs pure-f32: aggregation matmul runs in bf16 (f32 accumulation)
    # and the softmax denominator uses the EUP approx reciprocal.
    assert jnp.allclose(out, ref, atol=5e-2, rtol=5e-2), "Pallas kernel mismatch vs reference"

    print("KERNEL_OK")
</pallas_src>

<mosaic_0001>
module attributes {stable_mosaic.version = 11 : i64} {
  func.func @_gat_agg_kernel(%arg0: i32, %arg1: memref<256x128xbf16, #tpu.memory_space<vmem>>, %arg2: memref<4x256xf32, #tpu.memory_space<vmem>>, %arg3: memref<128x8xf32, #tpu.memory_space<vmem>>, %arg4: memref<1x128xf32, #tpu.memory_space<vmem>>, %arg5: memref<128x256xi8, #tpu.memory_space<vmem>>, %arg6: memref<128x128xf32, #tpu.memory_space<vmem>>) attributes {dimension_semantics = [#tpu.dimension_semantics<parallel>], iteration_bounds = array<i64: 2>, scalar_prefetch = 0 : i64, scratch_operands = 0 : i64, tpu.core_type = #tpu.core_type<tc>, window_params = [{pipeline_mode = #tpu.pipeline_mode<synchronous>, transform_indices = @transform_0, window_bounds = array<i64: 256, 128>}, {pipeline_mode = #tpu.pipeline_mode<synchronous>, transform_indices = @transform_1, window_bounds = array<i64: 4, 256>}, {transform_indices = @transform_2, window_bounds = array<i64: 128, 8>}, {pipeline_mode = #tpu.pipeline_mode<synchronous>, transform_indices = @transform_3, window_bounds = array<i64: 1, 128>}, {transform_indices = @transform_4, window_bounds = array<i64: 128, 256>}, {transform_indices = @transform_5, window_bounds = array<i64: 128, 128>}]} {
    %c0 = arith.constant 0 : index
    %c0_0 = arith.constant 0 : index
    %0 = vector.load %arg5[%c0, %c0_0] : memref<128x256xi8, #tpu.memory_space<vmem>>, vector<128x256xi8>
    %1 = arith.sitofp %0 : vector<128x256xi8> to vector<128x256xf32>
    %c0_1 = arith.constant 0 : index
    %c0_2 = arith.constant 0 : index
    %2 = vector.load %arg3[%c0_1, %c0_2] : memref<128x8xf32, #tpu.memory_space<vmem>>, vector<128x8xf32>
    %3 = vector.extract_strided_slice %2 {offsets = [0, 0], sizes = [128, 1], strides = [1, 1]} : vector<128x8xf32> to vector<128x1xf32>
    %4 = vector.extract_strided_slice %2 {offsets = [0, 4], sizes = [128, 1], strides = [1, 1]} : vector<128x8xf32> to vector<128x1xf32>
    %c0_3 = arith.constant 0 : index
    %c0_4 = arith.constant 0 : index
    %5 = vector.load %arg2[%c0_3, %c0_4] : memref<4x256xf32, #tpu.memory_space<vmem>>, vector<1x256xf32>
    %6 = vector.broadcast %3 : vector<128x1xf32> to vector<128x256xf32>
    %7 = vector.broadcast %5 : vector<1x256xf32> to vector<128x256xf32>
    %8 = arith.addf %6, %7 : vector<128x256xf32>
    %cst = arith.constant 2.000000e-01 : f32
    %9 = vector.broadcast %cst : f32 to vector<128x256xf32>
    %10 = arith.mulf %9, %8 : vector<128x256xf32>
    %11 = arith.maximumf %8, %10 : vector<128x256xf32>
    %12 = vector.broadcast %4 : vector<128x1xf32> to vector<128x256xf32>
    %13 = arith.subf %11, %12 : vector<128x256xf32>
    %14 = math.exp %13 : vector<128x256xf32>
    %15 = arith.mulf %14, %1 : vector<128x256xf32>
    %cst_5 = arith.constant dense<0.000000e+00> : vector<128xf32>
    %16 = vector.multi_reduction <add>, %15, %cst_5 [1] : vector<128x256xf32> to vector<128xf32>
    %17 = vector.shape_cast %16 : vector<128xf32> to vector<128x1xf32>
    %18 = arith.truncf %15 : vector<128x256xf32> to vector<128x256xbf16>
    %c0_6 = arith.constant 0 : index
    %c0_7 = arith.constant 0 : index
    %19 = vector.load %arg1[%c0_6, %c0_7] : memref<256x128xbf16, #tpu.memory_space<vmem>>, vector<256x32xbf16>
    %cst_8 = arith.constant dense<0.000000e+00> : vector<128x32xf32>
    %20 = tpu.matmul %18, %19, %cst_8 {dimension_numbers = #tpu.dot_dimension_numbers<[1], [0], [0], [1], [0, 0, 1, 1], [], []>} : vector<128x256xbf16>, vector<256x32xbf16>, vector<128x32xf32> -> vector<128x32xf32>
    %21 = tpu.reciprocal %17 {approx = true} : vector<128x1xf32> -> vector<128x1xf32>
    %22 = vector.broadcast %21 : vector<128x1xf32> to vector<128x32xf32>
    %23 = arith.mulf %20, %22 : vector<128x32xf32>
    %c0_9 = arith.constant 0 : index
    %c0_10 = arith.constant 0 : index
    %24 = vector.load %arg4[%c0_9, %c0_10] : memref<1x128xf32, #tpu.memory_space<vmem>>, vector<1x32xf32>
    %25 = vector.broadcast %24 : vector<1x32xf32> to vector<128x32xf32>
    %26 = arith.addf %23, %25 : vector<128x32xf32>
    %c0_11 = arith.constant 0 : index
    %c0_12 = arith.constant 0 : index
    %27 = vector.load %arg6[%c0_11, %c0_12] : memref<128x128xf32, #tpu.memory_space<vmem>>, vector<128x32xf32>
    tpu.vector_store %arg6[%c0_11, %c0_12], %26 {strides = array<i32>} : memref<128x128xf32, #tpu.memory_space<vmem>>, vector<128x32xf32>,
    %28 = vector.extract_strided_slice %2 {offsets = [0, 1], sizes = [128, 1], strides = [1, 1]} : vector<128x8xf32> to vector<128x1xf32>
    %29 = vector.extract_strided_slice %2 {offsets = [0, 5], sizes = [128, 1], strides = [1, 1]} : vector<128x8xf32> to vector<128x1xf32>
    %c1 = arith.constant 1 : index
    %c0_13 = arith.constant 0 : index
    %30 = vector.load %arg2[%c1, %c0_13] : memref<4x256xf32, #tpu.memory_space<vmem>>, vector<1x256xf32>
    %31 = vector.broadcast %28 : vector<128x1xf32> to vector<128x256xf32>
    %32 = vector.broadcast %30 : vector<1x256xf32> to vector<128x256xf32>
    %33 = arith.addf %31, %32 : vector<128x256xf32>
    %cst_14 = arith.constant 2.000000e-01 : f32
    %34 = vector.broadcast %cst_14 : f32 to vector<128x256xf32>
    %35 = arith.mulf %34, %33 : vector<128x256xf32>
    %36 = arith.maximumf %33, %35 : vector<128x256xf32>
    %37 = vector.broadcast %29 : vector<128x1xf32> to vector<128x256xf32>
    %38 = arith.subf %36, %37 : vector<128x256xf32>
    %39 = math.exp %38 : vector<128x256xf32>
    %40 = arith.mulf %39, %1 : vector<128x256xf32>
    %cst_15 = arith.constant dense<0.000000e+00> : vector<128xf32>
    %41 = vector.multi_reduction <add>, %40, %cst_15 [1] : vector<128x256xf32> to vector<128xf32>
    %42 = vector.shape_cast %41 : vector<128xf32> to vector<128x1xf32>
    %43 = arith.truncf %40 : vector<128x256xf32> to vector<128x256xbf16>
    %c0_16 = arith.constant 0 : index
    %c32 = arith.constant 32 : index
    %44 = vector.load %arg1[%c0_16, %c32] : memref<256x128xbf16, #tpu.memory_space<vmem>>, vector<256x32xbf16>
    %cst_17 = arith.constant dense<0.000000e+00> : vector<128x32xf32>
    %45 = tpu.matmul %43, %44, %cst_17 {dimension_numbers = #tpu.dot_dimension_numbers<[1], [0], [0], [1], [0, 0, 1, 1], [], []>} : vector<128x256xbf16>, vector<256x32xbf16>, vector<128x32xf32> -> vector<128x32xf32>
    %46 = tpu.reciprocal %42 {approx = true} : vector<128x1xf32> -> vector<128x1xf32>
    %47 = vector.broadcast %46 : vector<128x1xf32> to vector<128x32xf32>
    %48 = arith.mulf %45, %47 : vector<128x32xf32>
    %c0_18 = arith.constant 0 : index
    %c32_19 = arith.constant 32 : index
    %49 = vector.load %arg4[%c0_18, %c32_19] : memref<1x128xf32, #tpu.memory_space<vmem>>, vector<1x32xf32>
    %50 = vector.broadcast %49 : vector<1x32xf32> to vector<128x32xf32>
    %51 = arith.addf %48, %50 : vector<128x32xf32>
    %c0_20 = arith.constant 0 : index
    %c32_21 = arith.constant 32 : index
    %52 = vector.load %arg6[%c0_20, %c32_21] : memref<128x128xf32, #tpu.memory_space<vmem>>, vector<128x32xf32>
    tpu.vector_store %arg6[%c0_20, %c32_21], %51 {strides = array<i32>} : memref<128x128xf32, #tpu.memory_space<vmem>>, vector<128x32xf32>,
    %53 = vector.extract_strided_slice %2 {offsets = [0, 2], sizes = [128, 1], strides = [1, 1]} : vector<128x8xf32> to vector<128x1xf32>
    %54 = vector.extract_strided_slice %2 {offsets = [0, 6], sizes = [128, 1], strides = [1, 1]} : vector<128x8xf32> to vector<128x1xf32>
    %c2 = arith.constant 2 : index
    %c0_22 = arith.constant 0 : index
    %55 = vector.load %arg2[%c2, %c0_22] : memref<4x256xf32, #tpu.memory_space<vmem>>, vector<1x256xf32>
    %56 = vector.broadcast %53 : vector<128x1xf32> to vector<128x256xf32>
    %57 = vector.broadcast %55 : vector<1x256xf32> to vector<128x256xf32>
    %58 = arith.addf %56, %57 : vector<128x256xf32>
    %cst_23 = arith.constant 2.000000e-01 : f32
    %59 = vector.broadcast %cst_23 : f32 to vector<128x256xf32>
    %60 = arith.mulf %59, %58 : vector<128x256xf32>
    %61 = arith.maximumf %58, %60 : vector<128x256xf32>
    %62 = vector.broadcast %54 : vector<128x1xf32> to vector<128x256xf32>
    %63 = arith.subf %61, %62 : vector<128x256xf32>
    %64 = math.exp %63 : vector<128x256xf32>
    %65 = arith.mulf %64, %1 : vector<128x256xf32>
    %cst_24 = arith.constant dense<0.000000e+00> : vector<128xf32>
    %66 = vector.multi_reduction <add>, %65, %cst_24 [1] : vector<128x256xf32> to vector<128xf32>
    %67 = vector.shape_cast %66 : vector<128xf32> to vector<128x1xf32>
    %68 = arith.truncf %65 : vector<128x256xf32> to vector<128x256xbf16>
    %c0_25 = arith.constant 0 : index
    %c64 = arith.constant 64 : index
    %69 = vector.load %arg1[%c0_25, %c64] : memref<256x128xbf16, #tpu.memory_space<vmem>>, vector<256x32xbf16>
    %cst_26 = arith.constant dense<0.000000e+00> : vector<128x32xf32>
    %70 = tpu.matmul %68, %69, %cst_26 {dimension_numbers = #tpu.dot_dimension_numbers<[1], [0], [0], [1], [0, 0, 1, 1], [], []>} : vector<128x256xbf16>, vector<256x32xbf16>, vector<128x32xf32> -> vector<128x32xf32>
    %71 = tpu.reciprocal %67 {approx = true} : vector<128x1xf32> -> vector<128x1xf32>
    %72 = vector.broadcast %71 : vector<128x1xf32> to vector<128x32xf32>
    %73 = arith.mulf %70, %72 : vector<128x32xf32>
    %c0_27 = arith.constant 0 : index
    %c64_28 = arith.constant 64 : index
    %74 = vector.load %arg4[%c0_27, %c64_28] : memref<1x128xf32, #tpu.memory_space<vmem>>, vector<1x32xf32>
    %75 = vector.broadcast %74 : vector<1x32xf32> to vector<128x32xf32>
    %76 = arith.addf %73, %75 : vector<128x32xf32>
    %c0_29 = arith.constant 0 : index
    %c64_30 = arith.constant 64 : index
    %77 = vector.load %arg6[%c0_29, %c64_30] : memref<128x128xf32, #tpu.memory_space<vmem>>, vector<128x32xf32>
    tpu.vector_store %arg6[%c0_29, %c64_30], %76 {strides = array<i32>} : memref<128x128xf32, #tpu.memory_space<vmem>>, vector<128x32xf32>,
    %78 = vector.extract_strided_slice %2 {offsets = [0, 3], sizes = [128, 1], strides = [1, 1]} : vector<128x8xf32> to vector<128x1xf32>
    %79 = vector.extract_strided_slice %2 {offsets = [0, 7], sizes = [128, 1], strides = [1, 1]} : vector<128x8xf32> to vector<128x1xf32>
    %c3 = arith.constant 3 : index
    %c0_31 = arith.constant 0 : index
    %80 = vector.load %arg2[%c3, %c0_31] : memref<4x256xf32, #tpu.memory_space<vmem>>, vector<1x256xf32>
    %81 = vector.broadcast %78 : vector<128x1xf32> to vector<128x256xf32>
    %82 = vector.broadcast %80 : vector<1x256xf32> to vector<128x256xf32>
    %83 = arith.addf %81, %82 : vector<128x256xf32>
    %cst_32 = arith.constant 2.000000e-01 : f32
    %84 = vector.broadcast %cst_32 : f32 to vector<128x256xf32>
    %85 = arith.mulf %84, %83 : vector<128x256xf32>
    %86 = arith.maximumf %83, %85 : vector<128x256xf32>
    %87 = vector.broadcast %79 : vector<128x1xf32> to vector<128x256xf32>
    %88 = arith.subf %86, %87 : vector<128x256xf32>
    %89 = math.exp %88 : vector<128x256xf32>
    %90 = arith.mulf %89, %1 : vector<128x256xf32>
    %cst_33 = arith.constant dense<0.000000e+00> : vector<128xf32>
    %91 = vector.multi_reduction <add>, %90, %cst_33 [1] : vector<128x256xf32> to vector<128xf32>
    %92 = vector.shape_cast %91 : vector<128xf32> to vector<128x1xf32>
    %93 = arith.truncf %90 : vector<128x256xf32> to vector<128x256xbf16>
    %c0_34 = arith.constant 0 : index
    %c96 = arith.constant 96 : index
    %94 = vector.load %arg1[%c0_34, %c96] : memref<256x128xbf16, #tpu.memory_space<vmem>>, vector<256x32xbf16>
    %cst_35 = arith.constant dense<0.000000e+00> : vector<128x32xf32>
    %95 = tpu.matmul %93, %94, %cst_35 {dimension_numbers = #tpu.dot_dimension_numbers<[1], [0], [0], [1], [0, 0, 1, 1], [], []>} : vector<128x256xbf16>, vector<256x32xbf16>, vector<128x32xf32> -> vector<128x32xf32>
    %96 = tpu.reciprocal %92 {approx = true} : vector<128x1xf32> -> vector<128x1xf32>
    %97 = vector.broadcast %96 : vector<128x1xf32> to vector<128x32xf32>
    %98 = arith.mulf %95, %97 : vector<128x32xf32>
    %c0_36 = arith.constant 0 : index
    %c96_37 = arith.constant 96 : index
    %99 = vector.load %arg4[%c0_36, %c96_37] : memref<1x128xf32, #tpu.memory_space<vmem>>, vector<1x32xf32>
    %100 = vector.broadcast %99 : vector<1x32xf32> to vector<128x32xf32>
    %101 = arith.addf %98, %100 : vector<128x32xf32>
    %c0_38 = arith.constant 0 : index
    %c96_39 = arith.constant 96 : index
    %102 = vector.load %arg6[%c0_38, %c96_39] : memref<128x128xf32, #tpu.memory_space<vmem>>, vector<128x32xf32>
    tpu.vector_store %arg6[%c0_38, %c96_39], %101 {strides = array<i32>} : memref<128x128xf32, #tpu.memory_space<vmem>>, vector<128x32xf32>,
    return
  }
  func.func @transform_0(%arg0: i32) -> (i32, i32) {
    %c0_i32 = arith.constant 0 : i32
    %c0_i32_0 = arith.constant 0 : i32
    %c0_i32_1 = arith.constant 0 : i32
    return %c0_i32, %c0_i32_0 : i32, i32
  }
  func.func @transform_1(%arg0: i32) -> (i32, i32) {
    %c0_i32 = arith.constant 0 : i32
    %c0_i32_0 = arith.constant 0 : i32
    %c0_i32_1 = arith.constant 0 : i32
    return %c0_i32, %c0_i32_0 : i32, i32
  }
  func.func @transform_2(%arg0: i32) -> (i32, i32) {
    %c0_i32 = arith.constant 0 : i32
    %c0_i32_0 = arith.constant 0 : i32
    return %arg0, %c0_i32 : i32, i32
  }
  func.func @transform_3(%arg0: i32) -> (i32, i32) {
    %c0_i32 = arith.constant 0 : i32
    %c0_i32_0 = arith.constant 0 : i32
    %c0_i32_1 = arith.constant 0 : i32
    return %c0_i32, %c0_i32_0 : i32, i32
  }
  func.func @transform_4(%arg0: i32) -> (i32, i32) {
    %c0_i32 = arith.constant 0 : i32
    %c0_i32_0 = arith.constant 0 : i32
    return %arg0, %c0_i32 : i32, i32
  }
  func.func @transform_5(%arg0: i32) -> (i32, i32) {
    %c0_i32 = arith.constant 0 : i32
    %c0_i32_0 = arith.constant 0 : i32
    return %arg0, %c0_i32 : i32, i32
  }
}

</mosaic_0001>

<bundles_post_ra>
// kernel: tpu_custom_call.1
= control target key start
LH: loop header
LB: loop body
LE: loop exit
PB: predicated region body
PF: predicated region fallthrough
CT: control target
= control target key end

     0   :  { %10 = vsyncpa [#allocation3], 0  ;;  %s7117_s0 = inlined_call_operand.vmem [shape: bf16[256,128], index: 0, kind: input, shape index: {}]   ;;  %s7118_s1 = inlined_call_operand.vmem [shape: f32[4,256], index: 1, kind: input, shape index: {}]   ;;  %s7119_s2 = inlined_call_operand.vmem [shape: f32[256,8], index: 2, kind: input, shape index: {}]   ;;  %s7120_s3 = inlined_call_operand.vmem [shape: f32[1,128], index: 3, kind: input, shape index: {}]   ;;  %s7121_s4 = inlined_call_operand.vmem [shape: s8[256,256], index: 4, kind: input, shape index: {}]   ;;  %s7122_s5 = inlined_call_operand.hbm [shape: f32[256,128], index: 5, kind: output, shape index: {}]  }
   0x1   :  { %12 = vsyncpa [#allocation3 + $0x1], 0  ;;  %s4664_s18 = smov 0   ;;  %s4666_s19 = smov 0  }
   0x2   :  { %s4668_s20 = smov 0   ;;  %s4670_s21 = smov 0  }
   0x3 LB: > { %s4685_s22 = sadd.s32 4294967295, %s4618_s21   ;;  %s3641_s23 = sadd.s32 4294967294, %s4618_s21   ;;  %s4618_s21 = sphi %s4670_s21, %s7404_s21   ;;  %s4614_s20 = sphi %s4668_s20, %s7403_s20   ;;  %s4610_s19 = sphi %s4666_s19, %s7402_s19   ;;  %s4606_s18 = sphi %s4664_s18, %s7401_s18  }
   0x4   : > { %s4689_s24 = sadd.s32 1, %s4618_s21   ;;  %s140_s25 = sadd.s32 1, %s4614_s20 }
   0x5   : > { %s137_s26 = ssub.s32 %s4618_s21, %s4689_s24  ;;  %p150_p0 = scmp.ne.s32.totalorder %s4614_s20, %s4610_s19 }
   0x6   : > { %p138_p1 = scmp.eq.s32.totalorder %s137_s26, 0  ;;  %p151_p2 = scmp.eq.s32.totalorder %s4685_s22, 1 }
   0x7   : > { %p156_p3 = scmp.ne.s32.totalorder %s4610_s19, %s4606_s18  ;;  %p157_p4 = scmp.eq.s32.totalorder %s3641_s23, 1 }
   0x8   : > { %s4700_s27 = scalar_select %p138_p1, %s4614_s20, %s140_s25  }
   0x9   : > { %p4702_p5 = por %p151_p2, %p150_p0  ;;  %p4706_p6 = por %p157_p4, %p156_p3 }
   0xa   : > { %p3644_p7 = scmp.ge.s32.totalorder %s4618_s21, 1  ;;  %p203_p8 = scmp.lt.s32.totalorder %s4618_s21, 3 }
   0xc   : > { %p204_p9 = pnand %p3644_p7, %p203_p8 }
   0xe   : > { %207 = sbr.rel (%p204_p9) target bundleno = 1673 (0x689), region = 40 }
  0x13   : > { %s3646_s30 = sshll.u32 %s4685_s22, 4  ;;  %v4620_v0 = vmov 0   ;;  %v4077_v15 = vld [vmem:[%s7117_s0 + $0x78] sm:$0xff]   ;;  %v4079_v19 = vld [vmem:[%s7117_s0 + $0x70] sm:$0xff]   ;;  %v4081_v21 = vld [vmem:[%s7117_s0 + $0x68] sm:$0xff]   ;;  %v4621_v23 = vmov 4   ;;  %v422_v35 = vlaneseq }
  0x14   : > { %4038 = vset.pattern.permute.xlu1 %v4620_v0  ;;  %4037 = vset.pattern.permute.xlu0 %v4620_v0  ;;  %p238_p10 = scmp.lt.s32.totalorder %s3646_s30, 31  ;;  %v4078_v16 = vld [vmem:[%s7117_s0 + $0x38] sm:$0xff]   ;;  %v4080_v20 = vld [vmem:[%s7117_s0 + $0x30] sm:$0xff]   ;;  %v4082_v22 = vld [vmem:[%s7117_s0 + $0x28] sm:$0xff]   ;;  %v4622_v34 = vmov 1   ;;  %s3648_s12 = sshll.u32 %s4685_s22, 2 }
  0x15   : > { %3729 = vmatprep.subr.bf16.mxu0 %v4077_v15  ;;  %v4083_v24 = vld [vmem:[%s7117_s0 + $0x60] sm:$0xff]   ;;  %v4085_v26 = vld [vmem:[%s7117_s0 + $0x58] sm:$0xff]   ;;  %v4087_v28 = vld [vmem:[%s7117_s0 + $0x50] sm:$0xff]   ;;  %p244_p11 = scmp.lt.s32.totalorder %s3648_s12, 7  ;;  %v423_v36 = vshrl.u32 %v422_v35, 7  ;;  %vm1064_vm0 = vcmask 261120  }
  0x16   : > { %s7406_s30 = smov (!%p238_p10, %s3646_s30), 31  ;;  %3730 = vmatpush3.bf16.msra.mxu0 %v4078_v16  ;;  %v4084_v25 = vld [vmem:[%s7117_s0 + $0x20] sm:$0xff]   ;;  %v4086_v27 = vld [vmem:[%s7117_s0 + $0x18] sm:$0xff]   ;;  %v4088_v29 = vld [vmem:[%s7117_s0 + $0x10] sm:$0xff]   ;;  %s4627_s26 = smov 32   ;;  %vm1888_vm1 = vcmask 523520  }
  0x17   : > { %s3647_s6 = sshll.u32 %s7406_s30, 3  ;;  %3731 = vmatprep.subr.bf16.mxu0 %v4079_v19  ;;  %v4089_v30 = vld [vmem:[%s7117_s0 + $0x48] sm:$0xff]   ;;  %v4091_v32 = vld [vmem:[%s7117_s0 + $0x40] sm:$0xff]   ;;  %s7408_s12 = smov (!%p244_p11, %s3648_s12), 7  ;;  %v4790_v41 = vsub.s32 0, %v423_v36  ;;  %v4792_v42 = vsub.s32 1, %v423_v36 }
  0x18   : > { %s4716_s9 = scalar_lea.vmem %s7119_s2, %s3647_s6  ;;  %v4090_v31 = vld [vmem:[%s7117_s0 + $0x8] sm:$0xff]   ;;  %v4092_v33 = vld [vmem:[%s7117_s0] sm:$0xff]   ;;  %s3727_s13 = sshll.u32 %s7408_s12, 4  ;;  %vm2712_vm2 = vcmask 785920   ;;  %vm3536_vm3 = vcmask 1048320  }
  0x19   : > { %v326_v1 = vld [vmem:[%s4716_s9 + $0x10] sm:$0xff]  ;;  %v324_v2 = vld [vmem:[%s4716_s9] sm:$0xff]  ;;  %v327_v3 = vld [vmem:[%s4716_s9 + $0x18] sm:$0xff]  ;;  %s4786_s16 = scalar_lea.vmem %s7121_s4, %s3727_s13  ;;  %7216 = vst [vmem:[#allocation5_spill] sm:$0xff] %v4790_v41  ;;  %s234_s30 = sand.u32 1, %s4610_s19  }
  0x1a   : > { %353 = vperm.xlu1 %4038, %v326_v1   ;;  %343 = vperm.xlu0 %4037, %v324_v2   ;;  %v325_v4 = vld [vmem:[%s4716_s9 + $0x8] sm:$0xff]  ;;  %v328_v6 = vld [vmem:[%s4716_s9 + $0x20] sm:$0xff]  ;;  %v331_v7 = vld [vmem:[%s4716_s9 + $0x38] sm:$0xff]  ;;  %7217 = vst [vmem:[#allocation6_spill] sm:$0xff] %v4792_v42  ;;  %s3645_s6 = sshll.u32 %s234_s30, 7  ;;  %s4624_s13 = smov 96  }
  0x1b   : > { %v329_v5 = vld [vmem:[%s4716_s9 + $0x28] sm:$0xff]  ;;  %v330_v8 = vld [vmem:[%s4716_s9 + $0x30] sm:$0xff]  ;;  %v332_v10 = vld [vmem:[%s4716_s9 + $0x40] sm:$0xff]  ;;  %3732 = vmatpush3.bf16.msra.mxu0 %v4080_v20  ;;  %s5346_s10 = scalar_lea.vmem [#allocation2], %s3645_s6  ;;  %s4630_s8 = smov 64  }
  0x1c   : > { %v333_v9 = vld [vmem:[%s4716_s9 + $0x48] sm:$0xff]  ;;  %v335_v11 = vld [vmem:[%s4716_s9 + $0x58] sm:$0xff]  ;;  %v334_v12 = vld [vmem:[%s4716_s9 + $0x50] sm:$0xff]  ;;  %3733 = vmatprep.subr.bf16.mxu0 %v4081_v21  ;;  %s7077_s7 = scalar_lea.sflag [#allocation3], %s234_s30  ;;  %s4631_s11 = smov [#allocation2]  }
  0x1d   : > { %v337_v13 = vld [vmem:[%s4716_s9 + $0x68] sm:$0xff]  ;;  %v336_v14 = vld [vmem:[%s4716_s9 + $0x60] sm:$0xff]  ;;  %v339_v17 = vld [vmem:[%s4716_s9 + $0x78] sm:$0xff]  ;;  %s4562_s12 = sshll.u32 %s4631_s11, 4  ;;  %s4563_s12 = int_to_ptr.vmem [resolvable:$false] %s4562_s12 }
  0x1e   : > { %358 = vperm.xlu1 %4038, %v327_v3   ;;  %348 = vperm.xlu0 %4037, %v325_v4   ;;  %v338_v18 = vld [vmem:[%s4716_s9 + $0x70] sm:$0xff]  ;;  %v252_v39 = vld [vmem:[%s4786_s16] sm:$0xff]  ;;  %v253_v40 = vld [vmem:[%s4786_s16 + $0x8] sm:$0xff]  ;;  %s4564_s14 = scalar_lea.vmem %s4563_s12, 4096 }
  0x1f   : > { %3734 = vmatpush3.bf16.msra.mxu0 %v4082_v22  ;;  %v340_v43 = vld [vmem:[%s7118_s1] ss:$4 sm:$0x3]  ;;  %v262_v46 = vunpack.c.1.s8 %v252_v39  ;;  %v263_v47 = vunpack.c.1.s8 %v253_v40  ;;  %v261_v48 = vunpack.c.0.s8 %v253_v40  ;;  %v254_v49 = vld [vmem:[%s4786_s16 + $0x10] sm:$0xff]  ;;  %v260_v50 = vunpack.c.0.s8 %v252_v39  ;;  %v255_v53 = vld [vmem:[%s4786_s16 + $0x18] sm:$0xff] }
  0x20   : > { %3735 = vmatprep.subr.bf16.mxu0 %v4083_v24  ;;  %v264_v51 = vunpack.c.2.s8 %v252_v39  ;;  %v265_v52 = vunpack.c.2.s8 %v253_v40  ;;  %v267_v54 = vunpack.c.3.s8 %v253_v40  ;;  %v266_v55 = vunpack.c.3.s8 %v252_v39 }
  0x21   : > { %v4802_v56 = vrot.slane %v340_v43, %v4790_v41  ;;  %v4805_v57 = vrot.slane %v340_v43, %v4792_v42  ;;  %v268_v58 = vunpack.c.0.s8 %v254_v49  ;;  %v4811_v61 = vcvt.s32.f32 %v262_v46 }
  0x22   : > { %368 = vperm.xlu1 %4038, %v329_v5   ;;  %363 = vperm.xlu0 %4037, %v328_v6   ;;  %v4813_v62 = vcvt.s32.f32 %v263_v47  ;;  %v4815_v63 = vcvt.s32.f32 %v261_v48  ;;  %v269_v0 = vunpack.c.0.s8 %v255_v53 }
  0x23   : > { %3736 = vmatpush3.bf16.msra.mxu0 %v4084_v25  ;;  %7218 = vst [vmem:[#allocation7_spill] sm:$0xff] %v4811_v61 }
  0x24   : > { %3737 = vmatprep.subr.bf16.mxu0 %v4085_v26  ;;  %7219 = vst [vmem:[#allocation8_spill] sm:$0xff] %v4813_v62  ;;  %7220 = vst [vmem:[#allocation9_spill] sm:$0xff] %v4815_v63  ;;  %v4844_v20 = vcvt.s32.f32 %v269_v0 }
  0x26   : > { %378 = vperm.xlu1 %4038, %v331_v7   ;;  %373 = vperm.xlu0 %4037, %v330_v8   ;;  %7229 = vst [vmem:[#allocation18_spill] sm:$0xff] %v4844_v20 }
  0x27   : > { %3738 = vmatpush3.bf16.msra.mxu0 %v4086_v27 }
  0x28   : > { %3739 = vmatprep.subr.bf16.mxu0 %v4087_v28 }
  0x2a   : > { %388 = vperm.xlu1 %4038, %v333_v9   ;;  %383 = vperm.xlu0 %4037, %v332_v10  }
  0x2b   : > { %3740 = vmatpush3.bf16.msra.mxu0 %v4088_v29 }
  0x2c   : > { %3741 = vmatprep.subr.bf16.mxu0 %v4089_v30 }
  0x2e   : > { %398 = vperm.xlu1 %4038, %v335_v11   ;;  %393 = vperm.xlu0 %4037, %v334_v12  }
  0x2f   : > { %3742 = vmatpush3.bf16.msra.mxu0 %v4090_v31 }
  0x30   : > { %3743 = vmatprep.subr.bf16.mxu0 %v4091_v32 }
  0x32   : > { %408 = vperm.xlu1 %4038, %v337_v13   ;;  %403 = vperm.xlu0 %4037, %v336_v14  }
  0x33   : > { %3744 = vmatpush3.bf16.msra.mxu0 %v4092_v33 }
  0x36   : > { %418 = vperm.xlu1 %4038, %v339_v17   ;;  %413 = vperm.xlu0 %4037, %v338_v18  }
  0x3a   : > { %4040 = vset.pattern.permute.xlu1 %v4621_v23  ;;  %4039 = vset.pattern.permute.xlu0 %v4621_v23 }
  0x3b   : > { %533 = vperm.xlu1 %4040, %v325_v4   ;;  %529 = vperm.xlu0 %4039, %v324_v2   ;;  %v4819_v2 = vcvt.s32.f32 %v264_v51  ;;  %v270_v4 = vunpack.c.1.s8 %v254_v49 }
  0x3d   : > { %7222 = vst [vmem:[#allocation11_spill] sm:$0xff] %v4819_v2  ;;  %v4849_v22 = vcvt.s32.f32 %v270_v4 }
  0x3f   : > { %537 = vperm.xlu1 %4040, %v326_v1   ;;  %541 = vperm.xlu0 %4039, %v327_v3   ;;  %v4817_v1 = vcvt.s32.f32 %v260_v50  ;;  %v4821_v3 = vcvt.s32.f32 %v265_v52  ;;  %7230 = vst [vmem:[#allocation19_spill] sm:$0xff] %v4849_v22 }
  0x41   : > { %7221 = vst [vmem:[#allocation10_spill] sm:$0xff] %v4817_v1  ;;  %7223 = vst [vmem:[#allocation12_spill] sm:$0xff] %v4821_v3 }
  0x43   : > { %545 = vperm.xlu1 %4040, %v328_v6   ;;  %549 = vperm.xlu0 %4039, %v329_v5   ;;  %v4823_v5 = vcvt.s32.f32 %v267_v54  ;;  %v4825_v6 = vcvt.s32.f32 %v266_v55 }
  0x45   : > { %7224 = vst [vmem:[#allocation13_spill] sm:$0xff] %v4823_v5  ;;  %7225 = vst [vmem:[#allocation14_spill] sm:$0xff] %v4825_v6 }
  0x47   : > { %553 = vperm.xlu1 %4040, %v330_v8   ;;  %557 = vperm.xlu0 %4039, %v331_v7   ;;  %v271_v7 = vunpack.c.1.s8 %v255_v53  ;;  %v272_v8 = vunpack.c.2.s8 %v254_v49 }
  0x49   : > { %v4853_v25 = vcvt.s32.f32 %v271_v7  ;;  %v4855_v26 = vcvt.s32.f32 %v272_v8 }
  0x4b   : > { %561 = vperm.xlu1 %4040, %v332_v10   ;;  %565 = vperm.xlu0 %4039, %v333_v9   ;;  %v4828_v9 = vld [vmem:[%s4786_s16 + $0x20] sm:$0xff]  ;;  %v4831_v10 = vld [vmem:[%s4786_s16 + $0x28] sm:$0xff]  ;;  %7231 = vst [vmem:[#allocation20_spill] sm:$0xff] %v4853_v25  ;;  %7232 = vst [vmem:[#allocation21_spill] sm:$0xff] %v4855_v26 }
  0x4c   : > { %7226 = vst [vmem:[#allocation15_spill] sm:$0xff] %v4828_v9  ;;  %7227 = vst [vmem:[#allocation16_spill] sm:$0xff] %v4831_v10  ;;  %v276_v23 = vunpack.c.0.s8 %v4828_v9  ;;  %v277_v24 = vunpack.c.0.s8 %v4831_v10  ;;  %v278_v27 = vunpack.c.1.s8 %v4828_v9  ;;  %v279_v28 = vunpack.c.1.s8 %v4831_v10 }
  0x4d   : > { %v280_v32 = vunpack.c.2.s8 %v4828_v9 }
  0x4e   : > { %v4884_v43 = vcvt.s32.f32 %v276_v23  ;;  %v4886_v46 = vcvt.s32.f32 %v277_v24  ;;  %v4892_v48 = vcvt.s32.f32 %v278_v27 }
  0x4f   : > { %569 = vperm.xlu1 %4040, %v334_v12   ;;  %573 = vperm.xlu0 %4039, %v335_v11   ;;  %v4833_v11 = vcvt.s32.f32 %v268_v58  ;;  %v273_v12 = vunpack.c.2.s8 %v255_v53 }
  0x50   : > { %7236 = vst [vmem:[#allocation25_spill] sm:$0xff] %v4884_v43  ;;  %7237 = vst [vmem:[#allocation26_spill] sm:$0xff] %v4886_v46 }
  0x51   : > { %7228 = vst [vmem:[#allocation17_spill] sm:$0xff] %v4833_v11  ;;  %v4859_v29 = vcvt.s32.f32 %v273_v12  ;;  %7238 = vst [vmem:[#allocation27_spill] sm:$0xff] %v4892_v48 }
  0x53   : > { %577 = vperm.xlu1 %4040, %v336_v14   ;;  %581 = vperm.xlu0 %4039, %v337_v13   ;;  %v274_v13 = vunpack.c.3.s8 %v254_v49  ;;  %v275_v14 = vunpack.c.3.s8 %v255_v53  ;;  %7233 = vst [vmem:[#allocation22_spill] sm:$0xff] %v4859_v29  ;;  %v4894_v49 = vcvt.s32.f32 %v279_v28 }
  0x55   : > { %v4861_v30 = vcvt.s32.f32 %v274_v13  ;;  %v4863_v31 = vcvt.s32.f32 %v275_v14  ;;  %7239 = vst [vmem:[#allocation28_spill] sm:$0xff] %v4894_v49 }
  0x57   : > { %585 = vperm.xlu1 %4040, %v338_v18   ;;  %589 = vperm.xlu0 %4039, %v339_v17   ;;  %7234 = vst [vmem:[#allocation23_spill] sm:$0xff] %v4861_v30  ;;  %7235 = vst [vmem:[#allocation24_spill] sm:$0xff] %v4863_v31 }
  0x5b   : > { %4042 = vset.pattern.permute.xlu1 %v4622_v34  ;;  %4041 = vset.pattern.permute.xlu0 %v4622_v34 }
  0x95   : > { %v354_v37 = vpop.permute.xlu1 %353  ;;  %v344_v38 = vpop.permute.xlu0 %343 }
  0x96   : > { %v4836_v15 = vadd.f32 %v4802_v56, %v354_v37  ;;  %v4839_v16 = vadd.f32 %v4802_v56, %v344_v38  ;;  %v4842_v17 = vadd.f32 %v4805_v57, %v344_v38  ;;  %v4847_v21 = vadd.f32 %v4805_v57, %v354_v37 }
  0x98   : > { %v4867_v33 = vmul.f32 0.2, %v4836_v15  ;;  %v4870_v34 = vmul.f32 0.2, %v4839_v16  ;;  %v4873_v35 = vmul.f32 0.2, %v4842_v17 }
  0x99   : > { %v4797_v44 = vpop.permute.xlu1 %358  ;;  %v349_v45 = vpop.permute.xlu0 %348  ;;  %v4879_v39 = vmul.f32 0.2, %v4847_v21 }
  0x9a   : > { %v4876_v36 = vadd.f32 %v4802_v56, %v349_v45  ;;  %v4882_v40 = vadd.f32 %v4805_v57, %v349_v45  ;;  %v4890_v47 = vadd.f32 %v4802_v56, %v4797_v44  ;;  %v4899_v51 = vadd.f32 %v4805_v57, %v4797_v44 }
  0x9b   : > { %v4901_v45 = vcvt.s32.f32 %v280_v32  ;;  %v7243_v22 = vmax.f32 %v4842_v17, %v4873_v35 }
  0x9c   : > { %v4906_v54 = vmul.f32 0.2, %v4876_v36  ;;  %v467_v7 = vmul.f32 0.2, %v4882_v40  ;;  %v4926_v14 = vmul.f32 0.2, %v4890_v47 }
  0x9d   : > { %v4807_v59 = vpop.permute.xlu1 %368  ;;  %v4809_v60 = vpop.permute.xlu0 %363  ;;  %7240 = vst [vmem:[#allocation29_spill] sm:$0xff] %v4901_v45 }
  0x9e   : > { %v4917_v8 = vadd.f32 %v4802_v56, %v4807_v59  ;;  %v4921_v12 = vadd.f32 %v4805_v57, %v4807_v59  ;;  %v4930_v23 = vadd.f32 %v4802_v56, %v4809_v60  ;;  %v4934_v24 = vadd.f32 %v4805_v57, %v4809_v60 }
  0x9f   : > { %v4940_v59 = vmul.f32 0.2, %v4899_v51  ;;  %v499_v42 = vmax.f32 %v4882_v40, %v467_v7 }
  0xa0   : > { %v4963_v4 = vmul.f32 0.2, %v4917_v8  ;;  %v4973_v41 = vmul.f32 0.2, %v4930_v23 }
  0xa1   : > { %v379_v18 = vpop.permute.xlu1 %378  ;;  %v374_v19 = vpop.permute.xlu0 %373  ;;  %v503_v7 = vmax.f32 %v4899_v51, %v4940_v59 }
  0xa2   : > { %v4937_v27 = vadd.f32 %v4802_v56, %v379_v18  ;;  %v4943_v28 = vadd.f32 %v4805_v57, %v379_v18  ;;  %v4946_v32 = vadd.f32 %v4802_v56, %v374_v19  ;;  %v4949_v53 = vadd.f32 %v4805_v57, %v374_v19 }
  0xa3   : > { %v498_v18 = vmax.f32 %v4876_v36, %v4906_v54  ;;  %v4966_v19 = vmul.f32 0.2, %v4921_v12  ;;  %v502_v36 = vmax.f32 %v4890_v47, %v4926_v14  ;;  %v504_v30 = vmax.f32 %v4930_v23, %v4973_v41 }
  0xa4   : > { %v4979_v45 = vmul.f32 0.2, %v4937_v27  ;;  %v4984_v54 = vmul.f32 0.2, %v4943_v28  ;;  %v4990_v40 = vmul.f32 0.2, %v4949_v53  ;;  %v506_v29 = vmax.f32 %v4917_v8, %v4963_v4 }
  0xa5   : > { %v389_v37 = vpop.permute.xlu1 %388  ;;  %v384_v38 = vpop.permute.xlu0 %383  ;;  %v507_v26 = vmax.f32 %v4921_v12, %v4966_v19  ;;  %v7242_v8 = vmax.f32 %v4839_v16, %v4870_v34 }
  0xa6   : > { %v4952_v52 = vadd.f32 %v4802_v56, %v389_v37  ;;  %v4955_v60 = vadd.f32 %v4802_v56, %v384_v38  ;;  %v4958_v50 = vadd.f32 %v4805_v57, %v384_v38  ;;  %v4969_v0 = vadd.f32 %v4805_v57, %v389_v37 }
  0xa7   : > { %v4976_v38 = vmul.f32 0.2, %v4934_v24  ;;  %v4987_v37 = vmul.f32 0.2, %v4946_v32 }
  0xa8   : > { %v4995_v9 = vmul.f32 0.2, %v4952_v52  ;;  %v4998_v49 = vmul.f32 0.2, %v4955_v60  ;;  %v5001_v47 = vmul.f32 0.2, %v4958_v50 }
  0xa9   : > { %v399_v55 = vpop.permute.xlu1 %398  ;;  %v394_v58 = vpop.permute.xlu0 %393  ;;  %v5011_v43 = vmul.f32 0.2, %v4969_v0 }
  0xaa   : > { %v5004_v14 = vadd.f32 %v4802_v56, %v394_v58  ;;  %v5014_v51 = vadd.f32 %v4802_v56, %v399_v55  ;;  %v5017_v59 = vadd.f32 %v4805_v57, %v399_v55  ;;  %v5020_v31 = vadd.f32 %v4805_v57, %v394_v58 }
  0xac   : > { %v5039_v23 = vmul.f32 0.2, %v5004_v14  ;;  %v5051_v19 = vmul.f32 0.2, %v5017_v59 }
  0xad   : > { %v409_v13 = vpop.permute.xlu1 %408  ;;  %v404_v44 = vpop.permute.xlu0 %403 }
  0xae   : > { %v5065_v11 = vadd.f32 %v4802_v56, %v409_v13  ;;  %v5068_v10 = vadd.f32 %v4805_v57, %v409_v13  ;;  %v5071_v6 = vadd.f32 %v4802_v56, %v404_v44 }
  0xb0   : > { %v5091_v34 = vmul.f32 0.2, %v5065_v11 }
  0xb1   : > { %v5006_v48 = vpop.permute.xlu1 %418  ;;  %v5008_v46 = vpop.permute.xlu0 %413 }
  0xb2   : > { %7241 = vst [vmem:[#allocation30_spill] sm:$0xff] %v5006_v48  ;;  %v505_v48 = vmax.f32 %v4934_v24, %v4976_v38  ;;  %v5048_v24 = vmul.f32 0.2, %v5014_v51  ;;  %v5054_v38 = vmul.f32 0.2, %v5020_v31 }
  0xb6   : > { %v534_v41 = vpop.permute.xlu1 %533  ;;  %v530_v58 = vpop.permute.xlu0 %529 }
  0xb7   : > { %v594_v55 = vsub.f32 %v498_v18, %v534_v41  ;;  %v595_v25 = vsub.f32 %v499_v42, %v534_v41  ;;  %v592_v12 = vsub.f32 %v7242_v8, %v530_v58  ;;  %v593_v20 = vsub.f32 %v7243_v22, %v530_v58 }
  0xb8   : > { %v5074_v18 = vadd.f32 %v4805_v57, %v404_v44  ;;  %v5094_v58 = vmul.f32 0.2, %v5068_v10 }
  0xb9   : > { %v628_v42 = vmul.f32 1.442695, %v594_v55  ;;  %v630_v41 = vmul.f32 1.442695, %v595_v25  ;;  %v624_v16 = vmul.f32 1.442695, %v592_v12  ;;  %v7244_v25 = vmax.f32 %v4836_v15, %v4867_v33 }
  0xba   : > { %v626_v17 = vmul.f32 1.442695, %v593_v20  ;;  %v538_v22 = vpop.permute.xlu1 %537  ;;  %v542_v35 = vpop.permute.xlu0 %541  ;;  %v7245_v55 = vmax.f32 %v4847_v21, %v4879_v39  ;;  %v5097_v15 = vmul.f32 0.2, %v5071_v6  ;;  %v5100_v33 = vmul.f32 0.2, %v5074_v18 }
  0xbb   : > { %4141 = vpow2.f32 %v628_v42  ;;  %v596_v44 = vsub.f32 %v7244_v25, %v538_v22  ;;  %v598_v12 = vsub.f32 %v502_v36, %v542_v35  ;;  %v599_v13 = vsub.f32 %v503_v7, %v542_v35 }
  0xbc   : > { %v597_v20 = vsub.f32 %v7245_v55, %v538_v22  ;;  %4143 = vpow2.f32 %v630_v41  ;;  %v5104_v7 = vadd.f32 %v4802_v56, %v5008_v46  ;;  %v5108_v41 = vadd.f32 %v4805_v57, %v5008_v46 }
  0xbd   : > { %4145 = vpow2.f32 %v624_v16  ;;  %v632_v8 = vmul.f32 1.442695, %v596_v44  ;;  %v636_v4 = vmul.f32 1.442695, %v598_v12  ;;  %v638_v21 = vmul.f32 1.442695, %v599_v13 }
  0xbe   : > { %v634_v42 = vmul.f32 1.442695, %v597_v20  ;;  %4147 = vpow2.f32 %v626_v17  ;;  %v546_v39 = vpop.permute.xlu1 %545  ;;  %v550_v36 = vpop.permute.xlu0 %549  ;;  %v7246_v46 = vmax.f32 %v4946_v32, %v4987_v37  ;;  %v7248_v12 = vmax.f32 %v4937_v27, %v4979_v45 }
  0xbf   : > { %4149 = vpow2.f32 %v632_v8  ;;  %v600_v22 = vsub.f32 %v504_v30, %v546_v39  ;;  %v601_v25 = vsub.f32 %v505_v48, %v546_v39  ;;  %v602_v55 = vsub.f32 %v506_v29, %v550_v36 }
  0xc0   : > { %4151 = vpow2.f32 %v634_v42  ;;  %v603_v16 = vsub.f32 %v507_v26, %v550_v36  ;;  %v520_v29 = vmax.f32 %v5071_v6, %v5097_v15  ;;  %v521_v48 = vmax.f32 %v5074_v18, %v5100_v33 }
  0xc1   : > { %4153 = vpow2.f32 %v636_v4  ;;  %v640_v35 = vmul.f32 1.442695, %v600_v22  ;;  %v642_v17 = vmul.f32 1.442695, %v601_v25  ;;  %v644_v13 = vmul.f32 1.442695, %v602_v55 }
  0xc2   : > { %4155 = vpow2.f32 %v638_v21  ;;  %v646_v44 = vmul.f32 1.442695, %v603_v16  ;;  %v554_v8 = vpop.permute.xlu1 %553  ;;  %v558_v30 = vpop.permute.xlu0 %557  ;;  %v7247_v26 = vmax.f32 %v4949_v53, %v4990_v40  ;;  %v5124_v21 = vmul.f32 0.2, %v5104_v7 }
  0xc3   : > { %4157 = vpow2.f32 %v640_v35  ;;  %v604_v20 = vsub.f32 %v7246_v46, %v554_v8  ;;  %v606_v42 = vsub.f32 %v7248_v12, %v558_v30  ;;  %v5127_v39 = vmul.f32 0.2, %v5108_v41 }
  0xc4   : > { %v605_v4 = vsub.f32 %v7247_v26, %v554_v8  ;;  %4159 = vpow2.f32 %v642_v17  ;;  %v7249_v36 = vmax.f32 %v4943_v28, %v4984_v54  ;;  %v522_v27 = vmax.f32 %v5065_v11, %v5091_v34 }
  0xc5   : > { %4161 = vpow2.f32 %v644_v13  ;;  %v648_v37 = vmul.f32 1.442695, %v604_v20  ;;  %v652_v53 = vmul.f32 1.442695, %v606_v42  ;;  %v523_v55 = vmax.f32 %v5068_v10, %v5094_v58 }
  0xc6   : > { %v607_v32 = vsub.f32 %v7249_v36, %v558_v30  ;;  %v650_v22 = vmul.f32 1.442695, %v605_v4  ;;  %4163 = vpow2.f32 %v646_v44  ;;  %v562_v25 = vpop.permute.xlu1 %561  ;;  %v566_v45 = vpop.permute.xlu0 %565  ;;  %v7250_v16 = vmax.f32 %v4955_v60, %v4998_v49 }
  0xc7   : > { %4165 = vpow2.f32 %v648_v37  ;;  %v7251_v54 = vmax.f32 %v4958_v50, %v5001_v47  ;;  %v7252_v17 = vmax.f32 %v4952_v52, %v4995_v9  ;;  %v7253_v11 = vmax.f32 %v4969_v0, %v5011_v43 }
  0xc8   : > { %v654_v40 = vmul.f32 1.442695, %v607_v32  ;;  %v608_v28 = vsub.f32 %v7250_v16, %v562_v25  ;;  %v4142_v44 = vpop.eup %4141  ;;  %4167 = vpow2.f32 %v650_v22  ;;  %v524_v10 = vmax.f32 %v5104_v7, %v5124_v21 }
  0xc9   : > { %v609_v35 = vsub.f32 %v7251_v54, %v562_v25  ;;  %v610_v13 = vsub.f32 %v7252_v17, %v566_v45  ;;  %v611_v34 = vsub.f32 %v7253_v11, %v566_v45  ;;  %v525_v49 = vmax.f32 %v5108_v41, %v5127_v39  ;;  %v4144_v60 = vpop.eup %4143  ;;  %v7262_v41 = vld [vmem:[#allocation17_spill] sm:$0xff] }
  0xca   : > { %4169 = vpow2.f32 %v652_v53  ;;  %v656_v50 = vmul.f32 1.442695, %v608_v28  ;;  %v4146_v8 = vpop.eup %4145  ;;  %v570_v52 = vpop.permute.xlu1 %569  ;;  %v690_v46 = vmul.f32 %v4142_v44, %v4811_v61  ;;  %v691_v43 = vmul.f32 %v4144_v60, %v4813_v62 }
  0xcb   : > { %v658_v47 = vmul.f32 1.442695, %v609_v35  ;;  %v660_v58 = vmul.f32 1.442695, %v610_v13  ;;  %4171 = vpow2.f32 %v654_v40  ;;  %v662_v9 = vmul.f32 1.442695, %v611_v34  ;;  %v574_v30 = vpop.permute.xlu0 %573  ;;  %v4148_v0 = vpop.eup %4147 }
  0xcc   : > { %4173 = vpow2.f32 %v656_v50  ;;  %v7254_v20 = vmax.f32 %v5004_v14, %v5039_v23  ;;  %v7255_v4 = vmax.f32 %v5020_v31, %v5054_v38  ;;  %v7256_v42 = vmax.f32 %v5014_v51, %v5048_v24  ;;  %v4150_v32 = vpop.eup %4149 }
  0xcd   : > { %4175 = vpow2.f32 %v658_v47  ;;  %v7257_v37 = vmax.f32 %v5017_v59, %v5051_v19  ;;  %v723_v53 = vadd.f32 %v691_v43, %v690_v46  ;;  %v689_v40 = vmul.f32 %v4148_v0, %v4815_v63  ;;  %v4152_v25 = vpop.eup %4151  ;;  %v7259_v0 = vld [vmem:[#allocation16_spill] sm:$0xff] }
  0xce   : > { %v612_v26 = vsub.f32 %v7254_v20, %v570_v52  ;;  %v613_v12 = vsub.f32 %v7255_v4, %v570_v52  ;;  %v614_v36 = vsub.f32 %v7256_v42, %v574_v30  ;;  %4177 = vpow2.f32 %v660_v58  ;;  %v4154_v31 = vpop.eup %4153  ;;  %v578_v16 = vpop.permute.xlu1 %577  ;;  %v5185_v52 = vld [vmem:[%s4786_s16 + $0x38] sm:$0xff] }
  0xcf   : > { %v615_v22 = vsub.f32 %v7257_v37, %v574_v30  ;;  %4179 = vpow2.f32 %v662_v9  ;;  %724 = vadd.xlane.f32.xlu0 %v723_v53  ;;  %v769_v51 = vpack.c.bf16 %v691_v43, %v689_v40  ;;  %v688_v24 = vmul.f32 %v4146_v8, %v4817_v1  ;;  %v582_v28 = vpop.permute.xlu0 %581  ;;  %v4156_v54 = vpop.eup %4155  ;;  %v5182_v9 = vld [vmem:[%s4786_s16 + $0x30] sm:$0xff] }
  0xd0   : > { %v664_v14 = vmul.f32 1.442695, %v612_v26  ;;  %v666_v23 = vmul.f32 1.442695, %v613_v12  ;;  %v668_v45 = vmul.f32 1.442695, %v614_v36  ;;  %v616_v59 = vsub.f32 %v520_v29, %v578_v16  ;;  %v4158_v17 = vpop.eup %4157 }
  0xd1   : > { %v670_v38 = vmul.f32 1.442695, %v615_v22  ;;  %v617_v19 = vsub.f32 %v521_v48, %v578_v16  ;;  %v618_v35 = vsub.f32 %v522_v27, %v582_v28  ;;  %944 = vmatprep.mubr.bf16.mxu0 %v769_v51  ;;  %v720_v13 = vadd.f32 %v689_v40, %v688_v24  ;;  %v4160_v34 = vpop.eup %4159  ;;  %v7264_v53 = vld [vmem:[#allocation19_spill] sm:$0xff] }
  0xd2   : > { %4181 = vpow2.f32 %v664_v14  ;;  %v768_v44 = vpack.c.bf16 %v690_v46, %v688_v24  ;;  %v619_v11 = vsub.f32 %v523_v55, %v582_v28  ;;  %v672_v60 = vmul.f32 1.442695, %v616_v59  ;;  %v4162_v6 = vpop.eup %4161  ;;  %v586_v29 = vpop.permute.xlu1 %585  ;;  %v7258_v55 = vld [vmem:[#allocation14_spill] sm:$0xff]  ;;  %v7265_v14 = vld [vmem:[#allocation20_spill] sm:$0xff]  ;;  %v7266_v24 = vld [vmem:[#allocation21_spill] sm:$0xff] }
  0xd3   : > { %4183 = vpow2.f32 %v666_v23  ;;  %v674_v50 = vmul.f32 1.442695, %v617_v19  ;;  %v676_v47 = vmul.f32 1.442695, %v618_v35  ;;  %721 = vadd.xlane.f32.xlu1 %v720_v13  ;;  %v692_v15 = vmul.f32 %v4150_v32, %v4819_v2  ;;  %v4164_v48 = vpop.eup %4163  ;;  %v7267_v28 = vld [vmem:[#allocation22_spill] sm:$0xff] }
  0xd4   : > { %4185 = vpow2.f32 %v668_v45  ;;  %945 = vmatmul.mubr.bf16.vlgmr.msra.gmra.mxu0 %v768_v44  ;;  %v678_v18 = vmul.f32 1.442695, %v619_v11  ;;  %v693_v33 = vmul.f32 %v4152_v25, %v4821_v3  ;;  %v695_v27 = vmul.f32 %v4156_v54, %v4823_v5  ;;  %v4166_v30 = vpop.eup %4165  ;;  %v7268_v35 = vld [vmem:[#allocation30_spill] sm:$0xff]  ;;  %v7269_v11 = vld [vmem:[#allocation23_spill] sm:$0xff] }
  0xd5   : > { %4187 = vpow2.f32 %v670_v38  ;;  %v694_v58 = vmul.f32 %v4154_v31, %v7258_v55  ;;  %v620_v8 = vsub.f32 %v524_v10, %v586_v29  ;;  %v621_v43 = vsub.f32 %v525_v49, %v586_v29  ;;  %v4168_v4 = vpop.eup %4167  ;;  %v7263_v49 = vld [vmem:[#allocation18_spill] sm:$0xff] }
  0xd6   : > { %4189 = vpow2.f32 %v672_v60  ;;  %v726_v46 = vadd.f32 %v693_v33, %v692_v15  ;;  %v7260_v20 = vunpack.c.2.s8 %v7259_v0  ;;  %v771_v12 = vpack.c.bf16 %v695_v27, %v693_v33  ;;  %v7272_v33 = vld [vmem:[#allocation26_spill] sm:$0xff] }
  0xd7   : > { %4191 = vpow2.f32 %v674_v50  ;;  %v729_v7 = vadd.f32 %v695_v27, %v694_v58  ;;  %v680_v21 = vmul.f32 1.442695, %v620_v8  ;;  %v4170_v10 = vpop.eup %4169  ;;  %v682_v42 = vmul.f32 1.442695, %v621_v43 }
  0xd8   : > { %v5192_v26 = vcvt.s32.f32 %v7260_v20  ;;  %4193 = vpow2.f32 %v676_v47  ;;  %727 = vadd.xlane.f32.xlu0 %v726_v46  ;;  %v284_v36 = vunpack.c.0.s8 %v5182_v9  ;;  %v285_v32 = vunpack.c.0.s8 %v5185_v52  ;;  %v4172_v37 = vpop.eup %4171  ;;  %952 = vmatprep.mubr.bf16.mxu0 %v771_v12  ;;  %v7270_v47 = vld [vmem:[#allocation24_spill] sm:$0xff] }
  0xd9   : > { %4195 = vpow2.f32 %v678_v18  ;;  %730 = vadd.xlane.f32.xlu1 %v729_v7  ;;  %v696_v39 = vmul.f32 %v4158_v17, %v7262_v41  ;;  %v697_v22 = vmul.f32 %v4160_v34, %v7263_v49  ;;  %v698_v40 = vmul.f32 %v4162_v6, %v7264_v53  ;;  %v4174_v25 = vpop.eup %4173  ;;  %v7271_v18 = vld [vmem:[#allocation25_spill] sm:$0xff] }
  0xda   : > { %7261 = vst [vmem:[#allocation16_spill] sm:$0xff] %v5192_v26  ;;  %4197 = vpow2.f32 %v680_v21  ;;  %v699_v23 = vmul.f32 %v4164_v48, %v7265_v14  ;;  %v770_v45 = vpack.c.bf16 %v694_v58, %v692_v15  ;;  %v286_v31 = vunpack.c.1.s8 %v5182_v9  ;;  %v4176_v38 = vpop.eup %4175  ;;  %v7274_v58 = vld [vmem:[#allocation28_spill] sm:$0xff] }
  0xdb   : > { %4199 = vpow2.f32 %v682_v42  ;;  %v732_v51 = vadd.f32 %v697_v22, %v696_v39  ;;  %v5202_v16 = vmul.f32 %v4166_v30, %v7266_v24  ;;  %v701_v54 = vmul.f32 %v4168_v4, %v7267_v28  ;;  %v4178_v19 = vpop.eup %4177  ;;  %v7275_v30 = vld [vmem:[#allocation15_spill] sm:$0xff] }
  0xdc   : > { %v287_v59 = vunpack.c.1.s8 %v5185_v52  ;;  %v463_v17 = vadd.f32 %v4805_v57, %v7268_v35  ;;  %v735_v13 = vadd.f32 %v699_v23, %v698_v40  ;;  %953 = vmatmul.mubr.bf16.gmra.mxu0 %v770_v45  ;;  %v773_v44 = vpack.c.bf16 %v699_v23, %v697_v22  ;;  %v4180_v60 = vpop.eup %4179  ;;  %v7273_v57 = vld [vmem:[#allocation27_spill] sm:$0xff] }
  0xdd   : > { %v5209_v34 = vmul.f32 %v4170_v10, %v7269_v11  ;;  %733 = vadd.xlane.f32.xlu0 %v732_v51  ;;  %v738_v50 = vadd.f32 %v701_v54, %v5202_v16  ;;  %v703_v6 = vmul.f32 %v4172_v37, %v7270_v47  ;;  %v5214_v15 = vmul.f32 %v4174_v25, %v7271_v18 }
  0xde   : > { %v5217_v29 = vmul.f32 %v4176_v38, %v7272_v33  ;;  %736 = vadd.xlane.f32.xlu1 %v735_v13  ;;  %960 = vmatprep.mubr.bf16.mxu0 %v773_v44  ;;  %v5220_v27 = vmul.f32 %v4178_v19, %v7273_v57  ;;  %v707_v8 = vmul.f32 %v4180_v60, %v7274_v58  ;;  %v7276_v46 = vunpack.c.3.s8 %v7275_v30  ;;  %v7284_v38 = vld [vmem:[#allocation29_spill] sm:$0xff] }
  0xdf   : > { %v4182_v48 = vpop.eup %4181  ;;  %v7278_v20 = vunpack.c.3.s8 %v7259_v0  ;;  %v741_v7 = vadd.f32 %v703_v6, %v5209_v34  ;;  %v5232_v21 = vcvt.s32.f32 %v284_v36  ;;  %v5234_v10 = vcvt.s32.f32 %v285_v32 }
  0xe0   : > { %v5225_v43 = vcvt.s32.f32 %v7276_v46  ;;  %v4184_v12 = vpop.eup %4183  ;;  %v495_v37 = vmul.f32 0.2, %v463_v17  ;;  %v5236_v22 = vcvt.s32.f32 %v286_v31  ;;  %v5238_v25 = vcvt.s32.f32 %v287_v59 }
  0xe1   : > { %v5229_v4 = vcvt.s32.f32 %v7278_v20  ;;  %7280 = vst [vmem:[#allocation31_spill] sm:$0xff] %v5232_v21  ;;  %7281 = vst [vmem:[#allocation32_spill] sm:$0xff] %v5234_v10  ;;  %v4186_v42 = vpop.eup %4185  ;;  %v288_v23 = vunpack.c.2.s8 %v5182_v9  ;;  %739 = vadd.xlane.f32.xlu0 %v738_v50  ;;  %v744_v0 = vadd.f32 %v5217_v29, %v5214_v15  ;;  %v708_v51 = vmul.f32 %v4182_v48, %v7284_v38  ;;  %v590_v20 = vpop.permute.xlu0 %589 }
  0xe2   : > { %7277 = vst [vmem:[#allocation30_spill] sm:$0xff] %v5225_v43  ;;  %7282 = vst [vmem:[#allocation33_spill] sm:$0xff] %v5236_v22  ;;  %v4188_v45 = vpop.eup %4187  ;;  %v709_v36 = vmul.f32 %v4184_v12, %v5192_v26  ;;  %v289_v32 = vunpack.c.2.s8 %v5185_v52  ;;  %742 = vadd.xlane.f32.xlu1 %v741_v7  ;;  %v747_v31 = vadd.f32 %v707_v8, %v5220_v27 }
  0xe3   : > { %7279 = vst [vmem:[#allocation15_spill] sm:$0xff] %v5229_v4  ;;  %7283 = vst [vmem:[#allocation34_spill] sm:$0xff] %v5238_v25  ;;  %v4190_v19 = vpop.eup %4189  ;;  %v772_v13 = vpack.c.bf16 %v698_v40, %v696_v39  ;;  %v710_v59 = vmul.f32 %v4186_v42, %v5225_v43  ;;  %v711_v44 = vmul.f32 %v4188_v45, %v5229_v4  ;;  %v5251_v12 = vcvt.s32.f32 %v288_v23 }
  0xe4   : > { %v4192_v60 = vpop.eup %4191  ;;  %v775_v50 = vpack.c.bf16 %v703_v6, %v701_v54  ;;  %v462_v46 = vadd.f32 %v4802_v56, %v7268_v35  ;;  %v527_v48 = vmax.f32 %v463_v17, %v495_v37  ;;  %v750_v7 = vadd.f32 %v709_v36, %v708_v51 }
  0xe5   : > { %v4194_v30 = vpop.eup %4193  ;;  %961 = vmatmul.mubr.bf16.gmra.mxu0 %v772_v13  ;;  %7285 = vst [vmem:[#allocation35_spill] sm:$0xff] %v5251_v12  ;;  %745 = vadd.xlane.f32.xlu0 %v744_v0  ;;  %v712_v39 = vmul.f32 %v4190_v19, %v5232_v21  ;;  %v713_v40 = vmul.f32 %v4192_v60, %v5234_v10  ;;  %v5255_v42 = vcvt.s32.f32 %v289_v32 }
  0xe6   : > { %v4196_v58 = vpop.eup %4195  ;;  %968 = vmatprep.mubr.bf16.mxu0 %v775_v50  ;;  %748 = vadd.xlane.f32.xlu1 %v747_v31  ;;  %v753_v6 = vadd.f32 %v711_v44, %v710_v59  ;;  %v714_v56 = vmul.f32 %v4194_v30, %v5236_v22  ;;  %v623_v37 = vsub.f32 %v527_v48, %v590_v20  ;;  %v494_v23 = vmul.f32 0.2, %v462_v46 }
  0xe7   : > { %7286 = vst [vmem:[#allocation36_spill] sm:$0xff] %v5255_v42  ;;  %v4198_v54 = vpop.eup %4197  ;;  %v715_v35 = vmul.f32 %v4196_v58, %v5238_v25  ;;  %v756_v45 = vadd.f32 %v713_v40, %v712_v39  ;;  %v774_v32 = vpack.c.bf16 %v5209_v34, %v5202_v16  ;;  %v777_v60 = vpack.c.bf16 %v707_v8, %v5217_v29 }
  0xe8   : > { %v4200_v17 = vpop.eup %4199  ;;  %v716_v0 = vmul.f32 %v4198_v54, %v5251_v12  ;;  %v686_v31 = vmul.f32 1.442695, %v623_v37  ;;  %v526_v50 = vmax.f32 %v462_v46, %v494_v23  ;;  %v779_v54 = vpack.c.bf16 %v711_v44, %v709_v36  ;;  %v4527_v44 = vld [vmem:[%s4716_s9 + $0x18] sm:$0xff]  ;;  %v4533_v23 = vld [vmem:[%s4716_s9 + $0x68] sm:$0xff] }
  0xe9   : > { %751 = vadd.xlane.f32.xlu0 %v750_v7  ;;  %v717_v19 = vmul.f32 %v4200_v17, %v5255_v42  ;;  %v759_v13 = vadd.f32 %v715_v35, %v714_v56  ;;  %v776_v7 = vpack.c.bf16 %v5220_v27, %v5214_v15  ;;  %v291_v16 = vunpack.c.3.s8 %v5185_v52  ;;  %v4531_v17 = vld [vmem:[%s4716_s9 + $0x28] sm:$0xff]  ;;  %v4532_v37 = vld [vmem:[%s4716_s9 + $0x58] sm:$0xff] }
  0xea   : > { %754 = vadd.xlane.f32.xlu1 %v753_v6  ;;  %v622_v30 = vsub.f32 %v526_v50, %v590_v20  ;;  %4201 = vpow2.f32 %v686_v31  ;;  %v778_v34 = vpack.c.bf16 %v710_v59, %v708_v51  ;;  %v781_v29 = vpack.c.bf16 %v715_v35, %v713_v40  ;;  %v4525_v6 = vld [vmem:[%s4716_s9 + $0x8] sm:$0xff]  ;;  %v4526_v51 = vld [vmem:[%s4716_s9 + $0x10] sm:$0xff]  ;;  %v4528_v40 = vld [vmem:[%s4716_s9] sm:$0xff] }
  0xeb   : > { %v762_v58 = vadd.f32 %v717_v19, %v716_v0  ;;  %v5267_v8 = vcvt.s32.f32 %v291_v16  ;;  %v290_v20 = vunpack.c.3.s8 %v5182_v9  ;;  %v780_v27 = vpack.c.bf16 %v714_v56, %v712_v39  ;;  %v4529_v56 = vld [vmem:[%s4716_s9 + $0x20] sm:$0xff]  ;;  %v4530_v35 = vld [vmem:[%s4716_s9 + $0x48] sm:$0xff]  ;;  %v4539_v50 = vld [vmem:[%s4716_s9 + $0x70] sm:$0xff] }
  0xec   : > { %v684_v48 = vmul.f32 1.442695, %v622_v30  ;;  %v4538_v31 = vld [vmem:[%s4716_s9 + $0x60] sm:$0xff] }
  0xed   : > { %969 = vmatmul.mubr.bf16.gmra.mxu0 %v774_v32  ;;  %757 = vadd.xlane.f32.xlu0 %v756_v45  ;;  %7287 = vst [vmem:[#allocation37_spill] sm:$0xff] %v5267_v8  ;;  %v5272_v36 = vcvt.s32.f32 %v290_v20  ;;  %v4534_v45 = vld [vmem:[%s4716_s9 + $0x78] sm:$0xff]  ;;  %v4537_v32 = vld [vmem:[%s4716_s9 + $0x50] sm:$0xff] }
  0xee   : > { %976 = vmatprep.mubr.bf16.mxu0 %v777_v60  ;;  %760 = vadd.xlane.f32.xlu1 %v759_v13  ;;  %4203 = vpow2.f32 %v684_v48  ;;  %v4536_v13 = vld [vmem:[%s4716_s9 + $0x40] sm:$0xff] }
  0xef   : > { %7288 = vst [vmem:[#allocation38_spill] sm:$0xff] %v5272_v36 }
  0xf1   : > { %763 = vadd.xlane.f32.xlu0 %v762_v58  ;;  %v4540_v58 = vld [vmem:[%s4716_s9 + $0x38] sm:$0xff] }
  0xf5   : > { %977 = vmatmul.mubr.bf16.gmra.mxu0 %v776_v7 }
  0xf6   : > { %984 = vmatprep.mubr.bf16.mxu0 %v779_v54 }
  0xf7   : > { %v4202_v46 = vpop.eup %4201 }
  0xf8   : > { %v719_v15 = vmul.f32 %v4202_v46, %v5267_v8 }
  0xfa   : > { %v783_v59 = vpack.c.bf16 %v719_v15, %v717_v19  ;;  %v4623_v19 = vmov 5  }
  0xfb   : > { %v4204_v52 = vpop.eup %4203 }
  0xfc   : > { %v718_v9 = vmul.f32 %v4204_v52, %v5272_v36 }
  0xfd   : > { %985 = vmatmul.mubr.bf16.gmra.mxu0 %v778_v34 }
  0xfe   : > { %992 = vmatprep.mubr.bf16.mxu0 %v781_v29  ;;  %v782_v39 = vpack.c.bf16 %v718_v9, %v716_v0  ;;  %v4535_v0 = vld [vmem:[%s4716_s9 + $0x30] sm:$0xff]  ;;  %v765_v60 = vadd.f32 %v719_v15, %v718_v9 }
  0xff   : > { %1088 = vperm.xlu1 %4042, %v4525_v6  }
 0x103   : > { %1092 = vperm.xlu1 %4042, %v4526_v51  }
 0x105   : > { %993 = vmatmul.mubr.bf16.gmra.mxu0 %v780_v27 }
 0x106   : > { %1000 = vmatprep.mubr.bf16.mxu0 %v783_v59 }
 0x107   : > { %1096 = vperm.xlu1 %4042, %v4527_v44   ;;  %1084 = vperm.xlu0 %4041, %v4528_v40  }
 0x10b   : > { %1100 = vperm.xlu1 %4042, %v4529_v56   ;;  %1120 = vperm.xlu0 %4041, %v4530_v35  }
 0x10d   : > { %1001 = vmatmul.mubr.bf16.gmra.mxu0 %v782_v39 }
 0x10f   : > { %1104 = vperm.xlu1 %4042, %v4531_v17   ;;  %1128 = vperm.xlu0 %4041, %v4532_v37  }
 0x113   : > { %1136 = vperm.xlu0 %4041, %v4533_v23  }
 0x117   : > { %1144 = vperm.xlu0 %4041, %v4534_v45  }
 0x11b   : > { %4044 = vset.pattern.permute.xlu0 %v4623_v19 }
 0x11c   : > { %1259 = vperm.xlu0 %4044, %v4525_v6  }
 0x120   : > { %1271 = vperm.xlu0 %4044, %v4529_v56   ;;  %v3668_v56 = vld [vmem:[%s7118_s1 + $0x1] ss:$4 sm:$0x3] }
 0x124   : > { %1279 = vperm.xlu0 %4044, %v4535_v0  }
 0x128   : > { %1287 = vperm.xlu0 %4044, %v4536_v13  }
 0x12c   : > { %1295 = vperm.xlu0 %4044, %v4537_v32  }
 0x130   : > { %1303 = vperm.xlu0 %4044, %v4538_v31  }
 0x133   : > { %766 = vadd.xlane.f32.xlu1 %v765_v60 }
 0x134   : > { %1311 = vperm.xlu0 %4044, %v4539_v50  }
 0x144   : > { %1108 = vperm.xlu1 %4042, %v4535_v0  }
 0x148   : > { %1112 = vperm.xlu1 %4042, %v4540_v58  }
 0x14c   : > { %1116 = vperm.xlu1 %4042, %v4536_v13  }
 0x150   : > { %1124 = vperm.xlu1 %4042, %v4537_v32  }
 0x154   : > { %1132 = vperm.xlu1 %4042, %v4538_v31  }
 0x158   : > { %1140 = vperm.xlu1 %4042, %v4539_v50   ;;  %v725_v30 = vpop.xlane.xlu0 %724 }
 0x15c   : > { %4043 = vset.pattern.permute.xlu1 %v4623_v19  ;;  %v722_v48 = vpop.xlane.xlu1 %721 }
 0x15d   : > { %1255 = vperm.xlu1 %4043, %v4528_v40   ;;  %4205 = vrcp.f32 %v722_v48 }
 0x15e   : > { %4207 = vrcp.f32 %v725_v30 }
 0x161   : > { %1263 = vperm.xlu1 %4043, %v4526_v51   ;;  %v728_v7 = vpop.xlane.xlu0 %727 }
 0x162   : > { %v731_v54 = vpop.xlane.xlu1 %730  ;;  %4209 = vrcp.f32 %v728_v7 }
 0x163   : > { %4211 = vrcp.f32 %v731_v54 }
 0x165   : > { %1267 = vperm.xlu1 %4043, %v4527_v44  }
 0x166   : > { %v734_v16 = vpop.xlane.xlu0 %733 }
 0x167   : > { %v5290_v34 = vpop.xlane.xlu1 %736  ;;  %4213 = vrcp.f32 %v734_v16 }
 0x169   : > { %1275 = vperm.xlu1 %4043, %v4531_v17   ;;  %v7289_v17 = vld [vmem:[#allocation5_spill] sm:$0xff] }
 0x16a   : > { %v5292_v29 = vpop.xlane.xlu0 %739  ;;  %v4206_v4 = vpop.eup %4205 }
 0x16b   : > { %v5294_v46 = vpop.xlane.xlu1 %742 }
 0x16d   : > { %1283 = vperm.xlu1 %4043, %v4540_v58  }
 0x16e   : > { %v5296_v20 = vpop.xlane.xlu0 %745 }
 0x16f   : > { %v5298_v6 = vpop.xlane.xlu1 %748 }
 0x171   : > { %1291 = vperm.xlu1 %4043, %v4530_v35  }
 0x172   : > { %v5300_v15 = vpop.xlane.xlu0 %751 }
 0x173   : > { %v5302_v27 = vpop.xlane.xlu1 %754 }
 0x175   : > { %1299 = vperm.xlu1 %4043, %v4532_v37   ;;  %v5322_v37 = vrot.slane %v3668_v56, %v7289_v17 }
 0x176   : > { %v5306_v51 = vpop.xlane.xlu0 %757 }
 0x177   : > { %v5304_v52 = vpop.xlane.xlu1 %760 }
 0x179   : > { %1307 = vperm.xlu1 %4043, %v4533_v23   ;;  %v7290_v23 = vld [vmem:[#allocation6_spill] sm:$0xff] }
 0x17a   : > { %v5308_v9 = vpop.xlane.xlu0 %763 }
 0x17b   : > { %v1089_v59 = vpop.permute.xlu1 %1088 }
 0x17c   : > { %v1160_v0 = vadd.f32 %v5322_v37, %v1089_v59 }
 0x17d   : > { %1315 = vperm.xlu1 %4043, %v4534_v45   ;;  %v5325_v45 = vrot.slane %v3668_v56, %v7290_v23 }
 0x17e   : > { %v1192_v60 = vmul.f32 0.2, %v1160_v0 }
 0x17f   : > { %v5312_v40 = vpop.permute.xlu1 %1092  ;;  %v1161_v13 = vadd.f32 %v5325_v45, %v1089_v59 }
 0x180   : > { %v1224_v36 = vmax.f32 %v1160_v0, %v1192_v60 }
 0x181   : > { %v1193_v50 = vmul.f32 0.2, %v1161_v13 }
 0x182   : > { %v5310_v44 = vpop.permute.xlu0 %1084 }
 0x183   : > { %v5319_v35 = vpop.permute.xlu1 %1096  ;;  %v1225_v59 = vmax.f32 %v1161_v13, %v1193_v50 }
 0x186   : > { %v5314_v39 = vpop.permute.xlu0 %1120 }
 0x187   : > { %v1101_v31 = vpop.permute.xlu1 %1100 }
 0x188   : > { %v1166_v58 = vadd.f32 %v5322_v37, %v1101_v31  ;;  %v1167_v17 = vadd.f32 %v5325_v45, %v1101_v31  ;;  %v5343_v31 = vld [vmem:[%s7120_s3] ss:$0 sm:$0xff] }
 0x18a   : > { %v5327_v19 = vpop.permute.xlu0 %1128  ;;  %v1198_v48 = vmul.f32 0.2, %v1166_v58  ;;  %v1199_v8 = vmul.f32 0.2, %v1167_v17 }
 0x18c   : > { %v1230_v13 = vmax.f32 %v1166_v58, %v1198_v48  ;;  %v1231_v60 = vmax.f32 %v1167_v17, %v1199_v8 }
 0x18e   : > { %v5331_v32 = vpop.permute.xlu0 %1136 }
 0x192   : > { %v5335_v56 = vpop.permute.xlu0 %1144 }
 0x194   : > { %v3745_v23 = vpop.f32.mrf.mxu0 }
 0x196   : > { %v3746_v25 = vpop.f32.mrf.mxu0 }
 0x197   : > { %v1260_v30 = vpop.permute.xlu0 %1259  ;;  %v3747_v22 = vadd.f32 %v3746_v25, %v3745_v23 }
 0x198   : > { %v1320_v43 = vsub.f32 %v1224_v36, %v1260_v30  ;;  %v1321_v57 = vsub.f32 %v1225_v59, %v1260_v30  ;;  %v3748_v7 = vpop.f32.mrf.mxu0  ;;  %v4208_v36 = vpop.eup %4207 }
 0x199   : > { %v1025_v47 = vmul.f32 %v4206_v4, %v3747_v22  ;;  %v4210_v22 = vpop.eup %4209 }
 0x19a   : > { %v1354_v11 = vmul.f32 1.442695, %v1320_v43  ;;  %v1356_v0 = vmul.f32 1.442695, %v1321_v57  ;;  %v3749_v54 = vpop.f32.mrf.mxu0 }
 0x19b   : > { %v1048_v25 = vadd.f32 %v5343_v31, %v1025_v47  ;;  %v1272_v23 = vpop.permute.xlu0 %1271  ;;  %v3750_v50 = vadd.f32 %v3749_v54, %v3748_v7  ;;  %v4212_v7 = vpop.eup %4211 }
 0x19c   : > { %4215 = vpow2.f32 %v1354_v11  ;;  %v1326_v59 = vsub.f32 %v1230_v13, %v1272_v23  ;;  %v1327_v30 = vsub.f32 %v1231_v60, %v1272_v23  ;;  %v3751_v14 = vpop.f32.mrf.mxu0  ;;  %v4214_v60 = vpop.eup %4213 }
 0x19d   : > { %4217 = vpow2.f32 %v1356_v0  ;;  %v1026_v53 = vmul.f32 %v4208_v36, %v3750_v50  ;;  %1065 = vst.msk [vmem:[%s5346_s10] sm:$0xff] %vm1064_vm0, %v1048_v25 }
 0x19e   : > { %v1366_v57 = vmul.f32 1.442695, %v1326_v59  ;;  %v1368_v43 = vmul.f32 1.442695, %v1327_v30  ;;  %v3752_v4 = vpop.f32.mrf.mxu0  ;;  %4219 = vrcp.f32 %v5290_v34 }
 0x19f   : > { %v1049_v47 = vadd.f32 %v5343_v31, %v1026_v53  ;;  %v3753_v11 = vadd.f32 %v3752_v4, %v3751_v14 }
 0x1a0   : > { %4221 = vpow2.f32 %v1366_v57  ;;  %v3754_v8 = vpop.f32.mrf.mxu0 }
 0x1a1   : > { %4223 = vpow2.f32 %v1368_v43  ;;  %v1027_v16 = vmul.f32 %v4210_v22, %v3753_v11  ;;  %1066 = vst.msk [vmem:[%s5346_s10 + $0x8] sm:$0xff] %vm1064_vm0, %v1049_v47 }
 0x1a2   : > { %v3755_v17 = vpop.f32.mrf.mxu0  ;;  %4225 = vrcp.f32 %v5292_v29 }
 0x1a3   : > { %v1050_v58 = vadd.f32 %v5343_v31, %v1027_v16  ;;  %v3756_v48 = vadd.f32 %v3755_v17, %v3754_v8  ;;  %4227 = vrcp.f32 %v5294_v46 }
 0x1a4   : > { %4229 = vrcp.f32 %v5296_v20 }
 0x1a5   : > { %v3757_v34 = vpop.f32.mrf.mxu0  ;;  %v1028_v0 = vmul.f32 %v4212_v7, %v3756_v48  ;;  %1067 = vst.msk [vmem:[%s5346_s10 + $0x10] sm:$0xff] %vm1064_vm0, %v1050_v58  ;;  %4231 = vrcp.f32 %v5298_v6 }
 0x1a6   : > { %4233 = vrcp.f32 %v5300_v15 }
 0x1a7   : > { %v3758_v53 = vpop.f32.mrf.mxu0  ;;  %v1051_v14 = vadd.f32 %v5343_v31, %v1028_v0  ;;  %4235 = vrcp.f32 %v5302_v27 }
 0x1a8   : > { %v3759_v13 = vadd.f32 %v3758_v53, %v3757_v34  ;;  %4237 = vrcp.f32 %v5306_v51 }
 0x1a9   : > { %v3760_v54 = vpop.f32.mrf.mxu0  ;;  %v4216_v25 = vpop.eup %4215  ;;  %1068 = vst.msk [vmem:[%s5346_s10 + $0x18] sm:$0xff] %vm1064_vm0, %v1051_v14  ;;  %4239 = vrcp.f32 %v5304_v52 }
 0x1aa   : > { %v1029_v23 = vmul.f32 %v4214_v60, %v3759_v13  ;;  %v4218_v29 = vpop.eup %4217  ;;  %v5363_v36 = vmul.f32 %v4216_v25, %v4811_v61  ;;  %4241 = vrcp.f32 %v5308_v9 }
 0x1ab   : > { %v3761_v50 = vpop.f32.mrf.mxu0  ;;  %v5368_v30 = vmul.f32 %v4218_v29, %v4813_v62  ;;  %v4220_v57 = vpop.eup %4219 }
 0x1ac   : > { %7291 = vst [vmem:[#allocation39_spill] sm:$0xff] %v5363_v36  ;;  %v1052_v59 = vadd.f32 %v5343_v31, %v1029_v23  ;;  %v3762_v46 = vadd.f32 %v3761_v50, %v3760_v54 }
 0x1ad   : > { %v3763_v43 = vpop.f32.mrf.mxu0  ;;  %v4222_v4 = vpop.eup %4221  ;;  %v1449_v11 = vadd.f32 %v5368_v30, %v5363_v36 }
 0x1ae   : > { %v1030_v47 = vmul.f32 %v4220_v57, %v3762_v46  ;;  %1069 = vst.msk [vmem:[%s5346_s10 + $0x20] sm:$0xff] %vm1064_vm0, %v1052_v59  ;;  %v4224_v22 = vpop.eup %4223  ;;  %v5375_v20 = vmul.f32 %v4222_v4, %v7262_v41  ;;  %v5392_v59 = vpop.permute.xlu1 %1104 }
 0x1af   : > { %v3764_v8 = vpop.f32.mrf.mxu0  ;;  %1450 = vadd.xlane.f32.xlu1 %v1449_v11  ;;  %v5380_v58 = vmul.f32 %v4224_v22, %v7263_v49  ;;  %v4226_v48 = vpop.eup %4225 }
 0x1b0   : > { %7292 = vst [vmem:[#allocation40_spill] sm:$0xff] %v5375_v20  ;;  %v1053_v16 = vadd.f32 %v5343_v31, %v1030_v47  ;;  %v3765_v17 = vadd.f32 %v3764_v8, %v3763_v43  ;;  %v4228_v13 = vpop.eup %4227 }
 0x1b1   : > { %7293 = vst [vmem:[#allocation41_spill] sm:$0xff] %v5380_v58  ;;  %v3766_v7 = vpop.f32.mrf.mxu0  ;;  %v1458_v0 = vadd.f32 %v5380_v58, %v5375_v20  ;;  %v4230_v50 = vpop.eup %4229 }
 0x1b2   : > { %v1031_v34 = vmul.f32 %v4226_v48, %v3765_v17  ;;  %1070 = vst.msk [vmem:[%s5346_s10 + $0x28] sm:$0xff] %vm1064_vm0, %v1053_v16  ;;  %v4232_v47 = vpop.eup %4231 }
 0x1b3   : > { %v3767_v53 = vpop.f32.mrf.mxu0  ;;  %1459 = vadd.xlane.f32.xlu1 %v1458_v0  ;;  %v4234_v48 = vpop.eup %4233 }
 0x1b4   : > { %v1054_v6 = vadd.f32 %v5343_v31, %v1031_v34  ;;  %v3768_v14 = vadd.f32 %v3767_v53, %v3766_v7 }
 0x1b5   : > { %v3769_v60 = vpop.f32.mrf.mxu0 }
 0x1b6   : > { %v1032_v54 = vmul.f32 %v4228_v13, %v3768_v14  ;;  %1071 = vst.msk [vmem:[%s5346_s10 + $0x30] sm:$0xff] %vm1064_vm0, %v1054_v6  ;;  %v1280_v6 = vpop.permute.xlu0 %1279  ;;  %v5408_v14 = vadd.f32 %v5322_v37, %v5312_v40  ;;  %v5412_v13 = vadd.f32 %v5325_v45, %v5312_v40 }
 0x1b7   : > { %v3770_v25 = vpop.f32.mrf.mxu0 }
 0x1b8   : > { %v1055_v23 = vadd.f32 %v5343_v31, %v1032_v54  ;;  %v3771_v29 = vadd.f32 %v3770_v25, %v3769_v60 }
 0x1b9   : > { %v3772_v15 = vpop.f32.mrf.mxu0 }
 0x1ba   : > { %v1033_v46 = vmul.f32 %v4230_v50, %v3771_v29  ;;  %1072 = vst.msk [vmem:[%s5346_s10 + $0x38] sm:$0xff] %vm1064_vm0, %v1055_v23 }
 0x1bb   : > { %v3773_v57 = vpop.f32.mrf.mxu0 }
 0x1bc   : > { %v1056_v43 = vadd.f32 %v5343_v31, %v1033_v46  ;;  %v3774_v4 = vadd.f32 %v3773_v57, %v3772_v15  ;;  %v767_v11 = vpop.xlane.xlu1 %766  ;;  %v4236_v15 = vpop.eup %4235 }
 0x1bd   : > { %v3775_v22 = vpop.f32.mrf.mxu0  ;;  %4243 = vrcp.f32 %v767_v11 }
 0x1be   : > { %v1034_v8 = vmul.f32 %v4232_v47, %v3774_v4  ;;  %1073 = vst.msk [vmem:[%s5346_s10 + $0x40] sm:$0xff] %vm1064_vm0, %v1056_v43  ;;  %v5421_v43 = vmul.f32 0.2, %v5408_v14  ;;  %v5424_v47 = vmul.f32 0.2, %v5412_v13 }
 0x1bf   : > { %v3776_v27 = vpop.f32.mrf.mxu0 }
 0x1c0   : > { %v1057_v16 = vadd.f32 %v5343_v31, %v1034_v8  ;;  %v3777_v17 = vadd.f32 %v3776_v27, %v3775_v22  ;;  %v1109_v7 = vpop.permute.xlu1 %1108  ;;  %v5428_v22 = vadd.f32 %v5322_v37, %v5310_v44  ;;  %v1288_v27 = vpop.permute.xlu0 %1287 }
 0x1c1   : > { %v3778_v34 = vpop.f32.mrf.mxu0  ;;  %v1170_v0 = vadd.f32 %v5322_v37, %v1109_v7  ;;  %v1171_v53 = vadd.f32 %v5325_v45, %v1109_v7 }
 0x1c2   : > { %v1035_v51 = vmul.f32 %v4234_v48, %v3777_v17  ;;  %1074 = vst.msk [vmem:[%s5346_s10 + $0x48] sm:$0xff] %vm1064_vm0, %v1057_v16  ;;  %v5432_v16 = vadd.f32 %v5325_v45, %v5310_v44  ;;  %v5443_v44 = vadd.f32 %v5325_v45, %v5319_v35 }
 0x1c3   : > { %v3779_v52 = vpop.f32.mrf.mxu0  ;;  %v1202_v60 = vmul.f32 0.2, %v1170_v0  ;;  %v1203_v54 = vmul.f32 0.2, %v1171_v53 }
 0x1c4   : > { %v1058_v25 = vadd.f32 %v5343_v31, %v1035_v51  ;;  %v3780_v23 = vadd.f32 %v3779_v52, %v3778_v34  ;;  %v5416_v29 = vpop.permute.xlu1 %1112 }
 0x1c5   : > { %v3781_v50 = vpop.f32.mrf.mxu0  ;;  %v1234_v46 = vmax.f32 %v1170_v0, %v1202_v60  ;;  %v1235_v57 = vmax.f32 %v1171_v53, %v1203_v54  ;;  %v4238_v0 = vpop.eup %4237 }
 0x1c6   : > { %1075 = vst.msk [vmem:[%s5346_s10 + $0x50] sm:$0xff] %vm1064_vm0, %v1058_v25  ;;  %v1036_v40 = vmul.f32 %v4236_v15, %v3780_v23 }
 0x1c7   : > { %v3782_v4 = vpop.f32.mrf.mxu0  ;;  %v1330_v9 = vsub.f32 %v1234_v46, %v1280_v6  ;;  %v1331_v8 = vsub.f32 %v1235_v57, %v1280_v6  ;;  %v5439_v6 = vadd.f32 %v5322_v37, %v5319_v35  ;;  %v5450_v46 = vmul.f32 0.2, %v5428_v22 }
 0x1c8   : > { %v1059_v17 = vadd.f32 %v5343_v31, %v1036_v40  ;;  %v1117_v48 = vpop.permute.xlu1 %1116  ;;  %v3783_v7 = vadd.f32 %v3782_v4, %v3781_v50 }
 0x1c9   : > { %v3784_v34 = vpop.f32.mrf.mxu0  ;;  %v1374_v53 = vmul.f32 1.442695, %v1330_v9  ;;  %v1376_v51 = vmul.f32 1.442695, %v1331_v8  ;;  %v1174_v52 = vadd.f32 %v5322_v37, %v1117_v48  ;;  %v1175_v60 = vadd.f32 %v5325_v45, %v1117_v48  ;;  %v4240_v9 = vpop.eup %4239 }
 0x1ca   : > { %v1037_v11 = vmul.f32 %v4238_v0, %v3783_v7  ;;  %1076 = vst.msk [vmem:[%s5346_s10 + $0x58] sm:$0xff] %vm1064_vm0, %v1059_v17  ;;  %v5461_v0 = vmul.f32 0.2, %v5443_v44 }
 0x1cb   : > { %v3785_v54 = vpop.f32.mrf.mxu0  ;;  %4245 = vpow2.f32 %v1374_v53  ;;  %v1206_v23 = vmul.f32 0.2, %v1174_v52  ;;  %v1207_v50 = vmul.f32 0.2, %v1175_v60  ;;  %v1191_v53 = vmul.f32 0.2, %v5432_v16 }
 0x1cc   : > { %v3786_v15 = vadd.f32 %v3785_v54, %v3784_v34  ;;  %4247 = vpow2.f32 %v1376_v51  ;;  %v1060_v57 = vadd.f32 %v5343_v31, %v1037_v11  ;;  %v1125_v35 = vpop.permute.xlu1 %1124  ;;  %v5458_v34 = vmul.f32 0.2, %v5439_v6  ;;  %v1296_v51 = vpop.permute.xlu0 %1295 }
 0x1cd   : > { %v3787_v40 = vpop.f32.mrf.mxu0  ;;  %v1238_v8 = vmax.f32 %v1174_v52, %v1206_v23  ;;  %v1239_v48 = vmax.f32 %v1175_v60, %v1207_v50  ;;  %v1178_v17 = vadd.f32 %v5322_v37, %v1125_v35  ;;  %v1179_v7 = vadd.f32 %v5325_v45, %v1125_v35 }
 0x1ce   : > { %v1038_v11 = vmul.f32 %v4240_v9, %v3786_v15  ;;  %1077 = vst.msk [vmem:[%s5346_s10 + $0x60] sm:$0xff] %vm1064_vm0, %v1060_v57  ;;  %v5468_v50 = vadd.f32 %v5322_v37, %v5314_v39  ;;  %v1222_v15 = vmax.f32 %v5428_v22, %v5450_v46  ;;  %v4242_v9 = vpop.eup %4241  ;;  %v1223_v36 = vmax.f32 %v5432_v16, %v1191_v53 }
 0x1cf   : > { %v3788_v54 = vpop.f32.mrf.mxu0  ;;  %v1334_v4 = vsub.f32 %v1238_v8, %v1288_v27  ;;  %v1335_v52 = vsub.f32 %v1239_v48, %v1288_v27  ;;  %v1210_v60 = vmul.f32 0.2, %v1178_v17  ;;  %v1211_v23 = vmul.f32 0.2, %v1179_v7 }
 0x1d0   : > { %v1061_v35 = vadd.f32 %v5343_v31, %v1038_v11  ;;  %v1133_v25 = vpop.permute.xlu1 %1132  ;;  %v3789_v49 = vadd.f32 %v3788_v54, %v3787_v40 }
 0x1d1   : > { %v3790_v61 = vpop.f32.mrf.mxu0  ;;  %v1382_v41 = vmul.f32 1.442695, %v1334_v4  ;;  %v1384_v57 = vmul.f32 1.442695, %v1335_v52  ;;  %v1242_v8 = vmax.f32 %v1178_v17, %v1210_v60  ;;  %v1243_v27 = vmax.f32 %v1179_v7, %v1211_v23  ;;  %v1304_v4 = vpop.permute.xlu0 %1303 }
 0x1d2   : > { %v1182_v48 = vadd.f32 %v5322_v37, %v1133_v25  ;;  %v1183_v62 = vadd.f32 %v5325_v45, %v1133_v25  ;;  %v1039_v20 = vmul.f32 %v4242_v9, %v3789_v49  ;;  %1078 = vst.msk [vmem:[%s5346_s10 + $0x68] sm:$0xff] %vm1064_vm0, %v1061_v35  ;;  %v4244_v52 = vpop.eup %4243 }
 0x1d3   : > { %v3791_v58 = vpop.f32.mrf.mxu0  ;;  %4249 = vpow2.f32 %v1382_v41  ;;  %v1338_v40 = vsub.f32 %v1242_v8, %v1296_v51  ;;  %v1339_v11 = vsub.f32 %v1243_v27, %v1296_v51  ;;  %v5483_v41 = vadd.f32 %v5322_v37, %v5392_v59 }
 0x1d4   : > { %v3792_v54 = vadd.f32 %v3791_v58, %v3790_v61  ;;  %4251 = vpow2.f32 %v1384_v57  ;;  %v1214_v22 = vmul.f32 0.2, %v1182_v48  ;;  %v1215_v46 = vmul.f32 0.2, %v1183_v62  ;;  %v1141_v7 = vpop.permute.xlu1 %1140 }
 0x1d5   : > { %v1062_v17 = vadd.f32 %v5343_v31, %v1039_v20  ;;  %v1390_v25 = vmul.f32 1.442695, %v1338_v40  ;;  %v1392_v49 = vmul.f32 1.442695, %v1339_v11  ;;  %v1186_v60 = vadd.f32 %v5322_v37, %v1141_v7 }
 0x1d6   : > { %v1187_v16 = vadd.f32 %v5325_v45, %v1141_v7  ;;  %v1246_v61 = vmax.f32 %v1182_v48, %v1214_v22  ;;  %v1247_v58 = vmax.f32 %v1183_v62, %v1215_v46  ;;  %v1040_v53 = vmul.f32 %v4244_v52, %v3792_v54 }
 0x1d7   : > { %1079 = vst.msk [vmem:[%s5346_s10 + $0x70] sm:$0xff] %vm1064_vm0, %v1062_v17  ;;  %v5489_v20 = vadd.f32 %v5325_v45, %v5392_v59  ;;  %4253 = vpow2.f32 %v1390_v25  ;;  %v1218_v51 = vmul.f32 0.2, %v1186_v60  ;;  %v1312_v59 = vpop.permute.xlu0 %1311 }
 0x1d8   : > { %v1219_v23 = vmul.f32 0.2, %v1187_v16  ;;  %v4246_v35 = vpop.eup %4245  ;;  %4255 = vpow2.f32 %v1392_v49  ;;  %v1342_v9 = vsub.f32 %v1246_v61, %v1304_v4  ;;  %v1343_v57 = vsub.f32 %v1247_v58, %v1304_v4  ;;  %v1256_v27 = vpop.permute.xlu1 %1255 }
 0x1d9   : > { %v1063_v8 = vadd.f32 %v5343_v31, %v1040_v53  ;;  %v4248_v48 = vpop.eup %4247  ;;  %v1250_v62 = vmax.f32 %v1186_v60, %v1218_v51  ;;  %v1318_v11 = vsub.f32 %v1222_v15, %v1256_v27  ;;  %v1319_v54 = vsub.f32 %v1223_v36, %v1256_v27 }
 0x1da   : > { %v1251_v40 = vmax.f32 %v1187_v16, %v1219_v23  ;;  %v1398_v22 = vmul.f32 1.442695, %v1342_v9  ;;  %v1400_v46 = vmul.f32 1.442695, %v1343_v57  ;;  %v5493_v17 = vmul.f32 %v4246_v35, %v7266_v24  ;;  %v5807_v24 = vld [vmem:[%s4716_s9 + $0x28] sm:$0xff] }
 0x1db   : > { %v5496_v7 = vmul.f32 %v4248_v48, %v7267_v28  ;;  %1080 = vst.msk [vmem:[%s5346_s10 + $0x78] sm:$0xff] %vm1064_vm0, %v1063_v8  ;;  %v1346_v4 = vsub.f32 %v1250_v62, %v1312_v59  ;;  %v1350_v25 = vmul.f32 1.442695, %v1318_v11  ;;  %v1228_v49 = vmax.f32 %v5439_v6, %v5458_v34  ;;  %7310 = vst [vmem:[#allocation44_spill] sm:$0xff] %v5807_v24 }
 0x1dc   : > { %v1347_v52 = vsub.f32 %v1251_v40, %v1312_v59  ;;  %v1200_v15 = vmul.f32 0.2, %v5483_v41  ;;  %4257 = vpow2.f32 %v1398_v22  ;;  %v1352_v36 = vmul.f32 1.442695, %v1319_v54  ;;  %v1264_v60 = vpop.permute.xlu1 %1263 }
 0x1dd   : > { %v1464_v16 = vadd.f32 %v5496_v7, %v5493_v17  ;;  %4259 = vpow2.f32 %v1400_v46  ;;  %v1406_v61 = vmul.f32 1.442695, %v1346_v4  ;;  %v7294_v53 = vmax.f32 %v5408_v14, %v5421_v43 }
 0x1de   : > { %v1408_v58 = vmul.f32 1.442695, %v1347_v52  ;;  %v1201_v23 = vmul.f32 0.2, %v5489_v20  ;;  %v1172_v6 = vadd.f32 %v5322_v37, %v5416_v29  ;;  %4261 = vpow2.f32 %v1350_v25 }
 0x1df   : > { %v1322_v51 = vsub.f32 %v7294_v53, %v1264_v60  ;;  %v7295_v34 = vmax.f32 %v5412_v13, %v5424_v47  ;;  %1465 = vadd.xlane.f32.xlu1 %v1464_v16  ;;  %v1173_v9 = vadd.f32 %v5325_v45, %v5416_v29  ;;  %4263 = vpow2.f32 %v1406_v61 }
 0x1e0   : > { %v1229_v14 = vmax.f32 %v5443_v44, %v5461_v0  ;;  %v4250_v43 = vpop.eup %4249  ;;  %v5520_v8 = vadd.f32 %v5325_v45, %v5314_v39  ;;  %4265 = vpow2.f32 %v1408_v58  ;;  %v1268_v48 = vpop.permute.xlu1 %1267  ;;  %v1232_v13 = vmax.f32 %v5483_v41, %v1200_v15 }
 0x1e1   : > { %v1323_v35 = vsub.f32 %v7295_v34, %v1264_v60  ;;  %v1358_v57 = vmul.f32 1.442695, %v1322_v51  ;;  %v4252_v47 = vpop.eup %4251  ;;  %4267 = vpow2.f32 %v1352_v36  ;;  %v1324_v62 = vsub.f32 %v1228_v49, %v1268_v48 }
 0x1e2   : > { %v1325_v40 = vsub.f32 %v1229_v14, %v1268_v48  ;;  %v5524_v29 = vmul.f32 %v4250_v43, %v7271_v18  ;;  %v1204_v11 = vmul.f32 0.2, %v1172_v6  ;;  %v1233_v44 = vmax.f32 %v5489_v20, %v1201_v23  ;;  %v5781_v18 = vld [vmem:[%s4716_s9 + $0x8] sm:$0xff] }
 0x1e3   : > { %v1360_v27 = vmul.f32 1.442695, %v1323_v35  ;;  %4269 = vpow2.f32 %v1358_v57  ;;  %v5528_v0 = vmul.f32 %v4252_v47, %v7272_v33  ;;  %v1205_v39 = vmul.f32 0.2, %v1173_v9  ;;  %v5777_v33 = vld [vmem:[%s4716_s9] sm:$0xff] }
 0x1e4   : > { %v1362_v54 = vmul.f32 1.442695, %v1324_v62  ;;  %v1364_v22 = vmul.f32 1.442695, %v1325_v40  ;;  %v4254_v46 = vpop.eup %4253  ;;  %v1208_v41 = vmul.f32 0.2, %v5468_v50  ;;  %v5533_v59 = vadd.f32 %v5322_v37, %v5327_v19  ;;  %v1276_v4 = vpop.permute.xlu1 %1275 }
 0x1e5   : > { %4271 = vpow2.f32 %v1360_v27  ;;  %v1470_v52 = vadd.f32 %v5528_v0, %v5524_v29  ;;  %v4256_v25 = vpop.eup %4255  ;;  %v1328_v20 = vsub.f32 %v1232_v13, %v1276_v4  ;;  %v1329_v49 = vsub.f32 %v1233_v44, %v1276_v4 }
 0x1e6   : > { %4273 = vpow2.f32 %v1362_v54  ;;  %v5538_v15 = vmul.f32 %v4254_v46, %v7284_v38  ;;  %v1209_v36 = vmul.f32 0.2, %v5520_v8  ;;  %v5543_v60 = vadd.f32 %v5325_v45, %v5327_v19 }
 0x1e7   : > { %4275 = vpow2.f32 %v1364_v22  ;;  %1471 = vadd.xlane.f32.xlu1 %v1470_v52  ;;  %v5546_v16 = vmul.f32 %v4256_v25, %v5192_v26  ;;  %v1370_v61 = vmul.f32 1.442695, %v1328_v20  ;;  %v1372_v58 = vmul.f32 1.442695, %v1329_v49 }
 0x1e8   : > { %v1236_v53 = vmax.f32 %v1172_v6, %v1204_v11  ;;  %v1237_v51 = vmax.f32 %v1173_v9, %v1205_v39  ;;  %v1212_v23 = vmul.f32 0.2, %v5533_v59  ;;  %v5551_v34 = vadd.f32 %v5322_v37, %v5331_v32  ;;  %v1284_v35 = vpop.permute.xlu1 %1283 }
 0x1e9   : > { %v1476_v19 = vadd.f32 %v5546_v16, %v5538_v15  ;;  %v4258_v57 = vpop.eup %4257  ;;  %4277 = vpow2.f32 %v1370_v61  ;;  %v1240_v27 = vmax.f32 %v5468_v50, %v1208_v41  ;;  %v1213_v6 = vmul.f32 0.2, %v5543_v60 }
 0x1ea   : > { %v1332_v14 = vsub.f32 %v1236_v53, %v1284_v35  ;;  %v1333_v43 = vsub.f32 %v1237_v51, %v1284_v35  ;;  %v4260_v48 = vpop.eup %4259  ;;  %4279 = vpow2.f32 %v1372_v58  ;;  %v1241_v9 = vmax.f32 %v5520_v8, %v1209_v36 }
 0x1eb   : > { %1477 = vadd.xlane.f32.xlu1 %v1476_v19  ;;  %v5559_v13 = vmul.f32 %v4258_v57, %v5232_v21  ;;  %v4262_v47 = vpop.eup %4261  ;;  %v1185_v62 = vadd.f32 %v5325_v45, %v5331_v32  ;;  %v5564_v44 = vmul.f32 %v4260_v48, %v5234_v10  ;;  %v1216_v39 = vmul.f32 0.2, %v5551_v34 }
 0x1ec   : > { %v1378_v40 = vmul.f32 1.442695, %v1332_v14  ;;  %v1380_v11 = vmul.f32 1.442695, %v1333_v43  ;;  %v4264_v50 = vpop.eup %4263  ;;  %v5569_v54 = vadd.f32 %v5322_v37, %v5335_v56  ;;  %v1292_v8 = vpop.permute.xlu1 %1291  ;;  %v5572_v22 = vmul.f32 %v4262_v47, %v4817_v1  ;;  %v5825_v1 = vld [vmem:[%s4716_s9 + $0x48] sm:$0xff] }
 0x1ed   : > { %v1244_v46 = vmax.f32 %v5533_v59, %v1212_v23  ;;  %v4266_v41 = vpop.eup %4265  ;;  %v1336_v32 = vsub.f32 %v1240_v27, %v1292_v8  ;;  %v1337_v4 = vsub.f32 %v1241_v9, %v1292_v8  ;;  %v1482_v52 = vadd.f32 %v5564_v44, %v5559_v13  ;;  %7315 = vst [vmem:[#allocation49_spill] sm:$0xff] %v5825_v1 }
 0x1ee   : > { %4281 = vpow2.f32 %v1378_v40  ;;  %v4268_v25 = vpop.eup %4267  ;;  %v1189_v20 = vadd.f32 %v5325_v45, %v5335_v56  ;;  %v5580_v37 = vmul.f32 %v4264_v50, %v5251_v12  ;;  %v5583_v49 = vmul.f32 %v4266_v41, %v5255_v42 }
 0x1ef   : > { %4283 = vpow2.f32 %v1380_v11  ;;  %v1217_v59 = vmul.f32 0.2, %v1185_v62  ;;  %v1386_v61 = vmul.f32 1.442695, %v1336_v32  ;;  %v1388_v58 = vmul.f32 1.442695, %v1337_v4  ;;  %1483 = vadd.xlane.f32.xlu1 %v1482_v52 }
 0x1f0   : > { %v4270_v36 = vpop.eup %4269  ;;  %v1415_v53 = vmul.f32 %v4268_v25, %v4815_v63  ;;  %v1220_v23 = vmul.f32 0.2, %v5569_v54  ;;  %v1300_v35 = vpop.permute.xlu1 %1299  ;;  %v1245_v45 = vmax.f32 %v5543_v60, %v1213_v6  ;;  %v1488_v56 = vadd.f32 %v5583_v49, %v5580_v37 }
 0x1f1   : > { %v5591_v19 = vmul.f32 %v4270_v36, %v4819_v2  ;;  %4285 = vpow2.f32 %v1386_v61  ;;  %v1340_v43 = vsub.f32 %v1244_v46, %v1300_v35  ;;  %v1221_v48 = vmul.f32 0.2, %v1189_v20 }
 0x1f2   : > { %v4272_v51 = vpop.eup %4271  ;;  %v1446_v57 = vadd.f32 %v1415_v53, %v5572_v22  ;;  %v1495_v14 = vpack.c.bf16 %v5368_v30, %v1415_v53  ;;  %4287 = vpow2.f32 %v1388_v58  ;;  %v1341_v9 = vsub.f32 %v1245_v45, %v1300_v35  ;;  %v7296_v53 = vld [vmem:[#allocation19_spill] sm:$0xff]  ;;  %v7297_v45 = vld [vmem:[#allocation20_spill] sm:$0xff] }
 0x1f3   : > { %v4274_v27 = vpop.eup %4273  ;;  %v5596_v47 = vmul.f32 %v4272_v51, %v4821_v3  ;;  %v1394_v6 = vmul.f32 1.442695, %v1340_v43  ;;  %v1248_v40 = vmax.f32 %v5551_v34, %v1216_v39  ;;  %v1249_v11 = vmax.f32 %v1185_v62, %v1217_v59  ;;  %1489 = vadd.xlane.f32.xlu1 %v1488_v56  ;;  %v5821_v3 = vld [vmem:[%s4716_s9 + $0x50] sm:$0xff] }
 0x1f4   : > { %v4276_v60 = vpop.eup %4275  ;;  %1447 = vadd.xlane.f32.xlu0 %v1446_v57  ;;  %1702 = vmatprep.mubr.bf16.mxu1 %v1495_v14  ;;  %v5600_v50 = vmul.f32 %v4274_v27, %v7258_v55  ;;  %v1396_v8 = vmul.f32 1.442695, %v1341_v9  ;;  %v1308_v46 = vpop.permute.xlu1 %1307  ;;  %v1252_v62 = vmax.f32 %v5569_v54, %v1220_v23  ;;  %v1253_v39 = vmax.f32 %v1189_v20, %v1221_v48  ;;  %v7298_v48 = vld [vmem:[#allocation23_spill] sm:$0xff]  ;;  %v5817_v55 = vld [vmem:[%s4716_s9 + $0x38] sm:$0xff] }
 0x1f5   : > { %v1452_v30 = vadd.f32 %v5596_v47, %v5591_v19  ;;  %v5605_v41 = vmul.f32 %v4276_v60, %v4823_v5  ;;  %4289 = vpow2.f32 %v1394_v6  ;;  %v1344_v32 = vsub.f32 %v1248_v40, %v1308_v46  ;;  %v7299_v60 = vld [vmem:[#allocation24_spill] sm:$0xff]  ;;  %7313 = vst [vmem:[#allocation47_spill] sm:$0xff] %v5817_v55  ;;  %7314 = vst [vmem:[#allocation48_spill] sm:$0xff] %v5821_v3 }
 0x1f6   : > { %v1345_v4 = vsub.f32 %v1249_v11, %v1308_v46  ;;  %v4278_v34 = vpop.eup %4277  ;;  %4291 = vpow2.f32 %v1396_v8 }
 0x1f7   : > { %v4280_v36 = vpop.eup %4279  ;;  %v1402_v59 = vmul.f32 1.442695, %v1344_v32  ;;  %v1455_v58 = vadd.f32 %v5605_v41, %v5600_v50  ;;  %v5615_v51 = vmul.f32 %v4278_v34, %v7296_v53  ;;  %v7300_v32 = vld [vmem:[#allocation27_spill] sm:$0xff]  ;;  %v7301_v34 = vld [vmem:[#allocation28_spill] sm:$0xff] }
 0x1f8   : > { %1453 = vadd.xlane.f32.xlu0 %v1452_v30  ;;  %v1404_v61 = vmul.f32 1.442695, %v1345_v4  ;;  %v1316_v35 = vpop.permute.xlu1 %1315  ;;  %v5618_v56 = vmul.f32 %v4280_v36, %v7297_v45  ;;  %v5811_v45 = vld [vmem:[%s4716_s9 + $0x40] sm:$0xff] }
 0x1f9   : > { %4293 = vpow2.f32 %v1402_v59  ;;  %v1348_v54 = vsub.f32 %v1252_v62, %v1316_v35  ;;  %v1349_v20 = vsub.f32 %v1253_v39, %v1316_v35  ;;  %v4093_v39 = vld [vmem:[%s7117_s0] sm:$0xff]   ;;  %7311 = vst [vmem:[#allocation45_spill] sm:$0xff] %v5811_v45 }
 0x1fa   : > { %4295 = vpow2.f32 %v1404_v61  ;;  %v1461_v27 = vadd.f32 %v5618_v56, %v5615_v51 }
 0x1fb   : > { %v4282_v23 = vpop.eup %4281  ;;  %v1410_v14 = vmul.f32 1.442695, %v1348_v54  ;;  %v1412_v43 = vmul.f32 1.442695, %v1349_v20  ;;  %v7302_v54 = vld [vmem:[#allocation30_spill] sm:$0xff] }
 0x1fc   : > { %v4284_v57 = vpop.eup %4283  ;;  %1456 = vadd.xlane.f32.xlu0 %v1455_v58  ;;  %v5623_v9 = vmul.f32 %v4282_v23, %v7298_v48  ;;  %v7303_v23 = vld [vmem:[#allocation15_spill] sm:$0xff] }
 0x1fd   : > { %v5626_v6 = vmul.f32 %v4284_v57, %v7299_v60  ;;  %4297 = vpow2.f32 %v1410_v14  ;;  %v4094_v14 = vld [vmem:[%s7117_s0 + $0x10] sm:$0xff]  }
 0x1fe   : > { %v4286_v11 = vpop.eup %4285  ;;  %4299 = vpow2.f32 %v1412_v43  ;;  %v4095_v43 = vld [vmem:[%s7117_s0 + $0x18] sm:$0xff]   ;;  %v5801_v60 = vld [vmem:[%s4716_s9 + $0x30] sm:$0xff] }
 0x1ff   : > { %v4288_v30 = vpop.eup %4287  ;;  %v1467_v46 = vadd.f32 %v5626_v6, %v5623_v9  ;;  %v5635_v4 = vmul.f32 %v4286_v11, %v7300_v32  ;;  %v4096_v11 = vld [vmem:[%s7117_s0 + $0x28] sm:$0xff]   ;;  %v5797_v32 = vld [vmem:[%s4716_s9 + $0x18] sm:$0xff]  ;;  %7309 = vst [vmem:[#allocation43_spill] sm:$0xff] %v5801_v60 }
 0x200   : > { %1462 = vadd.xlane.f32.xlu0 %v1461_v27  ;;  %v5638_v62 = vmul.f32 %v4288_v30, %v7301_v34  ;;  %7308 = vst [vmem:[#allocation42_spill] sm:$0xff] %v5797_v32 }
 0x202   : > { %v4290_v59 = vpop.eup %4289  ;;  %v1473_v35 = vadd.f32 %v5638_v62, %v5635_v4 }
 0x203   : > { %v4292_v58 = vpop.eup %4291  ;;  %v5650_v20 = vmul.f32 %v4290_v59, %v7302_v54  ;;  %v7304_v59 = vld [vmem:[#allocation33_spill] sm:$0xff] }
 0x204   : > { %1468 = vadd.xlane.f32.xlu0 %v1467_v46  ;;  %v5653_v57 = vmul.f32 %v4292_v58, %v7303_v23  ;;  %1622 = vrot.lane.b32.xlu1 %v4093_v39, %s4624_s13  ;;  %v7305_v39 = vld [vmem:[#allocation34_spill] sm:$0xff]  ;;  %v5787_v23 = vld [vmem:[%s4716_s9 + $0x10] sm:$0xff]  ;;  %v5791_v54 = vld [vmem:[%s4716_s9 + $0x20] sm:$0xff] }
 0x206   : > { %v4294_v27 = vpop.eup %4293  ;;  %v1479_v46 = vadd.f32 %v5653_v57, %v5650_v20 }
 0x207   : > { %v4296_v30 = vpop.eup %4295  ;;  %v5666_v58 = vmul.f32 %v4294_v27, %v7304_v59 }
 0x208   : > { %1474 = vadd.xlane.f32.xlu0 %v1473_v35  ;;  %v5669_v36 = vmul.f32 %v4296_v30, %v7305_v39  ;;  %1626 = vrot.lane.b32.xlu1 %v4094_v14, %s4624_s13  ;;  %v7306_v30 = vld [vmem:[#allocation38_spill] sm:$0xff]  ;;  %v7307_v14 = vld [vmem:[#allocation37_spill] sm:$0xff] }
 0x20a   : > { %v4298_v61 = vpop.eup %4297  ;;  %v1485_v27 = vadd.f32 %v5669_v36, %v5666_v58 }
 0x20b   : > { %v4300_v40 = vpop.eup %4299  ;;  %v5682_v8 = vmul.f32 %v4298_v61, %v7306_v30  ;;  %v4625_v30 = vmov 2  }
 0x20c   : > { %1480 = vadd.xlane.f32.xlu0 %v1479_v46  ;;  %v5685_v52 = vmul.f32 %v4300_v40, %v7307_v14  ;;  %1628 = vrot.lane.b32.xlu1 %v4095_v43, %s4624_s13  ;;  %v4097_v40 = vld [vmem:[%s7117_s0 + $0x38] sm:$0xff]   ;;  %v4098_v43 = vld [vmem:[%s7117_s0 + $0x48] sm:$0xff]  }
 0x20d   : > { %4045 = vset.pattern.permute.xlu1 %v4625_v30  ;;  %4046 = vset.pattern.permute.xlu0 %v4625_v30 }
 0x20e   : > { %v1491_v61 = vadd.f32 %v5685_v52, %v5682_v8 }
 0x210   : > { %1486 = vadd.xlane.f32.xlu0 %v1485_v27  ;;  %1632 = vrot.lane.b32.xlu1 %v4096_v11, %s4624_s13  ;;  %v4099_v27 = vld [vmem:[%s7117_s0 + $0x58] sm:$0xff]   ;;  %v4100_v11 = vld [vmem:[%s7117_s0 + $0x68] sm:$0xff]  }
 0x214   : > { %1492 = vadd.xlane.f32.xlu0 %v1491_v61  ;;  %1636 = vrot.lane.b32.xlu1 %v4097_v40, %s4624_s13  ;;  %v4102_v61 = vld [vmem:[%s7117_s0 + $0x78] sm:$0xff]   ;;  %v4101_v40 = vld [vmem:[%s7117_s0 + $0x8] sm:$0xff]  }
 0x218   : > { %1640 = vrot.lane.b32.xlu1 %v4098_v43, %s4624_s13  ;;  %v4103_v43 = vld [vmem:[%s7117_s0 + $0x20] sm:$0xff]  }
 0x21c   : > { %1644 = vrot.lane.b32.xlu1 %v4099_v27, %s4624_s13  ;;  %v4104_v27 = vld [vmem:[%s7117_s0 + $0x30] sm:$0xff]  }
 0x220   : > { %1648 = vrot.lane.b32.xlu1 %v4100_v11, %s4624_s13  ;;  %v4105_v11 = vld [vmem:[%s7117_s0 + $0x40] sm:$0xff]  }
 0x224   : > { %1652 = vrot.lane.b32.xlu1 %v4102_v61, %s4624_s13  ;;  %v4106_v61 = vld [vmem:[%s7117_s0 + $0x50] sm:$0xff]  }
 0x228   : > { %1908 = vperm.xlu1 %4045, %v5777_v33  }
 0x22a   : > { %1624 = vrot.lane.b32.xlu0 %v4101_v40, %s4624_s13  ;;  %v4107_v40 = vld [vmem:[%s7117_s0 + $0x60] sm:$0xff]  }
 0x22c   : > { %1916 = vperm.xlu1 %4045, %v5787_v23  }
 0x22e   : > { %1630 = vrot.lane.b32.xlu0 %v4103_v43, %s4624_s13  ;;  %v4108_v43 = vld [vmem:[%s7117_s0 + $0x70] sm:$0xff]  }
 0x230   : > { %1920 = vperm.xlu1 %4045, %v5797_v32   ;;  %v5837_v32 = vld [vmem:[%s4716_s9 + $0x70] sm:$0xff] }
 0x231   : > { %7316 = vst [vmem:[#allocation50_spill] sm:$0xff] %v5837_v32 }
 0x232   : > { %1634 = vrot.lane.b32.xlu0 %v4104_v27, %s4624_s13 }
 0x234   : > { %1928 = vperm.xlu1 %4045, %v5807_v24   ;;  %v5833_v24 = vld [vmem:[%s4716_s9 + $0x58] sm:$0xff] }
 0x236   : > { %1638 = vrot.lane.b32.xlu0 %v4105_v11, %s4624_s13 }
 0x238   : > { %v5748_v27 = vpop.xlane.xlu1 %1450  ;;  %1936 = vperm.xlu1 %4045, %v5817_v55  }
 0x23a   : > { %1642 = vrot.lane.b32.xlu0 %v4106_v61, %s4624_s13 }
 0x23c   : > { %v5750_v11 = vpop.xlane.xlu1 %1459  ;;  %1944 = vperm.xlu1 %4045, %v5825_v1  }
 0x23e   : > { %1646 = vrot.lane.b32.xlu0 %v4107_v40, %s4624_s13 }
 0x240   : > { %1952 = vperm.xlu1 %4045, %v5833_v24  }
 0x242   : > { %1650 = vrot.lane.b32.xlu0 %v4108_v43, %s4624_s13 }
 0x246   : > { %1805 = vrot.lane.b32.xlu0 %v5343_v31, %s4624_s13 }
 0x24a   : > { %1912 = vperm.xlu0 %4046, %v5781_v18  }
 0x24e   : > { %1924 = vperm.xlu0 %4046, %v5791_v54  }
 0x252   : > { %1932 = vperm.xlu0 %4046, %v5801_v60   ;;  %v5829_v60 = vld [vmem:[%s4716_s9 + $0x60] sm:$0xff] }
 0x256   : > { %1940 = vperm.xlu0 %4046, %v5811_v45  }
 0x25a   : > { %1948 = vperm.xlu0 %4046, %v5821_v3  }
 0x25e   : > { %1956 = vperm.xlu0 %4046, %v5829_v60  }
 0x262   : > { %1964 = vperm.xlu0 %4046, %v5837_v32   ;;  %v7318_v32 = vld [vmem:[#allocation39_spill] sm:$0xff] }
 0x268   : > { %v5752_v61 = vpop.xlane.xlu1 %1465 }
 0x270   : > { %v5754_v35 = vpop.xlane.xlu1 %1471 }
 0x274   : > { %v5756_v46 = vpop.xlane.xlu1 %1477 }
 0x278   : > { %v5758_v40 = vpop.xlane.xlu1 %1483 }
 0x27c   : > { %v5762_v43 = vpop.xlane.xlu1 %1489 }
 0x27d   : > { %v5760_v25 = vpop.xlane.xlu0 %1447 }
 0x27e   : > { %4301 = vrcp.f32 %v5760_v25 }
 0x27f   : > { %4303 = vrcp.f32 %v5748_v27  ;;  %v4628_v27 = vmov 6  }
 0x280   : > { %v5766_v31 = vpop.permute.xlu1 %1622 }
 0x281   : > { %v5764_v42 = vpop.xlane.xlu0 %1453 }
 0x282   : > { %4305 = vrcp.f32 %v5764_v42 }
 0x284   : > { %v5770_v10 = vpop.permute.xlu1 %1626 }
 0x285   : > { %v5768_v12 = vpop.xlane.xlu0 %1456 }
 0x286   : > { %4307 = vrcp.f32 %v5768_v12 }
 0x287   : > { %4309 = vrcp.f32 %v5750_v11 }
 0x288   : > { %v1629_v26 = vpop.permute.xlu1 %1628 }
 0x289   : > { %v5772_v21 = vpop.xlane.xlu0 %1462 }
 0x28a   : > { %4311 = vrcp.f32 %v5772_v21 }
 0x28b   : > { %4313 = vrcp.f32 %v5752_v61 }
 0x28c   : > { %v1633_v14 = vpop.permute.xlu1 %1632 }
 0x28d   : > { %v5774_v38 = vpop.xlane.xlu0 %1468 }
 0x28e   : > { %4315 = vrcp.f32 %v5774_v38 }
 0x28f   : > { %4317 = vrcp.f32 %v5754_v35 }
 0x290   : > { %v1637_v59 = vpop.permute.xlu1 %1636 }
 0x291   : > { %v5784_v39 = vpop.xlane.xlu0 %1474 }
 0x292   : > { %4319 = vrcp.f32 %v5784_v39 }
 0x293   : > { %4321 = vrcp.f32 %v5756_v46 }
 0x294   : > { %v1641_v34 = vpop.permute.xlu1 %1640 }
 0x295   : > { %v5794_v30 = vpop.xlane.xlu0 %1480 }
 0x296   : > { %4323 = vrcp.f32 %v5794_v30 }
 0x297   : > { %4325 = vrcp.f32 %v5758_v40 }
 0x298   : > { %v1645_v28 = vpop.permute.xlu1 %1644 }
 0x299   : > { %v5804_v48 = vpop.xlane.xlu0 %1486 }
 0x29a   : > { %4327 = vrcp.f32 %v5804_v48  ;;  %v4109_v48 = vld [vmem:[%s7117_s0 + $0x78] sm:$0xff]  }
 0x29b   : > { %4329 = vrcp.f32 %v5762_v43 }
 0x29c   : > { %v1649_v5 = vpop.permute.xlu1 %1648 }
 0x29d   : > { %v5814_v53 = vpop.xlane.xlu0 %1492 }
 0x29e   : > { %7312 = vst [vmem:[#allocation46_spill] sm:$0xff] %v5814_v53 }
 0x2a0   : > { %v1653_v63 = vpop.permute.xlu1 %1652 }
 0x2a1   : > { %v1625_v2 = vpop.permute.xlu0 %1624  ;;  %3793 = vmatprep.subr.bf16.mxu1 %v1653_v63  ;;  %v5841_v63 = vld [vmem:[%s4716_s9 + $0x68] sm:$0xff] }
 0x2a2   : > { %3794 = vmatpush3.bf16.msra.mxu1 %v1637_v59  ;;  %7317 = vst [vmem:[#allocation51_spill] sm:$0xff] %v5841_v63  ;;  %1960 = vperm.xlu1 %4045, %v5841_v63   ;;  %v1494_v63 = vpack.c.bf16 %v7318_v32, %v5572_v22  ;;  %v7325_v22 = vpack.c.bf16 %v5638_v62, %v5528_v0 }
 0x2a3   : > { %v7330_v0 = vpack.c.bf16 %v5666_v58, %v5559_v13 }
 0x2a5   : > { %v1631_v45 = vpop.permute.xlu0 %1630 }
 0x2a9   : > { %v1635_v55 = vpop.permute.xlu0 %1634 }
 0x2ad   : > { %v1639_v59 = vpop.permute.xlu0 %1638 }
 0x2b1   : > { %v1643_v1 = vpop.permute.xlu0 %1642 }
 0x2b5   : > { %v1647_v3 = vpop.permute.xlu0 %1646 }
 0x2b9   : > { %v1651_v53 = vpop.permute.xlu0 %1650 }
 0x2ba   : > { %3795 = vmatprep.subr.bf16.mxu1 %v1651_v53 }
 0x2bb   : > { %3796 = vmatpush3.bf16.msra.mxu1 %v1635_v55 }
 0x2bc   : > { %3797 = vmatprep.subr.bf16.mxu1 %v1649_v5  ;;  %v7319_v5 = vpack.c.bf16 %v5605_v41, %v5596_v47  ;;  %v7327_v47 = vpack.c.bf16 %v5653_v57, %v5546_v16  ;;  %v7332_v16 = vpack.c.bf16 %v5682_v8, %v5580_v37 }
 0x2bf   : > { %3798 = vmatpush3.bf16.msra.mxu1 %v1633_v14 }
 0x2c0   : > { %3799 = vmatprep.subr.bf16.mxu1 %v1647_v3  ;;  %v7320_v3 = vld [vmem:[#allocation41_spill] sm:$0xff] }
 0x2c1   : > { %v1499_v55 = vpack.c.bf16 %v5618_v56, %v7320_v3 }
 0x2c3   : > { %3800 = vmatpush3.bf16.msra.mxu1 %v1631_v45 }
 0x2c4   : > { %3801 = vmatprep.subr.bf16.mxu1 %v1645_v28  ;;  %v7323_v28 = vpack.c.bf16 %v5626_v6, %v5496_v7  ;;  %v7328_v7 = vpack.c.bf16 %v5650_v20, %v5538_v15 }
 0x2c7   : > { %3802 = vmatpush3.bf16.msra.mxu1 %v1629_v26 }
 0x2c8   : > { %3803 = vmatprep.subr.bf16.mxu1 %v1643_v1  ;;  %v7321_v1 = vpack.c.bf16 %v5600_v50, %v5591_v19  ;;  %v7326_v19 = vpack.c.bf16 %v5635_v4, %v5524_v29  ;;  %v7331_v29 = vpack.c.bf16 %v5685_v52, %v5583_v49  ;;  %v4626_v50 = vmov 3   ;;  %v4302_v49 = vpop.eup %4301  ;;  %v5893_v52 = vpop.permute.xlu0 %1805 }
 0x2c9   : > { %4049 = vset.pattern.permute.xlu0 %v4626_v50  ;;  %v4304_v45 = vpop.eup %4303 }
 0x2ca   : > { %v4306_v8 = vpop.eup %4305 }
 0x2cb   : > { %3804 = vmatpush3.bf16.msra.mxu1 %v5770_v10  ;;  %v7324_v10 = vpack.c.bf16 %v5623_v9, %v5493_v17  ;;  %v7329_v17 = vpack.c.bf16 %v5669_v36, %v5564_v44  ;;  %v4308_v57 = vpop.eup %4307 }
 0x2cc   : > { %3805 = vmatprep.subr.bf16.mxu1 %v1641_v34  ;;  %v5902_v34 = vld [vmem:[%s4716_s9 + $0x78] sm:$0xff] }
 0x2cf   : > { %3806 = vmatpush3.bf16.msra.mxu1 %v1625_v2  ;;  %v7322_v2 = vld [vmem:[#allocation40_spill] sm:$0xff] }
 0x2d0   : > { %3807 = vmatprep.subr.bf16.mxu1 %v1639_v59  ;;  %v1498_v26 = vpack.c.bf16 %v5615_v51, %v7322_v2 }
 0x2d3   : > { %3808 = vmatpush3.bf16.msra.mxu1 %v5766_v31 }
 0x2d6   : > { %1703 = vmatmul.mubr.bf16.vlgmr.msra.gmra.mxu1 %v1494_v63  ;;  %v4310_v63 = vpop.eup %4309 }
 0x2d7   : > { %1710 = vmatprep.mubr.bf16.mxu1 %v7319_v5 }
 0x2de   : > { %1711 = vmatmul.mubr.bf16.gmra.mxu1 %v7321_v1  ;;  %v4312_v1 = vpop.eup %4311 }
 0x2df   : > { %1718 = vmatprep.mubr.bf16.mxu1 %v1499_v55 }
 0x2e6   : > { %1719 = vmatmul.mubr.bf16.gmra.mxu1 %v1498_v26 }
 0x2e7   : > { %1726 = vmatprep.mubr.bf16.mxu1 %v7323_v28 }
 0x2ee   : > { %1727 = vmatmul.mubr.bf16.gmra.mxu1 %v7324_v10 }
 0x2ef   : > { %1734 = vmatprep.mubr.bf16.mxu1 %v7325_v22  ;;  %v4314_v22 = vpop.eup %4313 }
 0x2f6   : > { %1735 = vmatmul.mubr.bf16.gmra.mxu1 %v7326_v19 }
 0x2f7   : > { %1742 = vmatprep.mubr.bf16.mxu1 %v7327_v47 }
 0x2fe   : > { %1743 = vmatmul.mubr.bf16.gmra.mxu1 %v7328_v7 }
 0x2ff   : > { %1750 = vmatprep.mubr.bf16.mxu1 %v7329_v17 }
 0x306   : > { %1751 = vmatmul.mubr.bf16.gmra.mxu1 %v7330_v0  ;;  %v4316_v0 = vpop.eup %4315 }
 0x307   : > { %1758 = vmatprep.mubr.bf16.mxu1 %v7331_v29 }
 0x30e   : > { %1759 = vmatmul.mubr.bf16.gmra.mxu1 %v7332_v16 }
 0x396   : > { %v3809_v15 = vpop.f32.mrf.mxu1 }
 0x398   : > { %v3810_v13 = vpop.f32.mrf.mxu1 }
 0x399   : > { %v3811_v44 = vadd.f32 %v3810_v13, %v3809_v15 }
 0x39a   : > { %v3812_v41 = vpop.f32.mrf.mxu1 }
 0x39b   : > { %v1783_v37 = vmul.f32 %v4302_v49, %v3811_v44  ;;  %v4318_v44 = vpop.eup %4317 }
 0x39c   : > { %v3813_v53 = vpop.f32.mrf.mxu1 }
 0x39d   : > { %v3814_v51 = vadd.f32 %v3813_v53, %v3812_v41  ;;  %v1808_v25 = vadd.f32 %v5893_v52, %v1783_v37 }
 0x39e   : > { %v3815_v56 = vpop.f32.mrf.mxu1 }
 0x39f   : > { %v1784_v42 = vmul.f32 %v4304_v45, %v3814_v51  ;;  %1840 = vrot.lane.b32.xlu1 %v1808_v25, %s4627_s26  ;;  %v4320_v51 = vpop.eup %4319 }
 0x3a0   : > { %v3816_v12 = vpop.f32.mrf.mxu1 }
 0x3a1   : > { %v3817_v9 = vadd.f32 %v3816_v12, %v3815_v56  ;;  %v1809_v6 = vadd.f32 %v5893_v52, %v1784_v42  ;;  %v4322_v12 = vpop.eup %4321 }
 0x3a2   : > { %v3818_v32 = vpop.f32.mrf.mxu1 }
 0x3a3   : > { %v1785_v4 = vmul.f32 %v4306_v8, %v3817_v9  ;;  %1842 = vrot.lane.b32.xlu0 %v1809_v6, %s4627_s26  ;;  %1968 = vperm.xlu1 %4045, %v5902_v34  }
 0x3a4   : > { %v3819_v62 = vpop.f32.mrf.mxu1 }
 0x3a5   : > { %v1810_v36 = vadd.f32 %v5893_v52, %v1785_v4  ;;  %v3820_v20 = vadd.f32 %v3819_v62, %v3818_v32  ;;  %v4324_v4 = vpop.eup %4323 }
 0x3a6   : > { %v3821_v21 = vpop.f32.mrf.mxu1  ;;  %v4326_v43 = vpop.eup %4325 }
 0x3a7   : > { %v1786_v58 = vmul.f32 %v4308_v57, %v3820_v20  ;;  %1844 = vrot.lane.b32.xlu1 %v1810_v36, %s4627_s26  ;;  %v4629_v57 = vmov 7  }
 0x3a8   : > { %v3822_v14 = vpop.f32.mrf.mxu1  ;;  %4047 = vset.pattern.permute.xlu1 %v4628_v27 }
 0x3a9   : > { %v1811_v11 = vadd.f32 %v5893_v52, %v1786_v58  ;;  %v3823_v31 = vadd.f32 %v3822_v14, %v3821_v21 }
 0x3aa   : > { %v3824_v59 = vpop.f32.mrf.mxu1 }
 0x3ab   : > { %v1787_v61 = vmul.f32 %v4310_v63, %v3823_v31  ;;  %1846 = vrot.lane.b32.xlu0 %v1811_v11, %s4627_s26  ;;  %2083 = vperm.xlu1 %4047, %v5781_v18   ;;  %v4110_v31 = vld [vmem:[%s7117_s0 + $0x78] sm:$0xff]  }
 0x3ac   : > { %v3825_v5 = vpop.f32.mrf.mxu1 }
 0x3ad   : > { %v1812_v3 = vadd.f32 %v5893_v52, %v1787_v61  ;;  %v3826_v55 = vadd.f32 %v3825_v5, %v3824_v59  ;;  %v4328_v5 = vpop.eup %4327 }
 0x3ae   : > { %v3827_v2 = vpop.f32.mrf.mxu1 }
 0x3af   : > { %v1788_v26 = vmul.f32 %v4312_v1, %v3826_v55  ;;  %1848 = vrot.lane.b32.xlu1 %v1812_v3, %s4627_s26  ;;  %v7333_v55 = vld [vmem:[#allocation46_spill] sm:$0xff] }
 0x3b0   : > { %v3828_v38 = vpop.f32.mrf.mxu1  ;;  %4331 = vrcp.f32 %v7333_v55 }
 0x3b1   : > { %v1813_v28 = vadd.f32 %v5893_v52, %v1788_v26  ;;  %v3829_v10 = vadd.f32 %v3828_v38, %v3827_v2  ;;  %v4111_v2 = vld [vmem:[%s7117_s0 + $0x38] sm:$0xff]  }
 0x3b2   : > { %v3830_v19 = vpop.f32.mrf.mxu1 }
 0x3b3   : > { %v1789_v47 = vmul.f32 %v4314_v22, %v3829_v10  ;;  %1850 = vrot.lane.b32.xlu0 %v1813_v28, %s4627_s26  ;;  %2087 = vperm.xlu1 %4047, %v5787_v23   ;;  %v4330_v10 = vpop.eup %4329 }
 0x3b4   : > { %v3831_v35 = vpop.f32.mrf.mxu1 }
 0x3b5   : > { %v1814_v7 = vadd.f32 %v5893_v52, %v1789_v47  ;;  %v3832_v17 = vadd.f32 %v3831_v35, %v3830_v19  ;;  %v4112_v47 = vld [vmem:[%s7117_s0 + $0x70] sm:$0xff]  }
 0x3b6   : > { %v3833_v29 = vpop.f32.mrf.mxu1 }
 0x3b7   : > { %v1790_v16 = vmul.f32 %v4316_v0, %v3832_v17  ;;  %1852 = vrot.lane.b32.xlu1 %v1814_v7, %s4627_s26  ;;  %v4113_v17 = vld [vmem:[%s7117_s0 + $0x30] sm:$0xff]   ;;  %v4114_v0 = vld [vmem:[%s7117_s0 + $0x38] sm:$0xff]  }
 0x3b8   : > { %v3834_v39 = vpop.f32.mrf.mxu1 }
 0x3b9   : > { %v1815_v15 = vadd.f32 %v5893_v52, %v1790_v16  ;;  %v3835_v13 = vadd.f32 %v3834_v39, %v3833_v29  ;;  %v4115_v16 = vld [vmem:[%s7117_s0 + $0x30] sm:$0xff]  }
 0x3ba   : > { %v3836_v49 = vpop.f32.mrf.mxu1 }
 0x3bb   : > { %v1791_v41 = vmul.f32 %v4318_v44, %v3835_v13  ;;  %1854 = vrot.lane.b32.xlu0 %v1815_v15, %s4627_s26  ;;  %2095 = vperm.xlu1 %4047, %v5791_v54   ;;  %v7334_v13 = vld [vmem:[#allocation42_spill] sm:$0xff] }
 0x3bc   : > { %v3837_v46 = vpop.f32.mrf.mxu1 }
 0x3bd   : > { %v1816_v37 = vadd.f32 %v5893_v52, %v1791_v41  ;;  %v3838_v53 = vadd.f32 %v3837_v46, %v3836_v49  ;;  %v4332_v39 = vpop.eup %4331  ;;  %v5979_v49 = vpop.permute.xlu1 %1908  ;;  %v4116_v41 = vld [vmem:[%s7117_s0 + $0x70] sm:$0xff]  }
 0x3be   : > { %v3839_v25 = vpop.f32.mrf.mxu1 }
 0x3bf   : > { %v1792_v45 = vmul.f32 %v4320_v51, %v3838_v53  ;;  %2736 = vperm.xlu0 %4049, %v5781_v18   ;;  %1856 = vrot.lane.b32.xlu1 %v1816_v37, %s4627_s26  ;;  %v7335_v53 = vld [vmem:[#allocation44_spill] sm:$0xff]  ;;  %v4118_v51 = vld [vmem:[%s7117_s0 + $0x68] sm:$0xff]  }
 0x3c0   : > { %v3840_v30 = vpop.f32.mrf.mxu1  ;;  %4048 = vset.pattern.permute.xlu1 %v4626_v50 }
 0x3c1   : > { %v1817_v56 = vadd.f32 %v5893_v52, %v1792_v45  ;;  %v3841_v42 = vadd.f32 %v3840_v30, %v3839_v25  ;;  %v5990_v46 = vpop.permute.xlu1 %1916  ;;  %v4119_v25 = vld [vmem:[%s7117_s0 + $0x28] sm:$0xff]   ;;  %v4120_v30 = vld [vmem:[%s7117_s0 + $0x60] sm:$0xff]  }
 0x3c2   : > { %v3842_v40 = vpop.f32.mrf.mxu1 }
 0x3c3   : > { %v1793_v9 = vmul.f32 %v4322_v12, %v3841_v42  ;;  %1858 = vrot.lane.b32.xlu0 %v1817_v56, %s4627_s26  ;;  %2732 = vperm.xlu1 %4048, %v5777_v33   ;;  %v4121_v56 = vld [vmem:[%s7117_s0 + $0x28] sm:$0xff]   ;;  %v4122_v12 = vld [vmem:[%s7117_s0 + $0x20] sm:$0xff]  }
 0x3c4   : > { %v3843_v6 = vpop.f32.mrf.mxu1 }
 0x3c5   : > { %v1818_v8 = vadd.f32 %v5893_v52, %v1793_v9  ;;  %v3844_v32 = vadd.f32 %v3843_v6, %v3842_v40  ;;  %v5999_v37 = vpop.permute.xlu1 %1920  ;;  %v4123_v40 = vld [vmem:[%s7117_s0 + $0x20] sm:$0xff]  }
 0x3c6   : > { %v3845_v62 = vpop.f32.mrf.mxu1 }
 0x3c7   : > { %v1794_v36 = vmul.f32 %v4324_v4, %v3844_v32  ;;  %1860 = vrot.lane.b32.xlu1 %v1818_v8, %s4627_s26  ;;  %v4124_v8 = vld [vmem:[%s7117_s0 + $0x58] sm:$0xff]   ;;  %v4125_v4 = vld [vmem:[%s7117_s0 + $0x50] sm:$0xff]  }
 0x3c8   : > { %v3846_v20 = vpop.f32.mrf.mxu1  ;;  %4050 = vset.pattern.permute.xlu1 %v4629_v57 }
 0x3c9   : > { %v1819_v21 = vadd.f32 %v5893_v52, %v1794_v36  ;;  %v3847_v58 = vadd.f32 %v3846_v20, %v3845_v62  ;;  %v6020_v42 = vpop.permute.xlu1 %1928  ;;  %v4126_v62 = vld [vmem:[%s7117_s0 + $0x60] sm:$0xff]  }
 0x3ca   : > { %v3848_v14 = vpop.f32.mrf.mxu1 }
 0x3cb   : > { %v1795_v11 = vmul.f32 %v4326_v43, %v3847_v58  ;;  %1862 = vrot.lane.b32.xlu0 %v1819_v21, %s4627_s26  ;;  %2476 = vrot.lane.b32.xlu1 %v4109_v48, %s4630_s8  ;;  %v4127_v48 = vld [vmem:[%s7117_s0 + $0x10] sm:$0xff]   ;;  %v4128_v58 = vld [vmem:[%s7117_s0 + $0x48] sm:$0xff]  }
 0x3cc   : > { %v3849_v63 = vpop.f32.mrf.mxu1  ;;  %v4129_v43 = vld [vmem:[%s7117_s0 + $0x58] sm:$0xff]  }
 0x3cd   : > { %v1820_v59 = vadd.f32 %v5893_v52, %v1795_v11  ;;  %v3850_v61 = vadd.f32 %v3849_v63, %v3848_v14  ;;  %v6032_v6 = vpop.permute.xlu1 %1936  ;;  %v4130_v11 = vld [vmem:[%s7117_s0 + $0x18] sm:$0xff]   ;;  %v7337_v63 = vld [vmem:[#allocation43_spill] sm:$0xff] }
 0x3ce   : > { %v3851_v3 = vpop.f32.mrf.mxu1 }
 0x3cf   : > { %v1796_v1 = vmul.f32 %v4328_v5, %v3850_v61  ;;  %3300 = vrot.lane.b32.xlu0 %v4110_v31, %s4627_s26  ;;  %1864 = vrot.lane.b32.xlu1 %v1820_v59, %s4627_s26  ;;  %v4131_v61 = vld [vmem:[%s7117_s0 + $0x18] sm:$0xff]  }
 0x3d0   : > { %v3852_v26 = vpop.f32.mrf.mxu1 }
 0x3d1   : > { %v1821_v38 = vadd.f32 %v5893_v52, %v1796_v1  ;;  %v3853_v28 = vadd.f32 %v3852_v26, %v3851_v3  ;;  %v6049_v36 = vpop.permute.xlu1 %1944  ;;  %v4132_v3 = vld [vmem:[%s7117_s0 + $0x10] sm:$0xff]  }
 0x3d2   : > { %v3854_v22 = vpop.f32.mrf.mxu1  ;;  %v4133_v1 = vld [vmem:[%s7117_s0 + $0x50] sm:$0xff]  }
 0x3d3   : > { %v1797_v19 = vmul.f32 %v4330_v10, %v3853_v28  ;;  %1866 = vrot.lane.b32.xlu0 %v1821_v38, %s4627_s26  ;;  %2460 = vrot.lane.b32.xlu1 %v4111_v2, %s4630_s8  ;;  %v7339_v38 = vld [vmem:[#allocation47_spill] sm:$0xff] }
 0x3d4   : > { %v3855_v7 = vpop.f32.mrf.mxu1 }
 0x3d5   : > { %v1822_v35 = vadd.f32 %v5893_v52, %v1797_v19  ;;  %v3856_v29 = vadd.f32 %v3855_v7, %v3854_v22  ;;  %v6059_v21 = vpop.permute.xlu1 %1952  ;;  %v4136_v22 = vld [vmem:[%s7117_s0 + $0x8] sm:$0xff]  }
 0x3d7   : > { %2474 = vrot.lane.b32.xlu0 %v4112_v47, %s4630_s8  ;;  %1868 = vrot.lane.b32.xlu1 %v1822_v35, %s4627_s26  ;;  %v1798_v15 = vmul.f32 %v4332_v39, %v3856_v29  ;;  %v4137_v47 = vld [vmem:[%s7117_s0 + $0x8] sm:$0xff]   ;;  %v4138_v29 = vld [vmem:[%s7117_s0 + $0x40] sm:$0xff]  }
 0x3d9   : > { %v1823_v44 = vadd.f32 %v5893_v52, %v1798_v15  ;;  %v5997_v52 = vpop.permute.xlu0 %1912  ;;  %v6077_v31 = vpop.permute.xlu1 %1960 }
 0x3db   : > { %3282 = vrot.lane.b32.xlu0 %v4113_v17, %s4627_s26  ;;  %3284 = vrot.lane.b32.xlu1 %v4114_v0, %s4627_s26  ;;  %v7340_v17 = vld [vmem:[#allocation45_spill] sm:$0xff] }
 0x3dd   : > { %v6010_v45 = vpop.permute.xlu0 %1924 }
 0x3df   : > { %2744 = vperm.xlu0 %4049, %v7334_v13   ;;  %2458 = vrot.lane.b32.xlu1 %v4115_v16, %s4630_s8  ;;  %v7341_v16 = vld [vmem:[#allocation48_spill] sm:$0xff] }
 0x3e1   : > { %v6030_v9 = vpop.permute.xlu0 %1932 }
 0x3e3   : > { %1870 = vrot.lane.b32.xlu0 %v1823_v44, %s4627_s26  ;;  %2907 = vperm.xlu1 %4050, %v5781_v18   ;;  %v4117_v18 = vld [vmem:[%s7117_s0 + $0x68] sm:$0xff]   ;;  %v4139_v44 = vld [vmem:[%s7117_s0 + $0x40] sm:$0xff]  }
 0x3e4   : > { %4052 = vset.pattern.permute.xlu0 %v4628_v27 }
 0x3e5   : > { %v6039_v32 = vpop.permute.xlu0 %1940 }
 0x3e7   : > { %2079 = vperm.xlu0 %4052, %v5777_v33   ;;  %3298 = vrot.lane.b32.xlu1 %v4116_v41, %s4627_s26  ;;  %v7342_v41 = vld [vmem:[#allocation49_spill] sm:$0xff] }
 0x3e8   : > { %4051 = vset.pattern.permute.xlu1 %v4626_v50 }
 0x3e9   : > { %v6056_v20 = vpop.permute.xlu0 %1948 }
 0x3eb   : > { %2091 = vperm.xlu0 %4052, %v7334_v13   ;;  %2740 = vperm.xlu1 %4051, %v5787_v23  }
 0x3ed   : > { %v6069_v14 = vpop.permute.xlu0 %1956 }
 0x3ee   : > { %7336 = vst [vmem:[#allocation39_spill] sm:$0xff] %v6069_v14 }
 0x3ef   : > { %2099 = vperm.xlu0 %4052, %v7335_v53   ;;  %2472 = vrot.lane.b32.xlu1 %v4117_v18, %s4630_s8 }
 0x3f0   : > { %4053 = vset.pattern.permute.xlu1 %v4629_v57 }
 0x3f1   : > { %v6081_v59 = vpop.permute.xlu0 %1964 }
 0x3f2   : > { %7338 = vst [vmem:[#allocation41_spill] sm:$0xff] %v6081_v59 }
 0x3f3   : > { %3296 = vrot.lane.b32.xlu0 %v4118_v51, %s4627_s26  ;;  %2456 = vrot.lane.b32.xlu1 %v4119_v25, %s4630_s8  ;;  %v4140_v51 = vld [vmem:[%s7117_s0] sm:$0xff]  }
 0x3f7   : > { %2470 = vrot.lane.b32.xlu0 %v4120_v30, %s4630_s8  ;;  %3280 = vrot.lane.b32.xlu1 %v4121_v56, %s4627_s26  ;;  %v7343_v56 = vld [vmem:[#allocation51_spill] sm:$0xff] }
 0x3fb   : > { %3278 = vrot.lane.b32.xlu0 %v4122_v12, %s4627_s26  ;;  %2454 = vrot.lane.b32.xlu1 %v4123_v40, %s4630_s8 }
 0x3ff   : > { %3292 = vrot.lane.b32.xlu0 %v4124_v8, %s4627_s26  ;;  %2915 = vperm.xlu1 %4053, %v7334_v13  }
 0x403   : > { %2466 = vrot.lane.b32.xlu0 %v4125_v4, %s4630_s8  ;;  %3294 = vrot.lane.b32.xlu1 %v4126_v62, %s4627_s26  ;;  %v3686_v62 = vld [vmem:[%s7118_s1 + $0x2] ss:$4 sm:$0x3] }
 0x404   : > { %4054 = vset.pattern.permute.xlu1 %v4626_v50 }
 0x407   : > { %3274 = vrot.lane.b32.xlu0 %v4127_v48, %s4627_s26  ;;  %2748 = vperm.xlu1 %4054, %v5791_v54   ;;  %v7344_v48 = vld [vmem:[#allocation50_spill] sm:$0xff] }
 0x40b   : > { %3288 = vrot.lane.b32.xlu0 %v4128_v58, %s4627_s26  ;;  %2468 = vrot.lane.b32.xlu1 %v4129_v43, %s4630_s8  ;;  %v7345_v58 = vld [vmem:[#allocation6_spill] sm:$0xff] }
 0x40c   : > { %4055 = vset.pattern.permute.xlu1 %v4629_v57  ;;  %v6195_v43 = vrot.slane %v3686_v62, %v7345_v58 }
 0x40f   : > { %2103 = vperm.xlu0 %4052, %v7337_v63   ;;  %2452 = vrot.lane.b32.xlu1 %v4130_v11, %s4630_s8 }
 0x411   : > { %v1841_v5 = vpop.permute.xlu1 %1840 }
 0x412   : > { %1889 = vst.msk [vmem:[%s5346_s10] sm:$0xff] %vm1888_vm1, %v1841_v5 }
 0x413   : > { %4057 = vset.pattern.permute.xlu0 %v4629_v57  ;;  %3276 = vrot.lane.b32.xlu1 %v4131_v61, %s4627_s26  ;;  %v7346_v61 = vld [vmem:[#allocation5_spill] sm:$0xff] }
 0x414   : > { %2903 = vperm.xlu0 %4057, %v5777_v33   ;;  %v4134_v33 = vld [vmem:[%s7117_s0] sm:$0xff]   ;;  %v6198_v5 = vrot.slane %v3686_v62, %v7346_v61 }
 0x415   : > { %v1843_v55 = vpop.permute.xlu0 %1842 }
 0x416   : > { %1890 = vst.msk [vmem:[%s5346_s10 + $0x8] sm:$0xff] %vm1888_vm1, %v1843_v55 }
 0x417   : > { %2450 = vrot.lane.b32.xlu1 %v4132_v3, %s4630_s8  ;;  %v1985_v3 = vadd.f32 %v6195_v43, %v5997_v52 }
 0x418   : > { %2911 = vperm.xlu0 %4057, %v5787_v23  }
 0x41b   : > { %2923 = vperm.xlu1 %4055, %v7335_v53  }
 0x41c   : > { %2919 = vperm.xlu0 %4057, %v5791_v54   ;;  %v4135_v54 = vld [vmem:[%s7117_s0 + $0x48] sm:$0xff]  }
 0x41d   : > { %v1847_v2 = vpop.permute.xlu0 %1846 }
 0x41e   : > { %1892 = vst.msk [vmem:[%s5346_s10 + $0x18] sm:$0xff] %vm1888_vm1, %v1847_v2  ;;  %v6108_v26 = vpop.permute.xlu1 %1968  ;;  %v2017_v2 = vmul.f32 0.2, %v1985_v3 }
 0x41f   : > { %3290 = vrot.lane.b32.xlu1 %v4133_v1, %s4627_s26  ;;  %v1986_v1 = vadd.f32 %v6198_v5, %v5990_v46 }
 0x420   : > { %2446 = vrot.lane.b32.xlu0 %v4134_v33, %s4630_s8  ;;  %4056 = vset.pattern.permute.xlu1 %v4626_v50  ;;  %v1987_v33 = vadd.f32 %v6195_v43, %v5990_v46 }
 0x422   : > { %v1845_v23 = vpop.permute.xlu1 %1844 }
 0x423   : > { %1891 = vst.msk [vmem:[%s5346_s10 + $0x10] sm:$0xff] %vm1888_vm1, %v1845_v23  ;;  %2756 = vperm.xlu1 %4056, %v7337_v63  }
 0x424   : > { %2931 = vperm.xlu0 %4057, %v7339_v38  }
 0x425   : > { %v1851_v28 = vpop.permute.xlu0 %1850 }
 0x426   : > { %1894 = vst.msk [vmem:[%s5346_s10 + $0x28] sm:$0xff] %vm1888_vm1, %v1851_v28  ;;  %v6122_v10 = vpop.permute.xlu1 %2083  ;;  %v2019_v28 = vmul.f32 0.2, %v1987_v33 }
 0x427   : > { %2464 = vrot.lane.b32.xlu1 %v4135_v54, %s4630_s8 }
 0x428   : > { %4060 = vset.pattern.permute.xlu0 %v4626_v50  ;;  %4058 = vset.pattern.permute.xlu1 %v4628_v27 }
 0x429   : > { %2752 = vperm.xlu0 %4060, %v7335_v53  }
 0x42a   : > { %v1849_v19 = vpop.permute.xlu1 %1848 }
 0x42b   : > { %1893 = vst.msk [vmem:[%s5346_s10 + $0x20] sm:$0xff] %vm1888_vm1, %v1849_v19  ;;  %2448 = vrot.lane.b32.xlu1 %v4136_v22, %s4630_s8  ;;  %v2049_v22 = vmax.f32 %v1985_v3, %v2017_v2  ;;  %v1982_v19 = vadd.f32 %v6198_v5, %v5979_v49 }
 0x42d   : > { %2760 = vperm.xlu0 %4060, %v7339_v38   ;;  %v1855_v35 = vpop.permute.xlu0 %1854 }
 0x42e   : > { %1896 = vst.msk [vmem:[%s5346_s10 + $0x38] sm:$0xff] %vm1888_vm1, %v1855_v35  ;;  %v6140_v7 = vpop.permute.xlu1 %2087 }
 0x42f   : > { %3272 = vrot.lane.b32.xlu1 %v4137_v47, %s4627_s26  ;;  %v1983_v47 = vadd.f32 %v6195_v43, %v5979_v49 }
 0x431   : > { %2764 = vperm.xlu0 %4060, %v7340_v17  }
 0x432   : > { %v1853_v0 = vpop.permute.xlu1 %1852 }
 0x433   : > { %1895 = vst.msk [vmem:[%s5346_s10 + $0x30] sm:$0xff] %vm1888_vm1, %v1853_v0  ;;  %2107 = vperm.xlu1 %4058, %v7339_v38   ;;  %v2018_v38 = vmul.f32 0.2, %v1986_v1  ;;  %v2145_v0 = vsub.f32 %v2049_v22, %v6122_v10 }
 0x435   : > { %2772 = vperm.xlu0 %4060, %v7341_v16  }
 0x436   : > { %v6151_v39 = vpop.permute.xlu1 %2095 }
 0x437   : > { %2462 = vrot.lane.b32.xlu1 %v4138_v29, %s4630_s8  ;;  %v2051_v29 = vmax.f32 %v1987_v33, %v2019_v28 }
 0x438   : > { %4059 = vset.pattern.permute.xlu1 %v4629_v57 }
 0x439   : > { %2780 = vperm.xlu0 %4060, %v5829_v60  }
 0x43a   : > { %v1857_v15 = vpop.permute.xlu1 %1856  ;;  %v6156_v13 = vpop.permute.xlu0 %2736 }
 0x43b   : > { %1897 = vst.msk [vmem:[%s5346_s10 + $0x40] sm:$0xff] %vm1888_vm1, %v1857_v15  ;;  %2927 = vperm.xlu1 %4059, %v7337_v63   ;;  %v2014_v15 = vmul.f32 0.2, %v1982_v19 }
 0x43d   : > { %4067 = vset.pattern.permute.xlu0 %v4628_v27  ;;  %v2046_v62 = vmax.f32 %v1982_v19, %v2014_v15 }
 0x43e   : > { %2115 = vperm.xlu0 %4067, %v7342_v41   ;;  %v6166_v18 = vpop.permute.xlu1 %2732  ;;  %v1859_v53 = vpop.permute.xlu0 %1858 }
 0x43f   : > { %1898 = vst.msk [vmem:[%s5346_s10 + $0x48] sm:$0xff] %vm1888_vm1, %v1859_v53  ;;  %3286 = vrot.lane.b32.xlu1 %v4139_v44, %s4627_s26  ;;  %v2015_v44 = vmul.f32 0.2, %v1983_v47  ;;  %v1989_v53 = vadd.f32 %v6195_v43, %v5999_v37 }
 0x440   : > { %4061 = vset.pattern.permute.xlu1 %v4626_v50 }
 0x442   : > { %2123 = vperm.xlu0 %4067, %v5833_v24   ;;  %v1861_v25 = vpop.permute.xlu1 %1860  ;;  %v1863_v30 = vpop.permute.xlu0 %1862 }
 0x443   : > { %1899 = vst.msk [vmem:[%s5346_s10 + $0x50] sm:$0xff] %vm1888_vm1, %v1861_v25  ;;  %1900 = vst.msk [vmem:[%s5346_s10 + $0x58] sm:$0xff] %vm1888_vm1, %v1863_v30  ;;  %3270 = vrot.lane.b32.xlu1 %v4140_v51, %s4627_s26  ;;  %v2147_v51 = vsub.f32 %v2051_v29, %v6140_v7 }
 0x446   : > { %2131 = vperm.xlu0 %4067, %v7343_v56   ;;  %v2477_v12 = vpop.permute.xlu1 %2476  ;;  %v3301_v40 = vpop.permute.xlu0 %3300 }
 0x447   : > { %2768 = vperm.xlu1 %4061, %v7342_v41   ;;  %3857 = vmatprep.subr.bf16.mxu0 %v2477_v12  ;;  %v1992_v12 = vadd.f32 %v6198_v5, %v6020_v42 }
 0x448   : > { %3921 = vmatprep.subr.bf16.mxu1 %v3301_v40  ;;  %v1993_v40 = vadd.f32 %v6195_v43, %v6020_v42 }
 0x449   : > { %v2024_v2 = vmul.f32 0.2, %v1992_v12 }
 0x44a   : > { %4071 = vset.pattern.permute.xlu0 %v4626_v50  ;;  %v1865_v8 = vpop.permute.xlu1 %1864  ;;  %v1867_v4 = vpop.permute.xlu0 %1866 }
 0x44b   : > { %1901 = vst.msk [vmem:[%s5346_s10 + $0x60] sm:$0xff] %vm1888_vm1, %v1865_v8  ;;  %1902 = vst.msk [vmem:[%s5346_s10 + $0x68] sm:$0xff] %vm1888_vm1, %v1867_v4  ;;  %2788 = vperm.xlu0 %4071, %v7344_v48   ;;  %4062 = vset.pattern.permute.xlu1 %v4628_v27  ;;  %v2180_v8 = vmul.f32 1.442695, %v2145_v0  ;;  %v2056_v29 = vmax.f32 %v1992_v12, %v2024_v2  ;;  %v7349_v2 = vld [vmem:[#allocation8_spill] sm:$0xff] }
 0x44c   : > { %2111 = vperm.xlu1 %4062, %v7340_v17  }
 0x44d   : > { %4333 = vpow2.f32 %v2180_v8 }
 0x44e   : > { %v2461_v11 = vpop.permute.xlu1 %2460  ;;  %v2475_v63 = vpop.permute.xlu0 %2474 }
 0x44f   : > { %4074 = vset.pattern.permute.xlu0 %v4628_v27  ;;  %3858 = vmatpush3.bf16.msra.mxu0 %v2461_v11  ;;  %v2021_v11 = vmul.f32 0.2, %v1989_v53 }
 0x450   : > { %2139 = vperm.xlu0 %4074, %v5902_v34   ;;  %4063 = vset.pattern.permute.xlu1 %v4629_v57 }
 0x451   : > { %2935 = vperm.xlu1 %4063, %v7340_v17   ;;  %3859 = vmatprep.subr.bf16.mxu0 %v2475_v63  ;;  %v2050_v17 = vmax.f32 %v1986_v1, %v2018_v38  ;;  %v2184_v63 = vmul.f32 1.442695, %v2147_v51  ;;  %v2053_v19 = vmax.f32 %v1989_v53, %v2021_v11  ;;  %v7347_v11 = vld [vmem:[#allocation10_spill] sm:$0xff] }
 0x452   : > { %v1869_v55 = vpop.permute.xlu1 %1868  ;;  %v3283_v23 = vpop.permute.xlu0 %3282 }
 0x453   : > { %1903 = vst.msk [vmem:[%s5346_s10 + $0x70] sm:$0xff] %vm1888_vm1, %v1869_v55  ;;  %v2146_v49 = vsub.f32 %v2050_v17, %v6140_v7  ;;  %v2047_v7 = vmax.f32 %v1983_v47, %v2015_v44 }
 0x454   : > { %4076 = vset.pattern.permute.xlu0 %v4629_v57 }
 0x455   : > { %2939 = vperm.xlu1 %4063, %v7342_v41   ;;  %v1988_v41 = vadd.f32 %v6198_v5, %v5999_v37  ;;  %v2182_v37 = vmul.f32 1.442695, %v2146_v49 }
 0x456   : > { %v3285_v54 = vpop.permute.xlu1 %3284 }
 0x457   : > { %3922 = vmatpush3.bf16.msra.mxu1 %v3285_v54  ;;  %v2020_v4 = vmul.f32 0.2, %v1988_v41  ;;  %v2025_v54 = vmul.f32 0.2, %v1993_v40  ;;  %4335 = vpow2.f32 %v2182_v37 }
 0x458   : > { %4337 = vpow2.f32 %v2184_v63 }
 0x459   : > { %4064 = vset.pattern.permute.xlu1 %v4626_v50  ;;  %v2052_v28 = vmax.f32 %v1988_v41, %v2020_v4  ;;  %v2057_v15 = vmax.f32 %v1993_v40, %v2025_v54 }
 0x45a   : > { %2776 = vperm.xlu1 %4064, %v5833_v24   ;;  %v2459_v46 = vpop.permute.xlu1 %2458  ;;  %v6220_v35 = vpop.permute.xlu0 %2744 }
 0x45b   : > { %3860 = vmatpush3.bf16.msra.mxu0 %v2459_v46 }
 0x45e   : > { %4065 = vset.pattern.permute.xlu1 %v4628_v27  ;;  %v6230_v25 = vpop.permute.xlu1 %2907  ;;  %v1871_v30 = vpop.permute.xlu0 %1870 }
 0x45f   : > { %1904 = vst.msk [vmem:[%s5346_s10 + $0x78] sm:$0xff] %vm1888_vm1, %v1871_v30  ;;  %2119 = vperm.xlu1 %4065, %v7341_v16  }
 0x462   : > { %v3299_v3 = vpop.permute.xlu1 %3298  ;;  %v2080_v55 = vpop.permute.xlu0 %2079 }
 0x463   : > { %v2142_v1 = vsub.f32 %v2046_v62, %v2080_v55  ;;  %v2143_v33 = vsub.f32 %v2047_v7, %v2080_v55  ;;  %4066 = vset.pattern.permute.xlu1 %v4629_v57  ;;  %3923 = vmatprep.subr.bf16.mxu1 %v3299_v3 }
 0x464   : > { %2943 = vperm.xlu1 %4066, %v7341_v16   ;;  %3924 = vmatpush3.bf16.msra.mxu1 %v3283_v23 }
 0x465   : > { %v2174_v42 = vmul.f32 1.442695, %v2142_v1  ;;  %v2176_v38 = vmul.f32 1.442695, %v2143_v33  ;;  %v7348_v1 = vld [vmem:[#allocation9_spill] sm:$0xff] }
 0x466   : > { %v6241_v22 = vpop.permute.xlu1 %2740  ;;  %v2092_v47 = vpop.permute.xlu0 %2091 }
 0x467   : > { %4339 = vpow2.f32 %v2174_v42  ;;  %v2148_v46 = vsub.f32 %v2052_v28, %v2092_v47  ;;  %v2149_v17 = vsub.f32 %v2053_v19, %v2092_v47  ;;  %v7350_v19 = vld [vmem:[#allocation11_spill] sm:$0xff] }
 0x468   : > { %4341 = vpow2.f32 %v2176_v38  ;;  %2947 = vperm.xlu1 %4066, %v5833_v24   ;;  %v4334_v24 = vpop.eup %4333 }
 0x469   : > { %v2186_v0 = vmul.f32 1.442695, %v2148_v46  ;;  %v2188_v16 = vmul.f32 1.442695, %v2149_v17  ;;  %v4336_v12 = vpop.eup %4335  ;;  %v6254_v54 = vmul.f32 %v4334_v24, %v7349_v2  ;;  %v7351_v46 = vld [vmem:[#allocation12_spill] sm:$0xff] }
 0x46a   : > { %v2473_v23 = vpop.permute.xlu1 %2472  ;;  %v2100_v44 = vpop.permute.xlu0 %2099  ;;  %v6260_v47 = vmul.f32 %v4336_v12, %v7350_v19 }
 0x46b   : > { %4343 = vpow2.f32 %v2186_v0  ;;  %v2152_v49 = vsub.f32 %v2056_v29, %v2100_v44  ;;  %v2153_v41 = vsub.f32 %v2057_v15, %v2100_v44  ;;  %3861 = vmatprep.subr.bf16.mxu0 %v2473_v23  ;;  %v4338_v37 = vpop.eup %4337  ;;  %v3704_v29 = vld [vmem:[%s7118_s1 + $0x3] ss:$4 sm:$0x3]  ;;  %v7352_v44 = vld [vmem:[#allocation14_spill] sm:$0xff] }
 0x46c   : > { %4345 = vpow2.f32 %v2188_v16  ;;  %4068 = vset.pattern.permute.xlu1 %v4626_v50  ;;  %v6263_v17 = vmul.f32 %v4338_v37, %v7351_v46  ;;  %v7356_v37 = vld [vmem:[#allocation20_spill] sm:$0xff] }
 0x46d   : > { %v2194_v53 = vmul.f32 1.442695, %v2152_v49  ;;  %v2196_v51 = vmul.f32 1.442695, %v2153_v41  ;;  %2784 = vperm.xlu1 %4068, %v7343_v56   ;;  %v7353_v41 = vld [vmem:[#allocation13_spill] sm:$0xff] }
 0x46e   : > { %v2457_v30 = vpop.permute.xlu1 %2456  ;;  %v3297_v8 = vpop.permute.xlu0 %3296  ;;  %v2276_v23 = vadd.f32 %v6263_v17, %v6260_v47 }
 0x46f   : > { %4347 = vpow2.f32 %v2194_v53  ;;  %3862 = vmatpush3.bf16.msra.mxu0 %v2457_v30  ;;  %3925 = vmatprep.subr.bf16.mxu1 %v3297_v8  ;;  %v6280_v30 = vrot.slane %v3704_v29, %v7345_v58 }
 0x470   : > { %4349 = vpow2.f32 %v2196_v51 }
 0x471   : > { %4069 = vset.pattern.permute.xlu1 %v4628_v27 }
 0x472   : > { %2127 = vperm.xlu1 %4069, %v5829_v60   ;;  %v3281_v40 = vpop.permute.xlu1 %3280  ;;  %v2471_v4 = vpop.permute.xlu0 %2470 }
 0x473   : > { %3926 = vmatpush3.bf16.msra.mxu1 %v3281_v40  ;;  %3863 = vmatprep.subr.bf16.mxu0 %v2471_v4  ;;  %v7354_v40 = vld [vmem:[#allocation19_spill] sm:$0xff] }
 0x474   : > { %v4340_v62 = vpop.eup %4339 }
 0x475   : > { %v4342_v7 = vpop.eup %4341  ;;  %v6249_v63 = vmul.f32 %v4340_v62, %v7347_v11  ;;  %v6295_v62 = vrot.slane %v3704_v29, %v7346_v61  ;;  %v2807_v61 = vadd.f32 %v6280_v30, %v6166_v18 }
 0x476   : > { %4070 = vset.pattern.permute.xlu1 %v4629_v57  ;;  %v2455_v3 = vpop.permute.xlu1 %2454  ;;  %v3279_v55 = vpop.permute.xlu0 %3278  ;;  %v2239_v33 = vmul.f32 %v4342_v7, %v7348_v1 }
 0x477   : > { %2951 = vperm.xlu1 %4070, %v5829_v60   ;;  %3864 = vmatpush3.bf16.msra.mxu0 %v2455_v3 }
 0x478   : > { %v4344_v42 = vpop.eup %4343  ;;  %v2319_v38 = vpack.c.bf16 %v6254_v54, %v2239_v33  ;;  %v2270_v28 = vadd.f32 %v2239_v33, %v6249_v63 }
 0x479   : > { %v4346_v0 = vpop.eup %4345  ;;  %v6274_v49 = vmul.f32 %v4344_v42, %v7352_v44 }
 0x47a   : > { %2526 = vmatprep.mubr.bf16.mxu0 %v2319_v38  ;;  %2271 = vadd.xlane.f32.xlu0 %v2270_v28  ;;  %v6268_v60 = vpop.permute.xlu1 %2915  ;;  %v3293_v15 = vpop.permute.xlu0 %3292  ;;  %v6277_v53 = vmul.f32 %v4346_v0, %v7353_v41  ;;  %v1984_v28 = vadd.f32 %v6198_v5, %v5997_v52  ;;  %v1990_v0 = vadd.f32 %v6198_v5, %v6010_v45 }
 0x47b   : > { %2955 = vperm.xlu1 %4070, %v7343_v56   ;;  %v2809_v56 = vadd.f32 %v6280_v30, %v6156_v13 }
 0x47c   : > { %v4348_v16 = vpop.eup %4347  ;;  %v2279_v12 = vadd.f32 %v6277_v53, %v6274_v49  ;;  %v2016_v52 = vmul.f32 0.2, %v1984_v28 }
 0x47d   : > { %v4350_v51 = vpop.eup %4349  ;;  %v6289_v4 = vmul.f32 %v4348_v16, %v7354_v40  ;;  %v2841_v3 = vmul.f32 0.2, %v2809_v56  ;;  %v4557_v16 = vld [vmem:[%s4716_s9 + $0x70] sm:$0xff] }
 0x47e   : > { %2277 = vadd.xlane.f32.xlu0 %v2276_v23  ;;  %v3295_v8 = vpop.permute.xlu1 %3294  ;;  %v2467_v24 = vpop.permute.xlu0 %2466  ;;  %v6292_v58 = vmul.f32 %v4350_v51, %v7356_v37  ;;  %v2048_v40 = vmax.f32 %v1984_v28, %v2016_v52  ;;  %v1995_v37 = vadd.f32 %v6195_v43, %v6030_v9 }
 0x47f   : > { %4072 = vset.pattern.permute.xlu1 %v4626_v50  ;;  %3927 = vmatprep.subr.bf16.mxu1 %v3295_v8  ;;  %7355 = vst [vmem:[#allocation40_spill] sm:$0xff] %v6289_v4  ;;  %v1991_v8 = vadd.f32 %v6195_v43, %v6010_v45 }
 0x480   : > { %2792 = vperm.xlu1 %4072, %v5902_v34   ;;  %7357 = vst [vmem:[#allocation46_spill] sm:$0xff] %v6292_v58  ;;  %3928 = vmatpush3.bf16.msra.mxu1 %v3279_v55  ;;  %v2285_v33 = vadd.f32 %v6292_v58, %v6289_v4  ;;  %v2806_v55 = vadd.f32 %v6295_v62, %v6166_v18 }
 0x481   : > { %3929 = vmatprep.subr.bf16.mxu1 %v3293_v15  ;;  %v2839_v15 = vmul.f32 0.2, %v2807_v61  ;;  %v2811_v18 = vadd.f32 %v6280_v30, %v6241_v22  ;;  %v2023_v14 = vmul.f32 0.2, %v1991_v8  ;;  %v2144_v28 = vsub.f32 %v2048_v40, %v6122_v10 }
 0x482   : > { %2280 = vadd.xlane.f32.xlu0 %v2279_v12  ;;  %v2749_v7 = vpop.permute.xlu1 %2748  ;;  %v6297_v50 = vpop.permute.xlu0 %3274  ;;  %v2838_v29 = vmul.f32 0.2, %v2806_v55  ;;  %v2022_v12 = vmul.f32 0.2, %v1990_v0 }
 0x483   : > { %v2871_v59 = vmax.f32 %v2807_v61, %v2839_v15  ;;  %v2055_v15 = vmax.f32 %v1991_v8, %v2023_v14 }
 0x484   : > { %4073 = vset.pattern.permute.xlu1 %v4628_v27  ;;  %v2873_v27 = vmax.f32 %v2809_v56, %v2841_v3  ;;  %v2814_v3 = vadd.f32 %v6295_v62, %v2749_v7  ;;  %v2054_v4 = vmax.f32 %v1990_v0, %v2022_v12 }
 0x485   : > { %2135 = vperm.xlu1 %4073, %v7344_v48   ;;  %v2810_v48 = vadd.f32 %v6295_v62, %v6241_v22  ;;  %v2815_v22 = vadd.f32 %v6280_v30, %v2749_v7  ;;  %v2151_v14 = vsub.f32 %v2055_v15, %v6151_v39 }
 0x486   : > { %2286 = vadd.xlane.f32.xlu0 %v2285_v33  ;;  %v2469_v42 = vpop.permute.xlu1 %2468  ;;  %v6307_v38 = vpop.permute.xlu0 %3288  ;;  %v2969_v56 = vsub.f32 %v2873_v27, %v6230_v25  ;;  %v2843_v33 = vmul.f32 0.2, %v2811_v18  ;;  %v2846_v7 = vmul.f32 0.2, %v2814_v3 }
 0x487   : > { %3865 = vmatprep.subr.bf16.mxu0 %v2469_v42 }
 0x488   : > { %v3004_v44 = vmul.f32 1.442695, %v2969_v56 }
 0x489   : > { %4075 = vset.pattern.permute.xlu1 %v4629_v57  ;;  %v2842_v57 = vmul.f32 0.2, %v2810_v48 }
 0x48a   : > { %2959 = vperm.xlu1 %4075, %v4557_v16   ;;  %v2453_v23 = vpop.permute.xlu1 %2452  ;;  %v6319_v51 = vpop.permute.xlu0 %2103  ;;  %v2870_v16 = vmax.f32 %v2806_v55, %v2838_v29  ;;  %v2875_v29 = vmax.f32 %v2811_v18, %v2843_v33  ;;  %4351 = vpow2.f32 %v3004_v44  ;;  %v2178_v33 = vmul.f32 1.442695, %v2144_v28 }
 0x48b   : > { %3866 = vmatpush3.bf16.msra.mxu0 %v2453_v23  ;;  %v2874_v41 = vmax.f32 %v2810_v48, %v2842_v57  ;;  %v2878_v57 = vmax.f32 %v2814_v3, %v2846_v7  ;;  %v2808_v44 = vadd.f32 %v6295_v62, %v6156_v13  ;;  %v2192_v3 = vmul.f32 1.442695, %v2151_v14 }
 0x48c   : > { %3867 = vmatprep.subr.bf16.mxu0 %v2467_v24  ;;  %v1994_v24 = vadd.f32 %v6198_v5, %v6030_v9  ;;  %v2150_v9 = vsub.f32 %v2054_v4, %v6151_v39  ;;  %v2813_v13 = vadd.f32 %v6280_v30, %v6220_v35 }
 0x48d   : > { %v2840_v7 = vmul.f32 0.2, %v2808_v44 }
 0x48e   : > { %2963 = vperm.xlu1 %4075, %v5902_v34   ;;  %v3277_v42 = vpop.permute.xlu1 %3276  ;;  %v2847_v34 = vmul.f32 0.2, %v2815_v22  ;;  %v2190_v4 = vmul.f32 1.442695, %v2150_v9  ;;  %v2845_v28 = vmul.f32 0.2, %v2813_v13  ;;  %v6373_v9 = vadd.f32 %v6198_v5, %v6059_v21 }
 0x48f   : > { %3930 = vmatpush3.bf16.msra.mxu1 %v3277_v42  ;;  %v2904_v45 = vpop.permute.xlu0 %2903  ;;  %v2026_v42 = vmul.f32 0.2, %v1994_v24  ;;  %v2872_v15 = vmax.f32 %v2808_v44, %v2840_v7 }
 0x490   : > { %v2966_v27 = vsub.f32 %v2870_v16, %v2904_v45  ;;  %v2967_v23 = vsub.f32 %v2871_v59, %v2904_v45  ;;  %v2027_v16 = vmul.f32 0.2, %v1995_v37  ;;  %v2879_v18 = vmax.f32 %v2815_v22, %v2847_v34 }
 0x492   : > { %v2998_v58 = vmul.f32 1.442695, %v2966_v27  ;;  %v3000_v55 = vmul.f32 1.442695, %v2967_v23  ;;  %v2451_v61 = vpop.permute.xlu1 %2450  ;;  %v2059_v8 = vmax.f32 %v1995_v37, %v2027_v16 }
 0x493   : > { %3868 = vmatpush3.bf16.msra.mxu0 %v2451_v61  ;;  %v2912_v52 = vpop.permute.xlu0 %2911 }
 0x494   : > { %4353 = vpow2.f32 %v2998_v58  ;;  %v2970_v56 = vsub.f32 %v2874_v41, %v2912_v52  ;;  %v2971_v59 = vsub.f32 %v2875_v29, %v2912_v52  ;;  %v2058_v58 = vmax.f32 %v1994_v24, %v2026_v42 }
 0x495   : > { %4355 = vpow2.f32 %v3000_v55  ;;  %v2155_v34 = vsub.f32 %v2059_v8, %v6319_v51  ;;  %v2812_v29 = vadd.f32 %v6295_v62, %v6220_v35  ;;  %v6366_v35 = vadd.f32 %v6195_v43, %v6049_v36 }
 0x496   : > { %v3006_v0 = vmul.f32 1.442695, %v2970_v56  ;;  %v3008_v48 = vmul.f32 1.442695, %v2971_v59  ;;  %v6333_v12 = vpop.permute.xlu1 %2923  ;;  %v2154_v22 = vsub.f32 %v2058_v58, %v6319_v51  ;;  %v6358_v56 = vadd.f32 %v6195_v43, %v6032_v6 }
 0x497   : > { %v2920_v10 = vpop.permute.xlu0 %2919  ;;  %v4352_v61 = vpop.eup %4351  ;;  %v2200_v51 = vmul.f32 1.442695, %v2155_v34  ;;  %v6362_v59 = vadd.f32 %v6198_v5, %v6049_v36  ;;  %v2877_v36 = vmax.f32 %v2813_v13, %v2845_v28 }
 0x498   : > { %4357 = vpow2.f32 %v3006_v0  ;;  %v2974_v41 = vsub.f32 %v2878_v57, %v2920_v10  ;;  %v2975_v40 = vsub.f32 %v2879_v18, %v2920_v10  ;;  %v2198_v24 = vmul.f32 1.442695, %v2154_v22 }
 0x499   : > { %4359 = vpow2.f32 %v3008_v48  ;;  %v6377_v0 = vmul.f32 %v4352_v61, %v7349_v2  ;;  %v2844_v48 = vmul.f32 0.2, %v2812_v29  ;;  %v2968_v57 = vsub.f32 %v2872_v15, %v6230_v25 }
 0x49a   : > { %v3014_v45 = vmul.f32 1.442695, %v2974_v41  ;;  %v3016_v27 = vmul.f32 1.442695, %v2975_v40  ;;  %v3291_v23 = vpop.permute.xlu1 %3290  ;;  %4361 = vpow2.f32 %v2178_v33  ;;  %v6391_v25 = vadd.f32 %v6195_v43, %v6059_v21 }
 0x49b   : > { %3931 = vmatprep.subr.bf16.mxu1 %v3291_v23  ;;  %v6339_v39 = vpop.permute.xlu0 %2446  ;;  %v2029_v58 = vmul.f32 0.2, %v6358_v56  ;;  %v6402_v23 = vmul.f32 0.2, %v6362_v59  ;;  %v6405_v21 = vmul.f32 0.2, %v6366_v35  ;;  %v6417_v15 = vadd.f32 %v6198_v5, %v6077_v31 }
 0x49c   : > { %4363 = vpow2.f32 %v3014_v45  ;;  %3932 = vmatpush3.bf16.msra.mxu1 %v6297_v50  ;;  %v6354_v50 = vadd.f32 %v6198_v5, %v6032_v6  ;;  %v3002_v13 = vmul.f32 1.442695, %v2968_v57  ;;  %v6413_v28 = vmul.f32 0.2, %v6391_v25 }
 0x49d   : > { %4365 = vpow2.f32 %v3016_v27  ;;  %3933 = vmatprep.subr.bf16.mxu1 %v6307_v38 }
 0x49e   : > { %4367 = vpow2.f32 %v2190_v4  ;;  %v6346_v37 = vpop.permute.xlu1 %2756  ;;  %v2028_v2 = vmul.f32 0.2, %v6354_v50  ;;  %v2973_v4 = vsub.f32 %v2877_v36, %v6268_v60 }
 0x49f   : > { %4369 = vpow2.f32 %v2192_v3  ;;  %v6348_v55 = vpop.permute.xlu0 %2931  ;;  %v2876_v3 = vmax.f32 %v2812_v29, %v2844_v48 }
 0x4a0   : > { %4371 = vpow2.f32 %v2198_v24  ;;  %v3012_v57 = vmul.f32 1.442695, %v2973_v4 }
 0x4a1   : > { %v4354_v52 = vpop.eup %4353  ;;  %4373 = vpow2.f32 %v2200_v51  ;;  %v2972_v48 = vsub.f32 %v2876_v3, %v6268_v60  ;;  %v2819_v60 = vadd.f32 %v6280_v30, %v6346_v37 }
 0x4a2   : > { %v4356_v38 = vpop.eup %4355  ;;  %v2465_v42 = vpop.permute.xlu1 %2464  ;;  %v6369_v16 = vmul.f32 %v4354_v52, %v7347_v11  ;;  %v7358_v52 = vld [vmem:[#allocation17_spill] sm:$0xff]  ;;  %4375 = vpow2.f32 %v3002_v13 }
 0x4a3   : > { %3869 = vmatprep.subr.bf16.mxu0 %v2465_v42  ;;  %v3063_v6 = vmul.f32 %v4356_v38, %v7348_v1  ;;  %4377 = vpow2.f32 %v3012_v57 }
 0x4a4   : > { %v2753_v18 = vpop.permute.xlu0 %2752 }
 0x4a5   : > { %v4358_v33 = vpop.eup %4357  ;;  %v6381_v11 = vadd.f32 %v6295_v62, %v2753_v18  ;;  %v2817_v14 = vadd.f32 %v6280_v30, %v2753_v18  ;;  %v3143_v10 = vpack.c.bf16 %v6377_v0, %v3063_v6  ;;  %v6386_v44 = vadd.f32 %v3063_v6, %v6369_v16 }
 0x4a6   : > { %v4360_v1 = vpop.eup %4359  ;;  %v2449_v41 = vpop.permute.xlu1 %2448  ;;  %v6394_v40 = vmul.f32 %v4358_v33, %v7350_v19  ;;  %v6408_v19 = vmul.f32 0.2, %v6373_v9  ;;  %v6428_v6 = vadd.f32 %v6195_v43, %v6077_v31  ;;  %v2818_v31 = vadd.f32 %v6295_v62, %v6346_v37 }
 0x4a7   : > { %v2849_v8 = vmul.f32 0.2, %v2817_v14  ;;  %3350 = vmatprep.mubr.bf16.mxu1 %v3143_v10  ;;  %3870 = vmatpush3.bf16.msra.mxu0 %v2449_v41  ;;  %v6399_v45 = vmul.f32 %v4360_v1, %v7351_v46  ;;  %v4362_v27 = vpop.eup %4361  ;;  %v2848_v34 = vmul.f32 0.2, %v6381_v11  ;;  %v2060_v10 = vmax.f32 %v6354_v50, %v2028_v2  ;;  %v7360_v1 = vld [vmem:[#allocation7_spill] sm:$0xff] }
 0x4a8   : > { %v2761_v22 = vpop.permute.xlu0 %2760  ;;  %v2240_v41 = vmul.f32 %v4362_v27, %v7360_v1  ;;  %v3010_v27 = vmul.f32 1.442695, %v2972_v48 }
 0x4a9   : > { %v4364_v7 = vpop.eup %4363  ;;  %v2881_v24 = vmax.f32 %v2817_v14, %v2849_v8  ;;  %v2821_v46 = vadd.f32 %v6280_v30, %v2761_v22  ;;  %v6424_v29 = vadd.f32 %v6399_v45, %v6394_v40  ;;  %v7361_v8 = vld [vmem:[#allocation18_spill] sm:$0xff]  ;;  %v2880_v4 = vmax.f32 %v6381_v11, %v2848_v34 }
 0x4aa   : > { %v4366_v61 = vpop.eup %4365  ;;  %v3273_v51 = vpop.permute.xlu1 %3272  ;;  %v6420_v38 = vmul.f32 %v4364_v7, %v7358_v52  ;;  %v6456_v11 = vadd.f32 %v6295_v62, %v2761_v22  ;;  %v2273_v34 = vadd.f32 %v6254_v54, %v2240_v41  ;;  %4379 = vpow2.f32 %v3010_v27  ;;  %v7363_v27 = vld [vmem:[#allocation22_spill] sm:$0xff] }
 0x4ab   : > { %7359 = vst [vmem:[#allocation42_spill] sm:$0xff] %v6424_v29  ;;  %v4368_v42 = vpop.eup %4367  ;;  %v2853_v36 = vmul.f32 0.2, %v2821_v46  ;;  %3934 = vmatpush3.bf16.msra.mxu1 %v3273_v51  ;;  %v2977_v33 = vsub.f32 %v2881_v24, %v6333_v12  ;;  %v6437_v7 = vmul.f32 %v4366_v61, %v7361_v8  ;;  %v2061_v24 = vmax.f32 %v6358_v56, %v2029_v58 }
 0x4ac   : > { %v4370_v18 = vpop.eup %4369  ;;  %v6432_v14 = vpop.permute.xlu0 %2764  ;;  %v6446_v50 = vmul.f32 %v4368_v42, %v7358_v52  ;;  %v2850_v52 = vmul.f32 0.2, %v2818_v31  ;;  %v2851_v42 = vmul.f32 0.2, %v2819_v60  ;;  %v2976_v48 = vsub.f32 %v2880_v4, %v6333_v12 }
 0x4ad   : > { %v2885_v3 = vmax.f32 %v2821_v46, %v2853_v36  ;;  %v6450_v2 = vadd.f32 %v6437_v7, %v6420_v38  ;;  %v6453_v61 = vmul.f32 %v4370_v18, %v7361_v8  ;;  %v4372_v37 = vpop.eup %4371  ;;  %v3020_v29 = vmul.f32 1.442695, %v2977_v33 }
 0x4ae   : > { %v2108_v51 = vpop.permute.xlu1 %2107  ;;  %v4374_v46 = vpop.eup %4373  ;;  %v6463_v36 = vmul.f32 0.2, %v6417_v15  ;;  %v6466_v18 = vmul.f32 0.2, %v6428_v6  ;;  %v2318_v54 = vpack.c.bf16 %v2240_v41, %v6249_v63  ;;  %v2064_v12 = vmax.f32 %v6362_v59, %v6402_v23 }
 0x4af   : > { %v2156_v13 = vsub.f32 %v2060_v10, %v2108_v51  ;;  %v2157_v56 = vsub.f32 %v2061_v24, %v2108_v51  ;;  %v2981_v22 = vsub.f32 %v2885_v3, %v6348_v55  ;;  %v2282_v8 = vadd.f32 %v6453_v61, %v6446_v50  ;;  %v7362_v3 = vld [vmem:[#allocation21_spill] sm:$0xff] }
 0x4b0   : > { %v6458_v58 = vpop.permute.xlu0 %2772  ;;  %4381 = vpow2.f32 %v3020_v29  ;;  %v2852_v4 = vmul.f32 0.2, %v6456_v11  ;;  %v6479_v51 = vmul.f32 %v4372_v37, %v7362_v3  ;;  %v3018_v63 = vmul.f32 1.442695, %v2976_v48  ;;  %v4376_v48 = vpop.eup %4375 }
 0x4b1   : > { %v2202_v57 = vmul.f32 1.442695, %v2156_v13  ;;  %v2204_v33 = vmul.f32 1.442695, %v2157_v56  ;;  %v6482_v13 = vmul.f32 %v4374_v46, %v7363_v27  ;;  %v2882_v41 = vmax.f32 %v2818_v31, %v2850_v52 }
 0x4b2   : > { %v2463_v10 = vpop.permute.xlu1 %2462  ;;  %2274 = vadd.xlane.f32.xlu1 %v2273_v34  ;;  %v2883_v56 = vmax.f32 %v2819_v60, %v2851_v42  ;;  %v3028_v34 = vmul.f32 1.442695, %v2981_v22  ;;  %v2321_v23 = vpack.c.bf16 %v6277_v53, %v6263_v17  ;;  %v6490_v29 = vadd.f32 %v6198_v5, %v6039_v32 }
 0x4b3   : > { %3871 = vmatprep.subr.bf16.mxu0 %v2463_v10  ;;  %4383 = vpow2.f32 %v2202_v57  ;;  %v6494_v37 = vadd.f32 %v6195_v43, %v6039_v32  ;;  %v2884_v46 = vmax.f32 %v6456_v11, %v2852_v4  ;;  %v2288_v17 = vadd.f32 %v6482_v13, %v6479_v51 }
 0x4b4   : > { %3872 = vmatpush3.bf16.msra.mxu0 %v6339_v39  ;;  %v6476_v24 = vpop.permute.xlu0 %2780  ;;  %4385 = vpow2.f32 %v2204_v33  ;;  %v2065_v39 = vmax.f32 %v6366_v35, %v6405_v21  ;;  %v2068_v53 = vmax.f32 %v6373_v9, %v6408_v19  ;;  %v2069_v35 = vmax.f32 %v6391_v25, %v6413_v28  ;;  %v4378_v28 = vpop.eup %4377 }
 0x4b5   : > { %4387 = vpow2.f32 %v3018_v63  ;;  %v2072_v42 = vmax.f32 %v6417_v15, %v6463_v36  ;;  %v2073_v33 = vmax.f32 %v6428_v6, %v6466_v18  ;;  %v6508_v9 = vmul.f32 0.2, %v6490_v29 }
 0x4b6   : > { %v2928_v59 = vpop.permute.xlu1 %2927  ;;  %2283 = vadd.xlane.f32.xlu1 %v2282_v8  ;;  %4389 = vpow2.f32 %v3028_v34  ;;  %v6511_v25 = vmul.f32 0.2, %v6494_v37  ;;  %v6515_v19 = vadd.f32 %v6198_v5, %v6056_v20  ;;  %v2980_v15 = vsub.f32 %v2884_v46, %v6348_v55  ;;  %v7365_v34 = vld [vmem:[#allocation13_spill] sm:$0xff] }
 0x4b7   : > { %v2978_v31 = vsub.f32 %v2882_v41, %v2928_v59  ;;  %v2979_v60 = vsub.f32 %v2883_v56, %v2928_v59  ;;  %2527 = vmatmul.mubr.bf16.vlgmr.msra.gmra.mxu0 %v2318_v54  ;;  %v6520_v6 = vadd.f32 %v6195_v43, %v6056_v20  ;;  %v6524_v18 = vadd.f32 %v6198_v5, %v6108_v26  ;;  %v7364_v41 = vld [vmem:[#allocation46_spill] sm:$0xff] }
 0x4b8   : > { %2534 = vmatprep.mubr.bf16.mxu0 %v2321_v23  ;;  %v2320_v8 = vpack.c.bf16 %v6274_v49, %v6260_v47  ;;  %v2323_v56 = vpack.c.bf16 %v7364_v41, %v6453_v61  ;;  %v6535_v20 = vadd.f32 %v6195_v43, %v6108_v26  ;;  %v6538_v59 = vmul.f32 %v4378_v28, %v7365_v34  ;;  %v4380_v49 = vpop.eup %4379 }
 0x4b9   : > { %v3022_v21 = vmul.f32 1.442695, %v2978_v31  ;;  %v3024_v52 = vmul.f32 1.442695, %v2979_v60  ;;  %v2116_v32 = vpop.permute.xlu0 %2115  ;;  %v2062_v47 = vmax.f32 %v6490_v29, %v6508_v9  ;;  %v6546_v26 = vadd.f32 %v6295_v62, %v6432_v14  ;;  %v7368_v9 = vld [vmem:[#allocation24_spill] sm:$0xff] }
 0x4ba   : > { %v2160_v11 = vsub.f32 %v2064_v12, %v2116_v32  ;;  %v2161_v57 = vsub.f32 %v2065_v39, %v2116_v32  ;;  %v3287_v22 = vpop.permute.xlu1 %3286  ;;  %2289 = vadd.xlane.f32.xlu1 %v2288_v17  ;;  %v6529_v12 = vmul.f32 %v4376_v48, %v7360_v1  ;;  %v3026_v1 = vmul.f32 1.442695, %v2980_v15  ;;  %v7369_v15 = vld [vmem:[#allocation20_spill] sm:$0xff] }
 0x4bb   : > { %4391 = vpow2.f32 %v3022_v21  ;;  %3935 = vmatprep.subr.bf16.mxu1 %v3287_v22  ;;  %v6550_v60 = vadd.f32 %v6280_v30, %v6432_v14  ;;  %v3145_v29 = vpack.c.bf16 %v6538_v59, %v6399_v45  ;;  %v2063_v17 = vmax.f32 %v6494_v37, %v6511_v25  ;;  %v7366_v14 = vld [vmem:[#allocation23_spill] sm:$0xff]  ;;  %v7367_v45 = vld [vmem:[#allocation40_spill] sm:$0xff] }
 0x4bc   : > { %4393 = vpow2.f32 %v3024_v52  ;;  %v2210_v36 = vmul.f32 1.442695, %v2160_v11  ;;  %v2212_v10 = vmul.f32 1.442695, %v2161_v57  ;;  %v3142_v61 = vpack.c.bf16 %v6529_v12, %v6369_v16 }
 0x4bd   : > { %v2124_v54 = vpop.permute.xlu0 %2123  ;;  %v4382_v31 = vpop.eup %4381  ;;  %v2045_v48 = vmul.f32 0.2, %v6535_v20  ;;  %v2322_v57 = vpack.c.bf16 %v7367_v45, %v6446_v50 }
 0x4be   : > { %4395 = vpow2.f32 %v2210_v36  ;;  %v2164_v55 = vsub.f32 %v2068_v53, %v2124_v54  ;;  %v2165_v4 = vsub.f32 %v2069_v35, %v2124_v54  ;;  %v3271_v63 = vpop.permute.xlu1 %3270  ;;  %v2044_v35 = vmul.f32 0.2, %v6524_v18 }
 0x4bf   : > { %4397 = vpow2.f32 %v2212_v10  ;;  %2535 = vmatmul.mubr.bf16.gmra.mxu0 %v2320_v8  ;;  %3936 = vmatpush3.bf16.msra.mxu1 %v3271_v63  ;;  %v6570_v36 = vmul.f32 %v4382_v31, %v7369_v15 }
 0x4c0   : > { %v2218_v23 = vmul.f32 1.442695, %v2164_v55  ;;  %v2220_v39 = vmul.f32 1.442695, %v2165_v4  ;;  %2542 = vmatprep.mubr.bf16.mxu0 %v2323_v56  ;;  %v4384_v53 = vpop.eup %4383  ;;  %v7370_v55 = vld [vmem:[#allocation14_spill] sm:$0xff]  ;;  %v2076_v34 = vmax.f32 %v6524_v18, %v2044_v35 }
 0x4c1   : > { %v2132_v46 = vpop.permute.xlu0 %2131  ;;  %v4386_v32 = vpop.eup %4385  ;;  %v6559_v11 = vmul.f32 %v4384_v53, %v7366_v14  ;;  %v6577_v4 = vmul.f32 %v4380_v49, %v7370_v55 }
 0x4c2   : > { %4399 = vpow2.f32 %v2218_v23  ;;  %v2168_v16 = vsub.f32 %v2072_v42, %v2132_v46  ;;  %v2169_v21 = vsub.f32 %v2073_v33, %v2132_v46  ;;  %v2769_v52 = vpop.permute.xlu1 %2768  ;;  %3351 = vmatmul.mubr.bf16.vlgmr.msra.gmra.mxu1 %v3142_v61  ;;  %v2253_v25 = vmul.f32 %v4386_v32, %v7368_v9  ;;  %v4388_v10 = vpop.eup %4387 }
 0x4c3   : > { %4401 = vpow2.f32 %v2220_v39  ;;  %3358 = vmatprep.mubr.bf16.mxu1 %v3145_v29  ;;  %v2854_v42 = vmul.f32 0.2, %v6546_v26  ;;  %v2855_v33 = vmul.f32 0.2, %v6550_v60  ;;  %v6567_v28 = vadd.f32 %v6295_v62, %v2769_v52  ;;  %v4390_v63 = vpop.eup %4389 }
 0x4c4   : > { %4403 = vpow2.f32 %v3026_v1  ;;  %v2226_v37 = vmul.f32 1.442695, %v2168_v16  ;;  %v2228_v22 = vmul.f32 1.442695, %v2169_v21  ;;  %v2291_v54 = vadd.f32 %v2253_v25, %v6559_v11 }
 0x4c5   : > { %v2325_v8 = vpack.c.bf16 %v2253_v25, %v6482_v13  ;;  %v2825_v41 = vadd.f32 %v6280_v30, %v2769_v52  ;;  %v2077_v1 = vmax.f32 %v6535_v20, %v2045_v48  ;;  %v3144_v13 = vpack.c.bf16 %v6577_v4, %v6394_v40 }
 0x4c6   : > { %4405 = vpow2.f32 %v2226_v37  ;;  %v6573_v50 = vpop.permute.xlu0 %2788  ;;  %2292 = vadd.xlane.f32.xlu0 %v2291_v54  ;;  %v2856_v31 = vmul.f32 0.2, %v6567_v28  ;;  %v3147_v46 = vpack.c.bf16 %v6570_v36, %v6437_v7  ;;  %v2886_v29 = vmax.f32 %v6546_v26, %v2854_v42  ;;  %v7371_v7 = vld [vmem:[#allocation19_spill] sm:$0xff] }
 0x4c7   : > { %4407 = vpow2.f32 %v2228_v22  ;;  %v2112_v56 = vpop.permute.xlu1 %2111  ;;  %2543 = vmatmul.mubr.bf16.gmra.mxu0 %v2322_v57  ;;  %v2887_v18 = vmax.f32 %v6550_v60, %v2855_v33  ;;  %v2857_v40 = vmul.f32 0.2, %v2825_v41  ;;  %v2324_v21 = vpack.c.bf16 %v6559_v11, %v6479_v51  ;;  %v7373_v22 = vld [vmem:[#allocation28_spill] sm:$0xff] }
 0x4c8   : > { %v4392_v23 = vpop.eup %4391  ;;  %v2158_v39 = vsub.f32 %v2062_v47, %v2112_v56  ;;  %v2159_v61 = vsub.f32 %v2063_v17, %v2112_v56  ;;  %2550 = vmatprep.mubr.bf16.mxu0 %v2325_v8  ;;  %v6596_v52 = vmul.f32 %v4388_v10, %v7371_v7  ;;  %v6599_v26 = vmul.f32 %v4390_v63, %v7368_v9 }
 0x4c9   : > { %v4394_v49 = vpop.eup %4393  ;;  %v6591_v17 = vmul.f32 %v4392_v23, %v7362_v3  ;;  %v7372_v3 = vld [vmem:[#allocation27_spill] sm:$0xff]  ;;  %v2888_v42 = vmax.f32 %v6567_v28, %v2856_v31  ;;  %v2889_v54 = vmax.f32 %v2825_v41, %v2857_v40  ;;  %v7374_v28 = vld [vmem:[#allocation30_spill] sm:$0xff]  ;;  %v2035_v40 = vmul.f32 0.2, %v6520_v6 }
 0x4ca   : > { %v2206_v53 = vmul.f32 1.442695, %v2158_v39  ;;  %v2208_v20 = vmul.f32 1.442695, %v2159_v61  ;;  %3359 = vmatmul.mubr.bf16.gmra.mxu1 %v3144_v13  ;;  %v3075_v47 = vmul.f32 %v4394_v49, %v7363_v27  ;;  %v3146_v56 = vpack.c.bf16 %v6596_v52, %v6420_v38  ;;  %v7375_v41 = vld [vmem:[#allocation15_spill] sm:$0xff] }
 0x4cb   : > { %v4396_v35 = vpop.eup %4395  ;;  %3366 = vmatprep.mubr.bf16.mxu1 %v3147_v46  ;;  %v2140_v16 = vpop.permute.xlu0 %2139 }
 0x4cc   : > { %v4398_v60 = vpop.eup %4397  ;;  %4409 = vpow2.f32 %v2206_v53  ;;  %v2172_v32 = vsub.f32 %v2076_v34, %v2140_v16  ;;  %v2173_v27 = vsub.f32 %v2077_v1, %v2140_v16  ;;  %v2936_v48 = vpop.permute.xlu1 %2935  ;;  %v6602_v45 = vmul.f32 %v4396_v35, %v7372_v3  ;;  %v7376_v53 = vld [vmem:[#allocation33_spill] sm:$0xff] }
 0x4cd   : > { %4411 = vpow2.f32 %v2208_v20  ;;  %v2982_v57 = vsub.f32 %v2886_v29, %v2936_v48  ;;  %v2983_v37 = vsub.f32 %v2887_v18, %v2936_v48  ;;  %v6605_v25 = vmul.f32 %v4398_v60, %v7373_v22 }
 0x4ce   : > { %v2234_v51 = vmul.f32 1.442695, %v2172_v32  ;;  %v2236_v11 = vmul.f32 1.442695, %v2173_v27  ;;  %v6609_v9 = vadd.f32 %v3075_v47, %v6591_v17  ;;  %v3149_v34 = vpack.c.bf16 %v6599_v26, %v3075_v47 }
 0x4cf   : > { %v4400_v33 = vpop.eup %4399  ;;  %v3030_v15 = vmul.f32 1.442695, %v2982_v57  ;;  %v3032_v10 = vmul.f32 1.442695, %v2983_v37  ;;  %2551 = vmatmul.mubr.bf16.gmra.mxu0 %v2324_v21  ;;  %v2297_v8 = vadd.f32 %v6605_v25, %v6602_v45  ;;  %v2826_v18 = vadd.f32 %v6295_v62, %v6458_v58  ;;  %v7377_v21 = vld [vmem:[#allocation34_spill] sm:$0xff] }
 0x4d0   : > { %v4402_v55 = vpop.eup %4401  ;;  %4413 = vpow2.f32 %v2234_v51  ;;  %v2940_v63 = vpop.permute.xlu1 %2939  ;;  %v6617_v1 = vmul.f32 %v4400_v33, %v7374_v28  ;;  %v2034_v35 = vmul.f32 0.2, %v6515_v19  ;;  %v2827_v60 = vadd.f32 %v6280_v30, %v6458_v58 }
 0x4d1   : > { %v4404_v23 = vpop.eup %4403  ;;  %4415 = vpow2.f32 %v2236_v11  ;;  %v2984_v39 = vsub.f32 %v2888_v42, %v2940_v63  ;;  %v2985_v61 = vsub.f32 %v2889_v54, %v2940_v63  ;;  %2298 = vadd.xlane.f32.xlu0 %v2297_v8  ;;  %v6620_v13 = vmul.f32 %v4402_v55, %v7375_v41  ;;  %v7379_v55 = vld [vmem:[#allocation26_spill] sm:$0xff] }
 0x4d2   : > { %4417 = vpow2.f32 %v3030_v15  ;;  %3367 = vmatmul.mubr.bf16.gmra.mxu1 %v3146_v56  ;;  %v6630_v47 = vmul.f32 %v4404_v23, %v7366_v14  ;;  %v2858_v27 = vmul.f32 0.2, %v2826_v18  ;;  %v2066_v57 = vmax.f32 %v6515_v19, %v2034_v35  ;;  %v7378_v15 = vld [vmem:[#allocation25_spill] sm:$0xff] }
 0x4d3   : > { %v4406_v49 = vpop.eup %4405  ;;  %4419 = vpow2.f32 %v3032_v10  ;;  %v3034_v31 = vmul.f32 1.442695, %v2984_v39  ;;  %v3036_v46 = vmul.f32 1.442695, %v2985_v61  ;;  %3374 = vmatprep.mubr.bf16.mxu1 %v3149_v34  ;;  %v2303_v38 = vadd.f32 %v6620_v13, %v6617_v1 }
 0x4d4   : > { %v4408_v29 = vpop.eup %4407  ;;  %v6627_v20 = vmul.f32 %v4406_v49, %v7376_v53  ;;  %v3148_v14 = vpack.c.bf16 %v6630_v47, %v6591_v17  ;;  %v2067_v37 = vmax.f32 %v6520_v6, %v2035_v40  ;;  %v2859_v11 = vmul.f32 0.2, %v2827_v60  ;;  %v7381_v40 = vld [vmem:[#allocation37_spill] sm:$0xff] }
 0x4d5   : > { %4421 = vpow2.f32 %v3034_v31  ;;  %2304 = vadd.xlane.f32.xlu0 %v2303_v38  ;;  %v2777_v16 = vpop.permute.xlu1 %2776  ;;  %v6635_v7 = vmul.f32 %v4408_v29, %v7377_v21  ;;  %v2890_v63 = vmax.f32 %v2826_v18, %v2858_v27  ;;  %v7380_v38 = vld [vmem:[#allocation38_spill] sm:$0xff] }
 0x4d6   : > { %4423 = vpow2.f32 %v3036_v46  ;;  %v2828_v42 = vadd.f32 %v6295_v62, %v2777_v16  ;;  %v2829_v58 = vadd.f32 %v6280_v30, %v2777_v16  ;;  %v2891_v46 = vmax.f32 %v2827_v60, %v2859_v11 }
 0x4d7   : > { %v2309_v32 = vadd.f32 %v6635_v7, %v6627_v20 }
 0x4d8   : > { %v2860_v49 = vmul.f32 0.2, %v2828_v42  ;;  %v2861_v31 = vmul.f32 0.2, %v2829_v58 }
 0x4d9   : > { %v4410_v48 = vpop.eup %4409  ;;  %2310 = vadd.xlane.f32.xlu0 %v2309_v32 }
 0x4da   : > { %v4412_v51 = vpop.eup %4411  ;;  %v2120_v33 = vpop.permute.xlu1 %2119  ;;  %3375 = vmatmul.mubr.bf16.gmra.mxu1 %v3148_v14  ;;  %v2254_v10 = vmul.f32 %v4410_v48, %v7378_v15 }
 0x4db   : > { %v2162_v54 = vsub.f32 %v2066_v57, %v2120_v33  ;;  %v2163_v8 = vsub.f32 %v2067_v37, %v2120_v33  ;;  %v2255_v17 = vmul.f32 %v4412_v51, %v7379_v55  ;;  %v2892_v37 = vmax.f32 %v2828_v42, %v2860_v49  ;;  %v7382_v33 = vld [vmem:[#allocation39_spill] sm:$0xff] }
 0x4dc   : > { %v2326_v56 = vpack.c.bf16 %v6602_v45, %v2254_v10  ;;  %v2893_v51 = vmax.f32 %v2829_v58, %v2861_v31  ;;  %v3097_v58 = vadd.f32 %v6377_v0, %v6529_v12  ;;  %v2831_v49 = vadd.f32 %v6280_v30, %v6476_v24 }
 0x4dd   : > { %v4414_v19 = vpop.eup %4413  ;;  %v2214_v34 = vmul.f32 1.442695, %v2162_v54  ;;  %v2216_v6 = vmul.f32 1.442695, %v2163_v8  ;;  %v2294_v23 = vadd.f32 %v2255_v17, %v2254_v10  ;;  %v2327_v39 = vpack.c.bf16 %v6605_v25, %v2255_v17 }
 0x4de   : > { %v4416_v61 = vpop.eup %4415  ;;  %v6652_v29 = vmul.f32 %v4414_v19, %v7380_v38  ;;  %v2006_v10 = vadd.f32 %v6198_v5, %v7382_v33  ;;  %v3103_v0 = vadd.f32 %v6538_v59, %v6577_v4  ;;  %v7384_v59 = vld [vmem:[#allocation16_spill] sm:$0xff] }
 0x4df   : > { %v4418_v35 = vpop.eup %4417  ;;  %4425 = vpow2.f32 %v2214_v34  ;;  %2295 = vadd.xlane.f32.xlu1 %v2294_v23  ;;  %2558 = vmatprep.mubr.bf16.mxu0 %v2327_v39  ;;  %v2944_v18 = vpop.permute.xlu1 %2943  ;;  %v6655_v45 = vmul.f32 %v4416_v61, %v7381_v40 }
 0x4e0   : > { %v4420_v16 = vpop.eup %4419  ;;  %4427 = vpow2.f32 %v2216_v6  ;;  %v2986_v32 = vsub.f32 %v2890_v63, %v2944_v18  ;;  %v2987_v27 = vsub.f32 %v2891_v46, %v2944_v18  ;;  %2559 = vmatmul.mubr.bf16.gmra.mxu0 %v2326_v56  ;;  %v3078_v25 = vmul.f32 %v4418_v35, %v7378_v15 }
 0x4e1   : > { %v2315_v60 = vadd.f32 %v6655_v45, %v6652_v29  ;;  %v3079_v14 = vmul.f32 %v4420_v16, %v7379_v55  ;;  %v2007_v63 = vadd.f32 %v6195_v43, %v7382_v33  ;;  %v2038_v39 = vmul.f32 0.2, %v2006_v10 }
 0x4e2   : > { %v4422_v48 = vpop.eup %4421  ;;  %v3038_v57 = vmul.f32 1.442695, %v2986_v32  ;;  %v3040_v54 = vmul.f32 1.442695, %v2987_v27  ;;  %v2863_v46 = vmul.f32 0.2, %v2831_v49 }
 0x4e3   : > { %v4424_v11 = vpop.eup %4423  ;;  %2316 = vadd.xlane.f32.xlu0 %v2315_v60  ;;  %v2948_v8 = vpop.permute.xlu1 %2947  ;;  %v6664_v17 = vmul.f32 %v4422_v48, %v7372_v3  ;;  %v6666_v15 = vadd.f32 %v3079_v14, %v3078_v25  ;;  %v2830_v3 = vadd.f32 %v6295_v62, %v6476_v24  ;;  %v2039_v61 = vmul.f32 0.2, %v2007_v63  ;;  %v7383_v60 = vld [vmem:[#allocation29_spill] sm:$0xff] }
 0x4e4   : > { %v2988_v55 = vsub.f32 %v2892_v37, %v2948_v8  ;;  %v2989_v56 = vsub.f32 %v2893_v51, %v2948_v8  ;;  %v3081_v42 = vmul.f32 %v4424_v11, %v7373_v22  ;;  %4429 = vpow2.f32 %v3038_v57 }
 0x4e5   : > { %v3150_v19 = vpack.c.bf16 %v6664_v17, %v3078_v25  ;;  %4431 = vpow2.f32 %v3040_v54  ;;  %v2862_v12 = vmul.f32 0.2, %v2830_v3  ;;  %v2070_v35 = vmax.f32 %v2006_v10, %v2038_v39 }
 0x4e6   : > { %v3042_v34 = vmul.f32 1.442695, %v2988_v55  ;;  %v3044_v6 = vmul.f32 1.442695, %v2989_v56  ;;  %v3151_v23 = vpack.c.bf16 %v3081_v42, %v3079_v14  ;;  %v2071_v18 = vmax.f32 %v2007_v63, %v2039_v61 }
 0x4e7   : > { %3098 = vadd.xlane.f32.xlu0 %v3097_v58  ;;  %v3109_v25 = vadd.f32 %v6570_v36, %v6596_v52  ;;  %v2894_v37 = vmax.f32 %v2830_v3, %v2862_v12  ;;  %v2895_v55 = vmax.f32 %v2831_v49, %v2863_v46  ;;  %v3115_v36 = vadd.f32 %v6599_v26, %v6630_v47 }
 0x4e8   : > { %4433 = vpow2.f32 %v3042_v34  ;;  %3382 = vmatprep.mubr.bf16.mxu1 %v3151_v23  ;;  %v2785_v22 = vpop.permute.xlu1 %2784  ;;  %v7385_v34 = vld [vmem:[#allocation41_spill] sm:$0xff]  ;;  %v3121_v26 = vadd.f32 %v3081_v42, %v6664_v17 }
 0x4e9   : > { %4435 = vpow2.f32 %v3044_v6  ;;  %3383 = vmatmul.mubr.bf16.gmra.mxu1 %v3150_v19  ;;  %v2832_v32 = vadd.f32 %v6295_v62, %v2785_v22  ;;  %v2833_v27 = vadd.f32 %v6280_v30, %v2785_v22  ;;  %v2011_v61 = vadd.f32 %v6195_v43, %v7385_v34 }
 0x4eb   : > { %3104 = vadd.xlane.f32.xlu0 %v3103_v0  ;;  %v2864_v8 = vmul.f32 0.2, %v2832_v32  ;;  %v2865_v63 = vmul.f32 0.2, %v2833_v27 }
 0x4ec   : > { %v4426_v31 = vpop.eup %4425 }
 0x4ed   : > { %v4428_v16 = vpop.eup %4427  ;;  %v2128_v24 = vpop.permute.xlu1 %2127  ;;  %v2258_v14 = vmul.f32 %v4426_v31, %v7383_v60  ;;  %v2896_v3 = vmax.f32 %v2832_v32, %v2864_v8  ;;  %v2897_v39 = vmax.f32 %v2833_v27, %v2865_v63  ;;  %v2043_v32 = vmul.f32 0.2, %v2011_v61  ;;  %v7387_v8 = vld [vmem:[#allocation32_spill] sm:$0xff] }
 0x4ee   : > { %v2166_v48 = vsub.f32 %v2070_v35, %v2128_v24  ;;  %v2167_v57 = vsub.f32 %v2071_v18, %v2128_v24  ;;  %v2259_v4 = vmul.f32 %v4428_v16, %v7384_v59  ;;  %v2834_v27 = vadd.f32 %v6295_v62, %v6573_v50 }
 0x4ef   : > { %3110 = vadd.xlane.f32.xlu0 %v3109_v25  ;;  %v2328_v51 = vpack.c.bf16 %v6617_v1, %v2258_v14 }
 0x4f0   : > { %v2222_v11 = vmul.f32 1.442695, %v2166_v48  ;;  %v2224_v33 = vmul.f32 1.442695, %v2167_v57  ;;  %v2300_v10 = vadd.f32 %v2259_v4, %v2258_v14  ;;  %v2329_v54 = vpack.c.bf16 %v6620_v13, %v2259_v4 }
 0x4f1   : > { %v4430_v56 = vpop.eup %4429  ;;  %v2010_v13 = vadd.f32 %v6198_v5, %v7385_v34  ;;  %v2075_v48 = vmax.f32 %v2011_v61, %v2043_v32  ;;  %v7388_v32 = vld [vmem:[#allocation35_spill] sm:$0xff] }
 0x4f2   : > { %4437 = vpow2.f32 %v2222_v11  ;;  %2301 = vadd.xlane.f32.xlu1 %v2300_v10  ;;  %2566 = vmatprep.mubr.bf16.mxu0 %v2329_v54  ;;  %v2952_v52 = vpop.permute.xlu1 %2951  ;;  %v4432_v1 = vpop.eup %4431  ;;  %v6697_v12 = vmul.f32 %v4430_v56, %v7383_v60  ;;  %v2866_v60 = vmul.f32 0.2, %v2834_v27  ;;  %v7386_v11 = vld [vmem:[#allocation31_spill] sm:$0xff] }
 0x4f3   : > { %4439 = vpow2.f32 %v2224_v33  ;;  %v2990_v58 = vsub.f32 %v2894_v37, %v2952_v52  ;;  %v2991_v19 = vsub.f32 %v2895_v55, %v2952_v52  ;;  %2567 = vmatmul.mubr.bf16.gmra.mxu0 %v2328_v51  ;;  %3116 = vadd.xlane.f32.xlu0 %v3115_v36  ;;  %v6700_v5 = vmul.f32 %v4432_v1, %v7384_v59 }
 0x4f4   : > { %v2898_v1 = vmax.f32 %v2834_v27, %v2866_v60 }
 0x4f5   : > { %v4434_v6 = vpop.eup %4433  ;;  %v3046_v23 = vmul.f32 1.442695, %v2990_v58  ;;  %v3048_v49 = vmul.f32 1.442695, %v2991_v19 }
 0x4f6   : > { %v4436_v47 = vpop.eup %4435  ;;  %v2956_v22 = vpop.permute.xlu1 %2955  ;;  %v3084_v0 = vmul.f32 %v4434_v6, %v7374_v28  ;;  %v2042_v28 = vmul.f32 0.2, %v2010_v13 }
 0x4f7   : > { %v2992_v31 = vsub.f32 %v2896_v3, %v2956_v22  ;;  %v2993_v46 = vsub.f32 %v2897_v39, %v2956_v22  ;;  %3122 = vadd.xlane.f32.xlu0 %v3121_v26  ;;  %v3085_v35 = vmul.f32 %v4436_v47, %v7375_v41  ;;  %4441 = vpow2.f32 %v3046_v23 }
 0x4f8   : > { %v3152_v17 = vpack.c.bf16 %v3084_v0, %v6697_v12  ;;  %4443 = vpow2.f32 %v3048_v49  ;;  %v2835_v41 = vadd.f32 %v6280_v30, %v6573_v50  ;;  %v2074_v14 = vmax.f32 %v2010_v13, %v2042_v28 }
 0x4f9   : > { %v3050_v42 = vmul.f32 1.442695, %v2992_v31  ;;  %v3052_v43 = vmul.f32 1.442695, %v2993_v46  ;;  %v3153_v18 = vpack.c.bf16 %v3085_v35, %v6700_v5  ;;  %v3127_v16 = vadd.f32 %v3085_v35, %v3084_v0 }
 0x4fa   : > { %v2867_v59 = vmul.f32 0.2, %v2835_v41 }
 0x4fb   : > { %4445 = vpow2.f32 %v3050_v42  ;;  %3390 = vmatprep.mubr.bf16.mxu1 %v3153_v18  ;;  %3128 = vadd.xlane.f32.xlu0 %v3127_v16  ;;  %v2793_v24 = vpop.permute.xlu1 %2792 }
 0x4fc   : > { %4447 = vpow2.f32 %v3052_v43  ;;  %3391 = vmatmul.mubr.bf16.gmra.mxu1 %v3152_v17  ;;  %v2836_v4 = vadd.f32 %v6295_v62, %v2793_v24  ;;  %v2837_v37 = vadd.f32 %v6280_v30, %v2793_v24  ;;  %v2899_v62 = vmax.f32 %v2835_v41, %v2867_v59  ;;  %v7389_v24 = vld [vmem:[#allocation36_spill] sm:$0xff] }
 0x4fe   : > { %v2868_v58 = vmul.f32 0.2, %v2836_v4  ;;  %v2869_v19 = vmul.f32 0.2, %v2837_v37 }
 0x4ff   : > { %v4438_v25 = vpop.eup %4437 }
 0x500   : > { %v4440_v57 = vpop.eup %4439  ;;  %v2136_v51 = vpop.permute.xlu1 %2135  ;;  %v2262_v33 = vmul.f32 %v4438_v25, %v7386_v11  ;;  %v2900_v39 = vmax.f32 %v2836_v4, %v2868_v58  ;;  %v2901_v26 = vmax.f32 %v2837_v37, %v2869_v19 }
 0x501   : > { %v2170_v10 = vsub.f32 %v2074_v14, %v2136_v51  ;;  %v2171_v54 = vsub.f32 %v2075_v48, %v2136_v51  ;;  %v2263_v63 = vmul.f32 %v4440_v57, %v7387_v8 }
 0x502   : > { %v2330_v50 = vpack.c.bf16 %v6627_v20, %v2262_v33 }
 0x503   : > { %v2230_v55 = vmul.f32 1.442695, %v2170_v10  ;;  %v2232_v36 = vmul.f32 1.442695, %v2171_v54  ;;  %v2306_v52 = vadd.f32 %v2263_v63, %v2262_v33  ;;  %v2331_v56 = vpack.c.bf16 %v6635_v7, %v2263_v63  ;;  %v7390_v10 = vld [vmem:[#allocation42_spill] sm:$0xff] }
 0x504   : > { %v4442_v34 = vpop.eup %4441 }
 0x505   : > { %4449 = vpow2.f32 %v2230_v55  ;;  %2307 = vadd.xlane.f32.xlu1 %v2306_v52  ;;  %2574 = vmatprep.mubr.bf16.mxu0 %v2331_v56  ;;  %v2960_v30 = vpop.permute.xlu1 %2959  ;;  %v4444_v23 = vpop.eup %4443  ;;  %v3086_v22 = vmul.f32 %v4442_v34, %v7386_v11 }
 0x506   : > { %4451 = vpow2.f32 %v2232_v36  ;;  %v2994_v13 = vsub.f32 %v2898_v1, %v2960_v30  ;;  %v2995_v6 = vsub.f32 %v2899_v62, %v2960_v30  ;;  %2575 = vmatmul.mubr.bf16.gmra.mxu0 %v2330_v50  ;;  %v3087_v46 = vmul.f32 %v4444_v23, %v7387_v8  ;;  %v2272_v50 = vpop.xlane.xlu0 %2271 }
 0x508   : > { %v4446_v20 = vpop.eup %4445  ;;  %v3054_v3 = vmul.f32 1.442695, %v2994_v13  ;;  %v3056_v7 = vmul.f32 1.442695, %v2995_v6 }
 0x509   : > { %v4448_v47 = vpop.eup %4447  ;;  %v2964_v61 = vpop.permute.xlu1 %2963  ;;  %v3088_v49 = vmul.f32 %v4446_v20, %v7376_v53 }
 0x50a   : > { %v2996_v0 = vsub.f32 %v2900_v39, %v2964_v61  ;;  %v2997_v31 = vsub.f32 %v2901_v26, %v2964_v61  ;;  %v3089_v35 = vmul.f32 %v4448_v47, %v7377_v21  ;;  %4453 = vpow2.f32 %v3054_v3  ;;  %v2278_v58 = vpop.xlane.xlu0 %2277 }
 0x50b   : > { %v3154_v17 = vpack.c.bf16 %v3088_v49, %v3086_v22  ;;  %4455 = vpow2.f32 %v3056_v7 }
 0x50c   : > { %v3058_v42 = vmul.f32 1.442695, %v2996_v0  ;;  %v3060_v43 = vmul.f32 1.442695, %v2997_v31  ;;  %v3155_v18 = vpack.c.bf16 %v3089_v35, %v3087_v46  ;;  %v3133_v16 = vadd.f32 %v3089_v35, %v3088_v49 }
 0x50e   : > { %4457 = vpow2.f32 %v3058_v42  ;;  %3398 = vmatprep.mubr.bf16.mxu1 %v3155_v18  ;;  %3134 = vadd.xlane.f32.xlu0 %v3133_v16  ;;  %v2281_v30 = vpop.xlane.xlu0 %2280 }
 0x50f   : > { %4459 = vpow2.f32 %v3060_v43  ;;  %3399 = vmatmul.mubr.bf16.gmra.mxu1 %v3154_v17 }
 0x510   : > { %4461 = vrcp.f32 %v2272_v50 }
 0x511   : > { %4463 = vrcp.f32 %v2278_v58 }
 0x512   : > { %v4450_v53 = vpop.eup %4449  ;;  %v2287_v3 = vpop.xlane.xlu0 %2286 }
 0x513   : > { %v4452_v28 = vpop.eup %4451  ;;  %v2266_v27 = vmul.f32 %v4450_v53, %v7388_v32 }
 0x514   : > { %v2267_v41 = vmul.f32 %v4452_v28, %v7389_v24 }
 0x515   : > { %v2332_v21 = vpack.c.bf16 %v6652_v29, %v2266_v27 }
 0x516   : > { %v2312_v25 = vadd.f32 %v2267_v41, %v2266_v27  ;;  %v2333_v60 = vpack.c.bf16 %v6655_v45, %v2267_v41 }
 0x517   : > { %v4454_v14 = vpop.eup %4453 }
 0x518   : > { %2313 = vadd.xlane.f32.xlu1 %v2312_v25  ;;  %2582 = vmatprep.mubr.bf16.mxu0 %v2333_v60  ;;  %v4456_v48 = vpop.eup %4455  ;;  %v3090_v37 = vmul.f32 %v4454_v14, %v7388_v32 }
 0x519   : > { %2583 = vmatmul.mubr.bf16.gmra.mxu0 %v2332_v21  ;;  %v3091_v51 = vmul.f32 %v4456_v48, %v7389_v24 }
 0x51b   : > { %v4458_v57 = vpop.eup %4457  ;;  %v3136_v54 = vadd.f32 %v3091_v51, %v3090_v37 }
 0x51c   : > { %v4460_v59 = vpop.eup %4459  ;;  %3095 = vadd.xlane.f32.xlu1 %v6386_v44  ;;  %v3092_v4 = vmul.f32 %v4458_v57, %v7380_v38  ;;  %v3124_v44 = vadd.f32 %v6700_v5, %v6697_v12  ;;  %v3130_v38 = vadd.f32 %v3087_v46, %v3086_v22 }
 0x51d   : > { %v3093_v29 = vmul.f32 %v4460_v59, %v7381_v40  ;;  %v3721_v40 = vld [vmem:[%s7120_s3] ss:$0 sm:$0xff]  ;;  %v4462_v50 = vpop.eup %4461 }
 0x51e   : > { %v3156_v11 = vpack.c.bf16 %v3092_v4, %v3090_v37 }
 0x51f   : > { %v3157_v33 = vpack.c.bf16 %v3093_v29, %v3091_v51  ;;  %v3139_v45 = vadd.f32 %v3093_v29, %v3092_v4 }
 0x520   : > { %3101 = vadd.xlane.f32.xlu1 %v7390_v10 }
 0x521   : > { %3406 = vmatprep.mubr.bf16.mxu1 %v3157_v33  ;;  %3140 = vadd.xlane.f32.xlu0 %v3139_v45 }
 0x522   : > { %3407 = vmatmul.mubr.bf16.gmra.mxu1 %v3156_v11 }
 0x524   : > { %3107 = vadd.xlane.f32.xlu1 %v6450_v2 }
 0x528   : > { %3113 = vadd.xlane.f32.xlu1 %v6609_v9 }
 0x52c   : > { %3119 = vadd.xlane.f32.xlu1 %v6666_v15 }
 0x530   : > { %3125 = vadd.xlane.f32.xlu1 %v3124_v44 }
 0x534   : > { %3131 = vadd.xlane.f32.xlu1 %v3130_v38 }
 0x537   : > { %3453 = vrot.lane.b32.xlu0 %v3721_v40, %s4627_s26  ;;  %s3567_s26 = sshll.u32 %s5346_s10, 4  ;;  %s7071_s26 = int_to_ptr.vmem [resolvable:$true] %s3567_s26 }
 0x538   : > { %3137 = vadd.xlane.f32.xlu1 %v3136_v54  ;;  %p4565_p1 = scmp.lt.s32.totalorder %s7071_s26, %s4563_s12 }
 0x53b   : > { %v2275_v8 = vpop.xlane.xlu1 %2274 }
 0x53c   : > { %4465 = vrcp.f32 %v2275_v8 }
 0x53f   : > { %v2284_v56 = vpop.xlane.xlu1 %2283 }
 0x540   : > { %4467 = vrcp.f32 %v2284_v56 }
 0x541   : > { %4469 = vrcp.f32 %v2281_v30  ;;  %v4464_v30 = vpop.eup %4463 }
 0x543   : > { %v2290_v62 = vpop.xlane.xlu1 %2289 }
 0x544   : > { %4471 = vrcp.f32 %v2290_v62 }
 0x545   : > { %4473 = vrcp.f32 %v2287_v3 }
 0x549   : > { %2629 = vrot.lane.b32.xlu1 %v3721_v40, %s4630_s8 }
 0x54f   : > { %v2293_v7 = vpop.xlane.xlu0 %2292 }
 0x55a   : > { %v6775_v0 = vpop.xlane.xlu0 %2298 }
 0x55e   : > { %v6785_v43 = vpop.xlane.xlu0 %2304 }
 0x562   : > { %v6795_v32 = vpop.xlane.xlu0 %2310 }
 0x568   : > { %v2296_v6 = vpop.xlane.xlu1 %2295 }
 0x569   : > { %4475 = vrcp.f32 %v2296_v6  ;;  %v4466_v6 = vpop.eup %4465 }
 0x56a   : > { %4477 = vrcp.f32 %v2293_v7 }
 0x56c   : > { %v6805_v25 = vpop.xlane.xlu0 %2316 }
 0x570   : > { %v6813_v59 = vpop.xlane.xlu0 %3098 }
 0x574   : > { %v6825_v33 = vpop.xlane.xlu0 %3104 }
 0x577   : > { %v6739_v2 = vpop.f32.mrf.mxu0 }
 0x578   : > { %v6838_v56 = vpop.xlane.xlu0 %3110 }
 0x579   : > { %v6741_v9 = vpop.f32.mrf.mxu0 }
 0x57a   : > { %v3875_v38 = vadd.f32 %v6741_v9, %v6739_v2 }
 0x57b   : > { %v6743_v15 = vpop.f32.mrf.mxu0  ;;  %v2302_v39 = vpop.xlane.xlu1 %2301 }
 0x57c   : > { %4479 = vrcp.f32 %v2302_v39 }
 0x57d   : > { %v6745_v12 = vpop.f32.mrf.mxu0 }
 0x57e   : > { %v3878_v62 = vadd.f32 %v6745_v12, %v6743_v15  ;;  %v6853_v15 = vpop.xlane.xlu0 %3116 }
 0x57f   : > { %v6747_v5 = vpop.f32.mrf.mxu0 }
 0x581   : > { %v3880_v63 = vpop.f32.mrf.mxu0 }
 0x582   : > { %v6749_v55 = vpop.f32.mrf.mxu1  ;;  %v3881_v40 = vadd.f32 %v3880_v63, %v6747_v5 }
 0x583   : > { %v6751_v36 = vpop.f32.mrf.mxu0 }
 0x584   : > { %v6753_v52 = vpop.f32.mrf.mxu1 }
 0x585   : > { %v6755_v19 = vpop.f32.mrf.mxu0 }
 0x586   : > { %v6757_v1 = vpop.f32.mrf.mxu1  ;;  %v3884_v12 = vadd.f32 %v6755_v19, %v6751_v36 }
 0x587   : > { %v6759_v34 = vpop.f32.mrf.mxu0 }
 0x588   : > { %v6761_v13 = vpop.f32.mrf.mxu1 }
 0x589   : > { %v3886_v23 = vpop.f32.mrf.mxu0 }
 0x58a   : > { %v6763_v20 = vpop.f32.mrf.mxu1  ;;  %v3887_v2 = vadd.f32 %v3886_v23, %v6759_v34 }
 0x58b   : > { %v6765_v26 = vpop.f32.mrf.mxu0 }
 0x58c   : > { %v6767_v47 = vpop.f32.mrf.mxu1 }
 0x58d   : > { %v6771_v49 = vpop.f32.mrf.mxu0 }
 0x58e   : > { %v6769_v61 = vpop.xlane.xlu1 %2307  ;;  %v6773_v22 = vpop.f32.mrf.mxu1  ;;  %v3890_v19 = vadd.f32 %v6771_v49, %v6765_v26 }
 0x58f   : > { %v6777_v31 = vpop.f32.mrf.mxu0  ;;  %4481 = vrcp.f32 %v6769_v61 }
 0x590   : > { %v6781_v35 = vpop.f32.mrf.mxu1  ;;  %4483 = vrcp.f32 %v6775_v0 }
 0x591   : > { %v3892_v17 = vpop.f32.mrf.mxu0  ;;  %4485 = vrcp.f32 %v6785_v43 }
 0x592   : > { %v6787_v18 = vpop.f32.mrf.mxu1  ;;  %v3893_v23 = vadd.f32 %v3892_v17, %v6777_v31  ;;  %4487 = vrcp.f32 %v6795_v32 }
 0x593   : > { %v6789_v16 = vpop.f32.mrf.mxu0 }
 0x594   : > { %v6793_v28 = vpop.f32.mrf.mxu1 }
 0x595   : > { %v6797_v27 = vpop.f32.mrf.mxu0 }
 0x596   : > { %v6801_v41 = vpop.f32.mrf.mxu1 }
 0x597   : > { %7391 = vst [vmem:[#allocation44_spill] sm:$0xff] %v6801_v41  ;;  %v2608_v41 = vmul.f32 %v4466_v6, %v3878_v62 }
 0x598   : > { %v6809_v14 = vpop.f32.mrf.mxu1 }
 0x599   : > { %7392 = vst [vmem:[#allocation43_spill] sm:$0xff] %v6809_v14  ;;  %v2609_v14 = vmul.f32 %v4464_v30, %v3881_v40 }
 0x59a   : > { %v6815_v4 = vpop.f32.mrf.mxu1 }
 0x59c   : > { %v6821_v29 = vpop.f32.mrf.mxu1 }
 0x59e   : > { %v6831_v44 = vpop.f32.mrf.mxu1 }
 0x59f   : > { %7393 = vst [vmem:[#allocation47_spill] sm:$0xff] %v6831_v44  ;;  %v2607_v44 = vmul.f32 %v4462_v50, %v3875_v38  ;;  %v6877_v50 = vpop.xlane.xlu0 %3122 }
 0x5a0   : > { %v6803_v21 = vpop.f32.mrf.mxu0  ;;  %v6840_v58 = vpop.f32.mrf.mxu1 }
 0x5a1   : > { %v6779_v46 = vpop.xlane.xlu1 %2313  ;;  %7395 = vst [vmem:[#allocation48_spill] sm:$0xff] %v6840_v58 }
 0x5a2   : > { %v3898_v48 = vpop.f32.mrf.mxu0  ;;  %4489 = vrcp.f32 %v6779_v46 }
 0x5a3   : > { %v3899_v40 = vadd.f32 %v3898_v48, %v6803_v21  ;;  %v3896_v48 = vadd.f32 %v6797_v27, %v6789_v16 }
 0x5a4   : > { %v6817_v37 = vpop.f32.mrf.mxu0 }
 0x5a5   : > { %v6783_v42 = vpop.xlane.xlu1 %3095 }
 0x5a6   : > { %v6823_v11 = vpop.f32.mrf.mxu0  ;;  %4491 = vrcp.f32 %v6783_v42 }
 0x5a7   : > { %4493 = vrcp.f32 %v6805_v25 }
 0x5a9   : > { %v6791_v53 = vpop.xlane.xlu1 %3101  ;;  %v6845_v9 = vpop.f32.mrf.mxu1 }
 0x5aa   : > { %4495 = vrcp.f32 %v6791_v53 }
 0x5ab   : > { %v6861_v39 = vpop.f32.mrf.mxu1 }
 0x5ad   : > { %v6799_v24 = vpop.xlane.xlu1 %3107  ;;  %v6872_v0 = vpop.f32.mrf.mxu1 }
 0x5ae   : > { %4497 = vrcp.f32 %v6799_v24 }
 0x5af   : > { %v6886_v32 = vpop.f32.mrf.mxu1 }
 0x5b1   : > { %v6807_v60 = vpop.xlane.xlu1 %3113 }
 0x5b3   : > { %v6827_v45 = vpop.f32.mrf.mxu0 }
 0x5b5   : > { %v6811_v57 = vpop.xlane.xlu1 %3119  ;;  %v3904_v54 = vpop.f32.mrf.mxu0 }
 0x5b6   : > { %v3905_v30 = vadd.f32 %v3904_v54, %v6827_v45  ;;  %v3902_v45 = vadd.f32 %v6823_v11, %v6817_v37 }
 0x5b7   : > { %v6847_v5 = vpop.f32.mrf.mxu0 }
 0x5b9   : > { %v6819_v51 = vpop.xlane.xlu1 %3125  ;;  %v3907_v7 = vpop.f32.mrf.mxu0 }
 0x5ba   : > { %v3908_v53 = vadd.f32 %v3907_v7, %v6847_v5 }
 0x5bc   : > { %v6891_v16 = vpop.f32.mrf.mxu1 }
 0x5bd   : > { %v6829_v10 = vpop.xlane.xlu1 %3131 }
 0x5c1   : > { %v6836_v8 = vpop.xlane.xlu1 %3137 }
 0x5c2   : > { %7394 = vst [vmem:[#allocation45_spill] sm:$0xff] %v6836_v8  ;;  %v4468_v8 = vpop.eup %4467  ;;  %4499 = vrcp.f32 %v6813_v59 }
 0x5c3   : > { %v2611_v34 = vmul.f32 %v4468_v8, %v3887_v2 }
 0x5c5   : > { %v6849_v63 = vpop.permute.xlu1 %2629 }
 0x5c6   : > { %v2632_v3 = vadd.f32 %v6849_v63, %v2607_v44  ;;  %v2634_v58 = vadd.f32 %v6849_v63, %v2609_v14  ;;  %v4470_v14 = vpop.eup %4469  ;;  %v2633_v44 = vadd.f32 %v6849_v63, %v2608_v41  ;;  %v2636_v38 = vadd.f32 %v6849_v63, %v2611_v34  ;;  %v3909_v61 = vpop.f32.mrf.mxu0 }
 0x5c7   : > { %v4472_v36 = vpop.eup %4471  ;;  %v2610_v31 = vmul.f32 %v4470_v14, %v3884_v12  ;;  %v6898_v34 = vpop.xlane.xlu0 %3128  ;;  %4501 = vrcp.f32 %v6807_v60 }
 0x5c8   : > { %2664 = vrot.lane.b32.xlu1 %v2632_v3, %s4630_s8  ;;  %2668 = vrot.lane.b32.xlu0 %v2634_v58, %s4630_s8  ;;  %v2613_v17 = vmul.f32 %v4472_v36, %v3893_v23  ;;  %v4474_v41 = vpop.eup %4473  ;;  %v3910_v21 = vpop.f32.mrf.mxu0  ;;  %4503 = vrcp.f32 %v6825_v33 }
 0x5c9   : > { %v2635_v26 = vadd.f32 %v6849_v63, %v2610_v31  ;;  %v4476_v49 = vpop.eup %4475  ;;  %v2612_v58 = vmul.f32 %v4474_v41, %v3890_v19  ;;  %v3911_v2 = vadd.f32 %v3910_v21, %v3909_v61  ;;  %v3939_v21 = vadd.f32 %v6753_v52, %v6749_v55 }
 0x5ca   : > { %v2638_v8 = vadd.f32 %v6849_v63, %v2613_v17  ;;  %v2615_v43 = vmul.f32 %v4476_v49, %v3899_v40  ;;  %v4478_v62 = vpop.eup %4477  ;;  %v3912_v42 = vpop.f32.mrf.mxu0  ;;  %4505 = vrcp.f32 %v6811_v57  ;;  %v3945_v55 = vadd.f32 %v6767_v47, %v6763_v20 }
 0x5cb   : > { %v2637_v46 = vadd.f32 %v6849_v63, %v2612_v58  ;;  %v4480_v3 = vpop.eup %4479  ;;  %v2614_v27 = vmul.f32 %v4478_v62, %v3896_v48  ;;  %v6908_v11 = vpop.xlane.xlu0 %3134  ;;  %4507 = vrcp.f32 %v6838_v56  ;;  %v3951_v47 = vadd.f32 %v6793_v28, %v6787_v18 }
 0x5cc   : > { %2666 = vrot.lane.b32.xlu1 %v2633_v44, %s4630_s8  ;;  %2672 = vrot.lane.b32.xlu0 %v2636_v38, %s4630_s8  ;;  %v2640_v6 = vadd.f32 %v6849_v63, %v2615_v43  ;;  %v2617_v54 = vmul.f32 %v4480_v3, %v3905_v30  ;;  %v4482_v12 = vpop.eup %4481  ;;  %v6902_v38 = vpop.f32.mrf.mxu1  ;;  %4509 = vrcp.f32 %v6819_v51  ;;  %v3957_v18 = vadd.f32 %v6821_v29, %v6815_v4  ;;  %v7398_v29 = vld [vmem:[#allocation45_spill] sm:$0xff] }
 0x5cd   : > { %v2619_v23 = vmul.f32 %v4482_v12, %v3911_v2  ;;  %v2639_v14 = vadd.f32 %v6849_v63, %v2614_v27  ;;  %v4484_v44 = vpop.eup %4483  ;;  %v3913_v36 = vpop.f32.mrf.mxu0  ;;  %4511 = vrcp.f32 %v6853_v15  ;;  %v3963_v4 = vadd.f32 %v6861_v39, %v6845_v9 }
 0x5ce   : > { %v2642_v25 = vadd.f32 %v6849_v63, %v2617_v54  ;;  %v2616_v37 = vmul.f32 %v4484_v44, %v3902_v45  ;;  %v4486_v61 = vpop.eup %4485  ;;  %v3914_v17 = vadd.f32 %v3913_v36, %v3912_v42  ;;  %v3942_v45 = vadd.f32 %v6761_v13, %v6757_v1 }
 0x5cf   : > { %v2644_v31 = vadd.f32 %v6849_v63, %v2619_v23  ;;  %v4488_v41 = vpop.eup %4487  ;;  %v2618_v7 = vmul.f32 %v4486_v61, %v3908_v53  ;;  %v6919_v59 = vpop.xlane.xlu0 %3140  ;;  %4513 = vrcp.f32 %v6877_v50  ;;  %v3948_v13 = vadd.f32 %v6781_v35, %v6773_v22  ;;  %v7396_v35 = vld [vmem:[#allocation44_spill] sm:$0xff] }
 0x5d0   : > { %2676 = vrot.lane.b32.xlu0 %v2638_v8, %s4630_s8  ;;  %2670 = vrot.lane.b32.xlu1 %v2635_v26, %s4630_s8  ;;  %v2641_v40 = vadd.f32 %v6849_v63, %v2616_v37  ;;  %v6913_v8 = vpop.f32.mrf.mxu1  ;;  %v4490_v5 = vpop.eup %4489  ;;  %v2620_v48 = vmul.f32 %v4488_v41, %v3914_v17  ;;  %4515 = vrcp.f32 %v6829_v10  ;;  %v7400_v17 = vld [vmem:[#allocation48_spill] sm:$0xff] }
 0x5d1   : > { %v4492_v49 = vpop.eup %4491  ;;  %v2643_v30 = vadd.f32 %v6849_v63, %v2618_v7  ;;  %4517 = vrcp.f32 %v6898_v34 }
 0x5d2   : > { %v6924_v60 = vpop.f32.mrf.mxu1  ;;  %v4494_v2 = vpop.eup %4493  ;;  %v3431_v33 = vmul.f32 %v4492_v49, %v3939_v21  ;;  %v2645_v52 = vadd.f32 %v6849_v63, %v2620_v48  ;;  %4519 = vrcp.f32 %v7398_v29  ;;  %v3969_v49 = vadd.f32 %v6902_v38, %v6891_v16 }
 0x5d3   : > { %v4496_v3 = vpop.eup %4495  ;;  %v6936_v57 = vpop.permute.xlu0 %3453  ;;  %4521 = vrcp.f32 %v6908_v11 }
 0x5d4   : > { %2680 = vrot.lane.b32.xlu0 %v2640_v6, %s4630_s8  ;;  %2674 = vrot.lane.b32.xlu1 %v2637_v46, %s4630_s8  ;;  %v6929_v42 = vpop.f32.mrf.mxu1  ;;  %v3456_v54 = vadd.f32 %v6936_v57, %v3431_v33  ;;  %v3433_v56 = vmul.f32 %v4496_v3, %v3945_v55  ;;  %v4498_v12 = vpop.eup %4497  ;;  %4523 = vrcp.f32 %v6919_v59 }
 0x5d5   : > { %v3435_v15 = vmul.f32 %v4498_v12, %v3951_v47 }
 0x5d6   : > { %v3974_v20 = vpop.f32.mrf.mxu1  ;;  %v3458_v51 = vadd.f32 %v6936_v57, %v3433_v56 }
 0x5d7   : > { %v3460_v37 = vadd.f32 %v6936_v57, %v3435_v15 }
 0x5d8   : > { %2684 = vrot.lane.b32.xlu0 %v2642_v25, %s4630_s8  ;;  %2678 = vrot.lane.b32.xlu1 %v2639_v14, %s4630_s8  ;;  %v4500_v25 = vpop.eup %4499  ;;  %v3976_v44 = vpop.f32.mrf.mxu1 }
 0x5d9   : > { %v3915_v19 = vpop.f32.mrf.mxu0  ;;  %v3432_v1 = vmul.f32 %v4500_v25, %v3942_v45  ;;  %v4502_v14 = vpop.eup %4501 }
 0x5da   : > { %v4504_v36 = vpop.eup %4503  ;;  %v3437_v53 = vmul.f32 %v4502_v14, %v3957_v18  ;;  %v3977_v61 = vpop.f32.mrf.mxu1 }
 0x5db   : > { %v3916_v24 = vpop.f32.mrf.mxu0  ;;  %v3457_v28 = vadd.f32 %v6936_v57, %v3432_v1  ;;  %v3434_v22 = vmul.f32 %v4504_v36, %v3948_v13  ;;  %v3978_v55 = vadd.f32 %v3977_v61, %v3976_v44 }
 0x5dc   : > { %v3917_v26 = vadd.f32 %v3916_v24, %v3915_v19  ;;  %2688 = vrot.lane.b32.xlu0 %v2644_v31, %s4630_s8  ;;  %2682 = vrot.lane.b32.xlu1 %v2641_v40, %s4630_s8  ;;  %v4506_v19 = vpop.eup %4505  ;;  %v7399_v31 = vld [vmem:[#allocation47_spill] sm:$0xff] }
 0x5dd   : > { %v3918_v58 = vpop.f32.mrf.mxu0  ;;  %v3459_v10 = vadd.f32 %v6936_v57, %v3434_v22  ;;  %v4508_v34 = vpop.eup %4507  ;;  %v3960_v40 = vadd.f32 %v7400_v17, %v7399_v31  ;;  %v3439_v7 = vmul.f32 %v4506_v19, %v3963_v4 }
 0x5de   : > { %v2621_v43 = vmul.f32 %v4490_v5, %v3917_v26  ;;  %v3462_v5 = vadd.f32 %v6936_v57, %v3437_v53  ;;  %v4510_v9 = vpop.eup %4509  ;;  %v3966_v26 = vadd.f32 %v6886_v32, %v6872_v0  ;;  %v3972_v32 = vadd.f32 %v6924_v60, %v6913_v8 }
 0x5df   : > { %v3919_v62 = vpop.f32.mrf.mxu0  ;;  %v4512_v39 = vpop.eup %4511 }
 0x5e0   : > { %v2646_v6 = vadd.f32 %v6849_v63, %v2621_v43  ;;  %v3920_v46 = vadd.f32 %v3919_v62, %v3918_v58  ;;  %2686 = vrot.lane.b32.xlu1 %v2643_v30, %s4630_s8  ;;  %v3438_v21 = vmul.f32 %v4512_v39, %v3960_v40  ;;  %v4514_v48 = vpop.eup %4513  ;;  %v3441_v43 = vmul.f32 %v4510_v9, %v3969_v49 }
 0x5e1   : > { %v3975_v30 = vadd.f32 %v3974_v20, %v6929_v42  ;;  %v3464_v62 = vadd.f32 %v6936_v57, %v3439_v7  ;;  %v3440_v0 = vmul.f32 %v4514_v48, %v3966_v26  ;;  %v4516_v38 = vpop.eup %4515 }
 0x5e2   : > { %v2622_v27 = vmul.f32 %v4494_v2, %v3920_v46  ;;  %2692 = vrot.lane.b32.xlu0 %v2646_v6, %s4630_s8  ;;  %v3979_v41 = vpop.f32.mrf.mxu1  ;;  %v3463_v16 = vadd.f32 %v6936_v57, %v3438_v21  ;;  %v4518_v6 = vpop.eup %4517  ;;  %v3466_v59 = vadd.f32 %v6936_v57, %v3441_v43 }
 0x5e3   : > { %v3443_v46 = vmul.f32 %v4516_v38, %v3975_v30  ;;  %v3465_v3 = vadd.f32 %v6936_v57, %v3440_v0  ;;  %v3442_v42 = vmul.f32 %v4518_v6, %v3972_v32  ;;  %v4520_v8 = vpop.eup %4519 }
 0x5e4   : > { %2690 = vrot.lane.b32.xlu1 %v2645_v52, %s4630_s8  ;;  %v2647_v23 = vadd.f32 %v6849_v63, %v2622_v27  ;;  %v7397_v63 = vld [vmem:[#allocation43_spill] sm:$0xff]  ;;  %v3980_v11 = vpop.f32.mrf.mxu1  ;;  %v4522_v45 = vpop.eup %4521 }
 0x5e5   : > { %v3954_v50 = vadd.f32 %v7397_v63, %v7396_v35  ;;  %v3981_v33 = vadd.f32 %v3980_v11, %v3979_v41  ;;  %v3468_v52 = vadd.f32 %v6936_v57, %v3443_v46  ;;  %v3444_v56 = vmul.f32 %v4522_v45, %v3978_v55  ;;  %v4524_v47 = vpop.eup %4523 }
 0x5e6   : > { %3488 = vrot.lane.b32.xlu0 %v3456_v54, %s4624_s13  ;;  %v3982_v2 = vpop.f32.mrf.mxu1  ;;  %v3467_v54 = vadd.f32 %v6936_v57, %v3442_v42 }
 0x5e7   : > { %v3436_v24 = vmul.f32 %v4508_v34, %v3954_v50  ;;  %v3445_v27 = vmul.f32 %v4520_v8, %v3981_v33 }
 0x5e8   : > { %2694 = vrot.lane.b32.xlu1 %v2647_v23, %s4630_s8  ;;  %v3983_v60 = vpop.f32.mrf.mxu1  ;;  %v3469_v23 = vadd.f32 %v6936_v57, %v3444_v56 }
 0x5e9   : > { %v3461_v58 = vadd.f32 %v6936_v57, %v3436_v24  ;;  %v3984_v12 = vadd.f32 %v3983_v60, %v3982_v2  ;;  %v3470_v20 = vadd.f32 %v6936_v57, %v3445_v27 }
 0x5ea   : > { %3492 = vrot.lane.b32.xlu0 %v3458_v51, %s4624_s13 }
 0x5eb   : > { %v3446_v25 = vmul.f32 %v4524_v47, %v3984_v12 }
 0x5ec   : > { %3490 = vrot.lane.b32.xlu1 %v3457_v28, %s4624_s13 }
 0x5ed   : > { %v3471_v1 = vadd.f32 %v6936_v57, %v3446_v25 }
 0x5ee   : > { %3496 = vrot.lane.b32.xlu0 %v3460_v37, %s4624_s13 }
 0x5f0   : > { %3494 = vrot.lane.b32.xlu1 %v3459_v10, %s4624_s13 }
 0x5f2   : > { %3500 = vrot.lane.b32.xlu0 %v3462_v5, %s4624_s13 }
 0x5f4   : > { %3498 = vrot.lane.b32.xlu1 %v3461_v58, %s4624_s13 }
 0x5f6   : > { %3504 = vrot.lane.b32.xlu0 %v3464_v62, %s4624_s13 }
 0x5f8   : > { %3502 = vrot.lane.b32.xlu1 %v3463_v16, %s4624_s13 }
 0x5fa   : > { %3508 = vrot.lane.b32.xlu0 %v3466_v59, %s4624_s13 }
 0x5fc   : > { %3506 = vrot.lane.b32.xlu1 %v3465_v3, %s4624_s13 }
 0x5fe   : > { %3512 = vrot.lane.b32.xlu0 %v3468_v52, %s4624_s13 }
 0x600   : > { %3510 = vrot.lane.b32.xlu1 %v3467_v54, %s4624_s13 }
 0x602   : > { %3516 = vrot.lane.b32.xlu0 %v3470_v20, %s4624_s13 }
 0x604   : > { %3514 = vrot.lane.b32.xlu1 %v3469_v23, %s4624_s13 }
 0x608   : > { %3518 = vrot.lane.b32.xlu1 %v3471_v1, %s4624_s13  ;;  %s3728_s13 = sshll.u32 %s4685_s22, 11  ;;  %s4558_s22 = scalar_lea.vmem %s7071_s26, 2048 }
 0x609   : > { %s7069_s6 = scalar_lea.hbm %s7122_s5, %s3728_s13  ;;  %p4559_p12 = scmp.ne.s32.totalorder %s7071_s26, %s4558_s22 }
 0x60a   : > { %p4566_p2 = scmp.lt.s32.totalorder %s4564_s14, %s4558_s22 }
 0x60b   : > { %p4560_p13 = pnand %p4559_p12, %p4702_p5 }
 0x60c   : > { %p4567_p3 = por %p4566_p2, %p4565_p1 }
 0x60d   : > { %p4561_p0 = pneg %p4560_p13 }
 0x60f   : > { %p4568_p4 = pnand %p4567_p3, %p4561_p0 }
 0x63a   : > { %v2665_v13 = vpop.permute.xlu1 %2664  ;;  %v2669_v51 = vpop.permute.xlu0 %2668 }
 0x63b   : > { %2713 = vst.msk [vmem:[%s5346_s10] sm:$0xff] %vm2712_vm2, %v2665_v13  ;;  %2715 = vst.msk [vmem:[%s5346_s10 + $0x10] sm:$0xff] %vm2712_vm2, %v2669_v51 }
 0x63e   : > { %v2667_v15 = vpop.permute.xlu1 %2666  ;;  %v2673_v14 = vpop.permute.xlu0 %2672 }
 0x63f   : > { %2714 = vst.msk [vmem:[%s5346_s10 + $0x8] sm:$0xff] %vm2712_vm2, %v2667_v15  ;;  %2717 = vst.msk [vmem:[%s5346_s10 + $0x20] sm:$0xff] %vm2712_vm2, %v2673_v14 }
 0x642   : > { %v2671_v57 = vpop.permute.xlu1 %2670  ;;  %v2677_v44 = vpop.permute.xlu0 %2676 }
 0x643   : > { %2716 = vst.msk [vmem:[%s5346_s10 + $0x18] sm:$0xff] %vm2712_vm2, %v2671_v57  ;;  %2719 = vst.msk [vmem:[%s5346_s10 + $0x30] sm:$0xff] %vm2712_vm2, %v2677_v44 }
 0x646   : > { %v2675_v36 = vpop.permute.xlu1 %2674  ;;  %v2681_v18 = vpop.permute.xlu0 %2680 }
 0x647   : > { %2718 = vst.msk [vmem:[%s5346_s10 + $0x28] sm:$0xff] %vm2712_vm2, %v2675_v36  ;;  %2721 = vst.msk [vmem:[%s5346_s10 + $0x40] sm:$0xff] %vm2712_vm2, %v2681_v18 }
 0x64a   : > { %v2679_v28 = vpop.permute.xlu1 %2678  ;;  %v2685_v22 = vpop.permute.xlu0 %2684 }
 0x64b   : > { %2720 = vst.msk [vmem:[%s5346_s10 + $0x38] sm:$0xff] %vm2712_vm2, %v2679_v28  ;;  %2723 = vst.msk [vmem:[%s5346_s10 + $0x50] sm:$0xff] %vm2712_vm2, %v2685_v22 }
 0x64e   : > { %v2683_v35 = vpop.permute.xlu1 %2682  ;;  %v2689_v63 = vpop.permute.xlu0 %2688 }
 0x64f   : > { %2722 = vst.msk [vmem:[%s5346_s10 + $0x48] sm:$0xff] %vm2712_vm2, %v2683_v35  ;;  %2725 = vst.msk [vmem:[%s5346_s10 + $0x60] sm:$0xff] %vm2712_vm2, %v2689_v63 }
 0x652   : > { %v2687_v50 = vpop.permute.xlu1 %2686 }
 0x653   : > { %2724 = vst.msk [vmem:[%s5346_s10 + $0x58] sm:$0xff] %vm2712_vm2, %v2687_v50 }
 0x654   : > { %v2693_v37 = vpop.permute.xlu0 %2692 }
 0x655   : > { %2727 = vst.msk [vmem:[%s5346_s10 + $0x70] sm:$0xff] %vm2712_vm2, %v2693_v37 }
 0x656   : > { %v2691_v53 = vpop.permute.xlu1 %2690 }
 0x657   : > { %2726 = vst.msk [vmem:[%s5346_s10 + $0x68] sm:$0xff] %vm2712_vm2, %v2691_v53 }
 0x658   : > { %v3489_v19 = vpop.permute.xlu0 %3488 }
 0x659   : > { %3537 = vst.msk [vmem:[%s5346_s10] sm:$0xff] %vm3536_vm3, %v3489_v19 }
 0x65a   : > { %v2695_v61 = vpop.permute.xlu1 %2694 }
 0x65b   : > { %2728 = vst.msk [vmem:[%s5346_s10 + $0x78] sm:$0xff] %vm2712_vm2, %v2695_v61 }
 0x65c   : > { %v3493_v4 = vpop.permute.xlu0 %3492 }
 0x65d   : > { %3539 = vst.msk [vmem:[%s5346_s10 + $0x10] sm:$0xff] %vm3536_vm3, %v3493_v4 }
 0x65e   : > { %v3491_v29 = vpop.permute.xlu1 %3490 }
 0x65f   : > { %3538 = vst.msk [vmem:[%s5346_s10 + $0x8] sm:$0xff] %vm3536_vm3, %v3491_v29 }
 0x660   : > { %v3497_v10 = vpop.permute.xlu0 %3496 }
 0x661   : > { %3541 = vst.msk [vmem:[%s5346_s10 + $0x20] sm:$0xff] %vm3536_vm3, %v3497_v10 }
 0x662   : > { %v3495_v34 = vpop.permute.xlu1 %3494 }
 0x663   : > { %3540 = vst.msk [vmem:[%s5346_s10 + $0x18] sm:$0xff] %vm3536_vm3, %v3495_v34 }
 0x664   : > { %v3501_v31 = vpop.permute.xlu0 %3500 }
 0x665   : > { %3543 = vst.msk [vmem:[%s5346_s10 + $0x30] sm:$0xff] %vm3536_vm3, %v3501_v31 }
 0x666   : > { %v3499_v17 = vpop.permute.xlu1 %3498 }
 0x667   : > { %3542 = vst.msk [vmem:[%s5346_s10 + $0x28] sm:$0xff] %vm3536_vm3, %v3499_v17 }
 0x668   : > { %v3505_v40 = vpop.permute.xlu0 %3504 }
 0x669   : > { %3545 = vst.msk [vmem:[%s5346_s10 + $0x40] sm:$0xff] %vm3536_vm3, %v3505_v40 }
 0x66a   : > { %v3503_v41 = vpop.permute.xlu1 %3502 }
 0x66b   : > { %3544 = vst.msk [vmem:[%s5346_s10 + $0x38] sm:$0xff] %vm3536_vm3, %v3503_v41 }
 0x66c   : > { %v3509_v24 = vpop.permute.xlu0 %3508 }
 0x66d   : > { %3547 = vst.msk [vmem:[%s5346_s10 + $0x50] sm:$0xff] %vm3536_vm3, %v3509_v24 }
 0x66e   : > { %v3507_v5 = vpop.permute.xlu1 %3506 }
 0x66f   : > { %3546 = vst.msk [vmem:[%s5346_s10 + $0x48] sm:$0xff] %vm3536_vm3, %v3507_v5 }
 0x670   : > { %v3513_v7 = vpop.permute.xlu0 %3512 }
 0x671   : > { %3549 = vst.msk [vmem:[%s5346_s10 + $0x60] sm:$0xff] %vm3536_vm3, %v3513_v7 }
 0x672   : > { %v3511_v9 = vpop.permute.xlu1 %3510 }
 0x673   : > { %3548 = vst.msk [vmem:[%s5346_s10 + $0x58] sm:$0xff] %vm3536_vm3, %v3511_v9 }
 0x674   : > { %v3517_v39 = vpop.permute.xlu0 %3516 }
 0x675   : > { %3551 = vst.msk [vmem:[%s5346_s10 + $0x70] sm:$0xff] %vm3536_vm3, %v3517_v39 }
 0x676   : > { %v3515_v26 = vpop.permute.xlu1 %3514 }
 0x677   : > { %3550 = vst.msk [vmem:[%s5346_s10 + $0x68] sm:$0xff] %vm3536_vm3, %v3515_v26 }
 0x67a   : > { %v3519_v49 = vpop.permute.xlu1 %3518 }
 0x67b   : > { %3552 = vst.msk [vmem:[%s5346_s10 + $0x78] sm:$0xff] %vm3536_vm3, %v3519_v49 }
 0x67c   : > { %4571 = shalt.err (!%p4568_p4)
}
 0x67d   : > { %s4572_s30 = scalar_lea.hbm %s7069_s6, 2048  ;;  %s4576_s16 = scalar_lea.hbm %s7122_s5, 4096 }
 0x67e   : > { %p4573_p7 = scmp.ne.s32.totalorder %s7069_s6, %s4572_s30  ;;  %p4577_p10 = scmp.lt.s32.totalorder %s7069_s6, %s7122_s5 }
 0x67f   : > { %p4578_p11 = scmp.lt.s32.totalorder %s4576_s16, %s4572_s30 }
 0x680   : > { %p4574_p8 = pnand %p4573_p7, %p4702_p5 }
 0x681   : > { %p4579_p12 = por %p4578_p11, %p4577_p10 }
 0x682   : > { %p4575_p9 = pneg %p4574_p8 }
 0x684   : > { %p4580_p13 = pnand %p4579_p12, %p4575_p9 }
 0x686   : > { %4583 = shalt.err (!%p4580_p13)
}
 0x687   : > { %s4632_s23 = smov 128   ;;  %s4633_s13 = smov 8  }
 0x688   : > { %3985 = dma.vmem_to_hbm [thread:$0]  (%p4702_p5), %s7071_s26, 2048, %s7069_s6, %s7077_s7, %s4632_s23, %s4632_s23, %s4633_s13  }
 0x689 PF: > { %p3991_p0 = scmp.ge.s32.totalorder %s4618_s21, 2  ;;  %s3582_s8 = sand.u32 1, %s4606_s18  }
 0x68a   : > { %s3583_s25 = scalar_lea.sflag [#allocation3], %s3582_s8 }
 0x68b   : > { %p3988_p1 = pnand %p3991_p0, %p4706_p6 }
 0x68d   : > { %p3989_p2 = pneg %p3988_p1 }
 0x68f   : > { %4601 = dma.done.wait (%p3989_p2), %s3583_s25, 2048  }
 0x690   : > { %4603 = vsyncadd (%p3989_p2), %s3583_s25, 4294965248  ;;  %p15_p3 = scmp.ge.s32.totalorder %s4689_s24, 4   ;;  %s7401_s18 = smov %s4610_s19 }
 0x691   : > { %s7402_s19 = smov %s4614_s20  ;;  %s7403_s20 = smov %s4700_s27 }
 0x692   : > { %s7404_s21 = smov %s4689_s24  ;;  %17 = sbr.rel (!%p15_p3) target bundleno = 3 (0x3), region = 81 }
 0x697   :  { %3588 = vsyncpa [#allocation3], 1 }
 0x698   :  { %3590 = vsyncpa [#allocation3 + $0x1], 1 }

</bundles_post_ra>
